<compile_context>
chip_gen: v6e
topology: v6e:2x2x1
jax: 0.10.0
libtpu: 0.0.40
codegen_flags: <defaults>
</compile_context>

<pallas_src>
import functools

import jax
import jax.numpy as jnp
from jax import lax
from jax.experimental import pallas as pl
from jax.experimental.pallas import tpu as pltpu


def _attention_kernel(x_ref, wqkv_ref, bqkv_ref, wout_ref, bout_ref, o_ref,
                      *, n_heads, d_k, scale):
    """Per-batch attention block, channels-major.

    x_ref   : (1, C, S)            input, channels x tokens
    wqkv_ref: (3*h*d_k, C)         projection weight (PyTorch (out, in) layout)
    bqkv_ref: (3*h*d_k, 1)         projection bias (column)
    wout_ref: (n_heads, C, d_k)    output weight, split per head
    bout_ref: (C, 1)               output bias (column)
    o_ref   : (1, C, S)            output, channels x tokens
    """
    x_t = x_ref[0]  # (C, S) float32

    # QKV projection in transposed form: (3hd, C) @ (C, S) -> (3hd, S).
    qkv_t = jnp.dot(wqkv_ref[...], x_t,
                    preferred_element_type=jnp.float32) + bqkv_ref[...]

    # Start the accumulator with residual + output bias.
    out_t = x_t + bout_ref[...]  # (C, S)

    # Per-head attention.  Row layout of qkv_t is h groups of [q|k|v] rows,
    # matching torch's .view(B, S, h, 3*d_k) + chunk(dim=-1).
    # (n_heads is tiny here; a static unrolled loop keeps LLO visibility.
    #  Switch to lax.fori_loop if n_heads grows.)
    for h in range(n_heads):
        base = h * 3 * d_k
        q_t = qkv_t[base:base + d_k, :] * scale          # (d_k, S) -- scale on q
        k_t = qkv_t[base + d_k:base + 2 * d_k, :]        # (d_k, S)
        v_t = qkv_t[base + 2 * d_k:base + 3 * d_k, :]    # (d_k, S)

        # scores[i, j] = sum_d q[i, d] * k[j, d]   (TN matmul, no explicit .T)
        scores = lax.dot_general(
            q_t, k_t, dimension_numbers=(((0,), (0,)), ((), ())),
            preferred_element_type=jnp.float32)          # (S, S)

        # softmax over the key axis (last axis).
        m = jnp.max(scores, axis=-1, keepdims=True)
        p = jnp.exp(scores - m)
        denom = jnp.sum(p, axis=-1, keepdims=True)
        attn = p * pl.reciprocal(denom, approx=True)     # divide -> EUP recip

        # head_out^T = v^T @ attn^T  (NT matmul, no explicit transpose)
        ho_t = lax.dot_general(
            v_t, attn, dimension_numbers=(((1,), (1,)), ((), ())),
            preferred_element_type=jnp.float32)          # (d_k, S)

        # Accumulate the output projection per head: (C, d_k) @ (d_k, S).
        out_t = out_t + jnp.dot(wout_ref[h], ho_t,
                                preferred_element_type=jnp.float32)

    o_ref[0] = out_t.astype(o_ref.dtype)


def attention_block(x_nchw, w_qkv, b_qkv, w_out, b_out, *, n_heads, d_k):
    """Pallas implementation of AttentionBlock.forward.

    x_nchw: (B, C, H, W)
    w_qkv : (3*h*d_k, C)   (PyTorch Linear weight layout: (out, in))
    b_qkv : (3*h*d_k,)
    w_out : (C, h*d_k)
    b_out : (C,)
    returns (B, C, H, W)
    """
    B, C, H, W = x_nchw.shape
    S = H * W
    hd3 = 3 * n_heads * d_k
    scale = float(d_k) ** -0.5

    # Channels-major glue: pure reshapes, no transposes.
    x_cs = x_nchw.reshape(B, C, S).astype(jnp.float32)                   # (B, C, S)
    wqkv = w_qkv.astype(jnp.float32)                                     # (3hd, C)
    bqkv = b_qkv.reshape(hd3, 1).astype(jnp.float32)                     # (3hd, 1)
    wout_h = (w_out.reshape(C, n_heads, d_k)
                   .transpose(1, 0, 2).astype(jnp.float32))              # (h, C, d_k)
    bout = b_out.reshape(C, 1).astype(jnp.float32)                       # (C, 1)

    kernel = functools.partial(_attention_kernel,
                               n_heads=n_heads, d_k=d_k, scale=scale)

    out_cs = pl.pallas_call(
        kernel,
        out_shape=jax.ShapeDtypeStruct((B, C, S), jnp.float32),
        grid=(B,),
        in_specs=[
            pl.BlockSpec((1, C, S), lambda b: (b, 0, 0)),          # x (per-batch)
            pl.BlockSpec((hd3, C), lambda b: (0, 0)),              # w_qkv (whole)
            pl.BlockSpec((hd3, 1), lambda b: (0, 0)),              # b_qkv
            pl.BlockSpec((n_heads, C, d_k), lambda b: (0, 0, 0)),  # w_out per head
            pl.BlockSpec((C, 1), lambda b: (0, 0)),                # b_out
        ],
        out_specs=pl.BlockSpec((1, C, S), lambda b: (b, 0, 0)),
        compiler_params=pltpu.CompilerParams(
            dimension_semantics=("parallel",)),
    )(x_cs, wqkv, bqkv, wout_h, bout)

    # (B, C, S) -> NCHW: pure reshape.
    return out_cs.reshape(B, C, H, W)


def _reference(x_nchw, w_qkv, b_qkv, w_out, b_out, *, n_heads, d_k):
    """Pure-JAX reference mirroring the PyTorch forward exactly."""
    B, C, H, W = x_nchw.shape
    scale = float(d_k) ** -0.5
    x = jnp.transpose(x_nchw.reshape(B, C, H * W), (0, 2, 1))            # (B, S, C)
    qkv = x @ w_qkv.T + b_qkv                                            # (B, S, 3hd)
    qkv = qkv.reshape(B, -1, n_heads, 3 * d_k)
    q, k, v = jnp.split(qkv, 3, axis=-1)
    attn = jnp.einsum('bihd,bjhd->bijh', q, k) * scale
    attn = jax.nn.softmax(attn, axis=2)
    res = jnp.einsum('bijh,bjhd->bihd', attn, v)
    res = res.reshape(B, -1, n_heads * d_k)
    res = res @ w_out.T + b_out
    res = res + x
    return jnp.transpose(res, (0, 2, 1)).reshape(B, C, H, W)


if __name__ == "__main__":
    # Small but lane-dense shapes: S = H*W = 256 (multiple of 128).
    B, C, H, W = 2, 32, 16, 16
    n_heads, d_k = 2, 16

    key = jax.random.PRNGKey(0)
    kx, kw1, kb1, kw2, kb2 = jax.random.split(key, 5)

    x = jax.random.normal(kx, (B, C, H, W), dtype=jnp.float32)
    # Deterministic synthetic parameters (Linear shapes per the module __init__).
    w_qkv = jax.random.normal(kw1, (3 * n_heads * d_k, C), dtype=jnp.float32) * 0.05
    b_qkv = jax.random.normal(kb1, (3 * n_heads * d_k,), dtype=jnp.float32) * 0.01
    w_out = jax.random.normal(kw2, (C, n_heads * d_k), dtype=jnp.float32) * 0.05
    b_out = jax.random.normal(kb2, (C,), dtype=jnp.float32) * 0.01

    out = attention_block(x, w_qkv, b_qkv, w_out, b_out, n_heads=n_heads, d_k=d_k)
    out = jax.block_until_ready(out)

    ref = _reference(x, w_qkv, b_qkv, w_out, b_out, n_heads=n_heads, d_k=d_k)
    assert out.shape == (B, C, H, W)
    # Tolerance loosened slightly vs. exact f32 because the softmax uses the
    # EUP approximate reciprocal (per perf review); error contribution ~1e-4.
    assert jnp.allclose(out, ref, atol=2e-3, rtol=2e-3), "mismatch vs reference"

    print("KERNEL_OK")
</pallas_src>

<mosaic_0001>
module attributes {stable_mosaic.version = 11 : i64} {
  func.func @_attention_kernel(%arg0: i32, %arg1: memref<1x32x256xf32, #tpu.memory_space<vmem>>, %arg2: memref<96x32xf32, #tpu.memory_space<vmem>>, %arg3: memref<96x1xf32, #tpu.memory_space<vmem>>, %arg4: memref<2x32x16xf32, #tpu.memory_space<vmem>>, %arg5: memref<32x1xf32, #tpu.memory_space<vmem>>, %arg6: memref<1x32x256xf32, #tpu.memory_space<vmem>>) attributes {dimension_semantics = [#tpu.dimension_semantics<parallel>], iteration_bounds = array<i64: 2>, scalar_prefetch = 0 : i64, scratch_operands = 0 : i64, tpu.core_type = #tpu.core_type<tc>, window_params = [{transform_indices = @transform_0, window_bounds = array<i64: 1, 32, 256>}, {pipeline_mode = #tpu.pipeline_mode<synchronous>, transform_indices = @transform_1, window_bounds = array<i64: 96, 32>}, {pipeline_mode = #tpu.pipeline_mode<synchronous>, transform_indices = @transform_2, window_bounds = array<i64: 96, 1>}, {pipeline_mode = #tpu.pipeline_mode<synchronous>, transform_indices = @transform_3, window_bounds = array<i64: 2, 32, 16>}, {pipeline_mode = #tpu.pipeline_mode<synchronous>, transform_indices = @transform_4, window_bounds = array<i64: 32, 1>}, {transform_indices = @transform_5, window_bounds = array<i64: 1, 32, 256>}]} {
    %c0 = arith.constant 0 : index
    %c0_0 = arith.constant 0 : index
    %c0_1 = arith.constant 0 : index
    %0 = vector.load %arg1[%c0, %c0_0, %c0_1] : memref<1x32x256xf32, #tpu.memory_space<vmem>>, vector<1x32x256xf32>
    %1 = vector.shape_cast %0 : vector<1x32x256xf32> to vector<32x256xf32>
    %c0_2 = arith.constant 0 : index
    %c0_3 = arith.constant 0 : index
    %2 = vector.load %arg2[%c0_2, %c0_3] : memref<96x32xf32, #tpu.memory_space<vmem>>, vector<96x32xf32>
    %cst = arith.constant dense<0.000000e+00> : vector<96x256xf32>
    %3 = tpu.matmul %2, %1, %cst {dimension_numbers = #tpu.dot_dimension_numbers<[1], [0], [0], [1], [0, 0, 1, 1], [], []>} : vector<96x32xf32>, vector<32x256xf32>, vector<96x256xf32> -> vector<96x256xf32>
    %c0_4 = arith.constant 0 : index
    %c0_5 = arith.constant 0 : index
    %4 = vector.load %arg3[%c0_4, %c0_5] : memref<96x1xf32, #tpu.memory_space<vmem>>, vector<96x1xf32>
    %5 = vector.broadcast %4 : vector<96x1xf32> to vector<96x256xf32>
    %6 = arith.addf %3, %5 : vector<96x256xf32>
    %c0_6 = arith.constant 0 : index
    %c0_7 = arith.constant 0 : index
    %7 = vector.load %arg5[%c0_6, %c0_7] : memref<32x1xf32, #tpu.memory_space<vmem>>, vector<32x1xf32>
    %8 = vector.broadcast %7 : vector<32x1xf32> to vector<32x256xf32>
    %9 = arith.addf %1, %8 : vector<32x256xf32>
    %10 = vector.extract_strided_slice %6 {offsets = [0, 0], sizes = [16, 256], strides = [1, 1]} : vector<96x256xf32> to vector<16x256xf32>
    %cst_8 = arith.constant 2.500000e-01 : f32
    %11 = vector.broadcast %cst_8 : f32 to vector<16x256xf32>
    %12 = arith.mulf %10, %11 : vector<16x256xf32>
    %13 = vector.extract_strided_slice %6 {offsets = [16, 0], sizes = [16, 256], strides = [1, 1]} : vector<96x256xf32> to vector<16x256xf32>
    %14 = vector.extract_strided_slice %6 {offsets = [32, 0], sizes = [16, 256], strides = [1, 1]} : vector<96x256xf32> to vector<16x256xf32>
    %cst_9 = arith.constant dense<0.000000e+00> : vector<256x256xf32>
    %15 = tpu.matmul %12, %13, %cst_9 {dimension_numbers = #tpu.dot_dimension_numbers<[0], [0], [1], [1], [0, 1, 1, 1], [], []>} : vector<16x256xf32>, vector<16x256xf32>, vector<256x256xf32> -> vector<256x256xf32>
    %cst_10 = arith.constant dense<0xFF800000> : vector<256xf32>
    %16 = vector.multi_reduction <maximumf>, %15, %cst_10 [1] : vector<256x256xf32> to vector<256xf32>
    %17 = vector.shape_cast %16 : vector<256xf32> to vector<256x1xf32>
    %18 = vector.broadcast %17 : vector<256x1xf32> to vector<256x256xf32>
    %19 = arith.subf %15, %18 : vector<256x256xf32>
    %20 = math.exp %19 : vector<256x256xf32>
    %cst_11 = arith.constant dense<0.000000e+00> : vector<256xf32>
    %21 = vector.multi_reduction <add>, %20, %cst_11 [1] : vector<256x256xf32> to vector<256xf32>
    %22 = vector.shape_cast %21 : vector<256xf32> to vector<256x1xf32>
    %23 = tpu.reciprocal %22 {approx = true} : vector<256x1xf32> -> vector<256x1xf32>
    %24 = vector.broadcast %23 : vector<256x1xf32> to vector<256x256xf32>
    %25 = arith.mulf %20, %24 : vector<256x256xf32>
    %cst_12 = arith.constant dense<0.000000e+00> : vector<16x256xf32>
    %26 = tpu.matmul %14, %25, %cst_12 {dimension_numbers = #tpu.dot_dimension_numbers<[1], [1], [0], [0], [0, 0, 1, 0], [], []>} : vector<16x256xf32>, vector<256x256xf32>, vector<16x256xf32> -> vector<16x256xf32>
    %c0_13 = arith.constant 0 : index
    %c0_14 = arith.constant 0 : index
    %c0_15 = arith.constant 0 : index
    %27 = vector.load %arg4[%c0_13, %c0_14, %c0_15] : memref<2x32x16xf32, #tpu.memory_space<vmem>>, vector<1x32x16xf32>
    %28 = vector.shape_cast %27 : vector<1x32x16xf32> to vector<32x16xf32>
    %cst_16 = arith.constant dense<0.000000e+00> : vector<32x256xf32>
    %29 = tpu.matmul %28, %26, %cst_16 {dimension_numbers = #tpu.dot_dimension_numbers<[1], [0], [0], [1], [0, 0, 1, 1], [], []>} : vector<32x16xf32>, vector<16x256xf32>, vector<32x256xf32> -> vector<32x256xf32>
    %30 = arith.addf %9, %29 : vector<32x256xf32>
    %31 = vector.extract_strided_slice %6 {offsets = [48, 0], sizes = [16, 256], strides = [1, 1]} : vector<96x256xf32> to vector<16x256xf32>
    %cst_17 = arith.constant 2.500000e-01 : f32
    %32 = vector.broadcast %cst_17 : f32 to vector<16x256xf32>
    %33 = arith.mulf %31, %32 : vector<16x256xf32>
    %34 = vector.extract_strided_slice %6 {offsets = [64, 0], sizes = [16, 256], strides = [1, 1]} : vector<96x256xf32> to vector<16x256xf32>
    %35 = vector.extract_strided_slice %6 {offsets = [80, 0], sizes = [16, 256], strides = [1, 1]} : vector<96x256xf32> to vector<16x256xf32>
    %cst_18 = arith.constant dense<0.000000e+00> : vector<256x256xf32>
    %36 = tpu.matmul %33, %34, %cst_18 {dimension_numbers = #tpu.dot_dimension_numbers<[0], [0], [1], [1], [0, 1, 1, 1], [], []>} : vector<16x256xf32>, vector<16x256xf32>, vector<256x256xf32> -> vector<256x256xf32>
    %cst_19 = arith.constant dense<0xFF800000> : vector<256xf32>
    %37 = vector.multi_reduction <maximumf>, %36, %cst_19 [1] : vector<256x256xf32> to vector<256xf32>
    %38 = vector.shape_cast %37 : vector<256xf32> to vector<256x1xf32>
    %39 = vector.broadcast %38 : vector<256x1xf32> to vector<256x256xf32>
    %40 = arith.subf %36, %39 : vector<256x256xf32>
    %41 = math.exp %40 : vector<256x256xf32>
    %cst_20 = arith.constant dense<0.000000e+00> : vector<256xf32>
    %42 = vector.multi_reduction <add>, %41, %cst_20 [1] : vector<256x256xf32> to vector<256xf32>
    %43 = vector.shape_cast %42 : vector<256xf32> to vector<256x1xf32>
    %44 = tpu.reciprocal %43 {approx = true} : vector<256x1xf32> -> vector<256x1xf32>
    %45 = vector.broadcast %44 : vector<256x1xf32> to vector<256x256xf32>
    %46 = arith.mulf %41, %45 : vector<256x256xf32>
    %cst_21 = arith.constant dense<0.000000e+00> : vector<16x256xf32>
    %47 = tpu.matmul %35, %46, %cst_21 {dimension_numbers = #tpu.dot_dimension_numbers<[1], [1], [0], [0], [0, 0, 1, 0], [], []>} : vector<16x256xf32>, vector<256x256xf32>, vector<16x256xf32> -> vector<16x256xf32>
    %c1 = arith.constant 1 : index
    %c0_22 = arith.constant 0 : index
    %c0_23 = arith.constant 0 : index
    %48 = vector.load %arg4[%c1, %c0_22, %c0_23] : memref<2x32x16xf32, #tpu.memory_space<vmem>>, vector<1x32x16xf32>
    %49 = vector.shape_cast %48 : vector<1x32x16xf32> to vector<32x16xf32>
    %cst_24 = arith.constant dense<0.000000e+00> : vector<32x256xf32>
    %50 = tpu.matmul %49, %47, %cst_24 {dimension_numbers = #tpu.dot_dimension_numbers<[1], [0], [0], [1], [0, 0, 1, 1], [], []>} : vector<32x16xf32>, vector<16x256xf32>, vector<32x256xf32> -> vector<32x256xf32>
    %51 = arith.addf %30, %50 : vector<32x256xf32>
    %c0_25 = arith.constant 0 : index
    %c0_26 = arith.constant 0 : index
    %c0_27 = arith.constant 0 : index
    %52 = vector.load %arg6[%c0_25, %c0_26, %c0_27] : memref<1x32x256xf32, #tpu.memory_space<vmem>>, vector<1x32x256xf32>
    %53 = vector.shape_cast %52 : vector<1x32x256xf32> to vector<32x256xf32>
    %54 = vector.shape_cast %51 : vector<32x256xf32> to vector<1x32x256xf32>
    tpu.vector_store %arg6[%c0_25, %c0_26, %c0_27], %54 {strides = array<i32>} : memref<1x32x256xf32, #tpu.memory_space<vmem>>, vector<1x32x256xf32>,
    return
  }
  func.func @transform_0(%arg0: i32) -> (i32, i32, i32) {
    %c0_i32 = arith.constant 0 : i32
    %c0_i32_0 = arith.constant 0 : i32
    %c0_i32_1 = arith.constant 0 : i32
    return %arg0, %c0_i32, %c0_i32_0 : i32, i32, i32
  }
  func.func @transform_1(%arg0: i32) -> (i32, i32) {
    %c0_i32 = arith.constant 0 : i32
    %c0_i32_0 = arith.constant 0 : i32
    %c0_i32_1 = arith.constant 0 : i32
    return %c0_i32, %c0_i32_0 : i32, i32
  }
  func.func @transform_2(%arg0: i32) -> (i32, i32) {
    %c0_i32 = arith.constant 0 : i32
    %c0_i32_0 = arith.constant 0 : i32
    %c0_i32_1 = arith.constant 0 : i32
    return %c0_i32, %c0_i32_0 : i32, i32
  }
  func.func @transform_3(%arg0: i32) -> (i32, i32, i32) {
    %c0_i32 = arith.constant 0 : i32
    %c0_i32_0 = arith.constant 0 : i32
    %c0_i32_1 = arith.constant 0 : i32
    %c0_i32_2 = arith.constant 0 : i32
    return %c0_i32, %c0_i32_0, %c0_i32_1 : i32, i32, i32
  }
  func.func @transform_4(%arg0: i32) -> (i32, i32) {
    %c0_i32 = arith.constant 0 : i32
    %c0_i32_0 = arith.constant 0 : i32
    %c0_i32_1 = arith.constant 0 : i32
    return %c0_i32, %c0_i32_0 : i32, i32
  }
  func.func @transform_5(%arg0: i32) -> (i32, i32, i32) {
    %c0_i32 = arith.constant 0 : i32
    %c0_i32_0 = arith.constant 0 : i32
    %c0_i32_1 = arith.constant 0 : i32
    return %arg0, %c0_i32, %c0_i32_0 : i32, i32, i32
  }
}

</mosaic_0001>

<bundles_post_ra>
// kernel: tpu_custom_call.1
= control target key start
LH: loop header
LB: loop body
LE: loop exit
PB: predicated region body
PF: predicated region fallthrough
CT: control target
= control target key end

     0   :  { %10 = vsyncpa [#allocation3], 0  ;;  %s4943_s0 = inlined_call_operand.vmem [shape: f32[2,32,256], index: 0, kind: input, shape index: {}]   ;;  %s4944_s1 = inlined_call_operand.vmem [shape: f32[96,32], index: 1, kind: input, shape index: {}]   ;;  %s4945_s2 = inlined_call_operand.vmem [shape: f32[96,1], index: 2, kind: input, shape index: {}]   ;;  %s4946_s3 = inlined_call_operand.vmem [shape: f32[2,32,16], index: 3, kind: input, shape index: {}]   ;;  %s4947_s4 = inlined_call_operand.vmem [shape: f32[32,1], index: 4, kind: input, shape index: {}]   ;;  %s4948_s5 = inlined_call_operand.hbm [shape: f32[2,32,256], index: 5, kind: output, shape index: {}]  }
   0x1   :  { %12 = vsyncpa [#allocation3 + $0x1], 0  ;;  %s3433_s18 = smov 0   ;;  %s3435_s19 = smov 0  }
   0x2   :  { %s3437_s20 = smov 0   ;;  %s3439_s21 = smov 0  }
   0x3 LB: > { %s3454_s22 = sadd.s32 4294967295, %s3396_s21   ;;  %s2789_s23 = sadd.s32 4294967294, %s3396_s21   ;;  %s3396_s21 = sphi %s3439_s21, %s5157_s21   ;;  %s3392_s20 = sphi %s3437_s20, %s5156_s20   ;;  %s3388_s19 = sphi %s3435_s19, %s5155_s19   ;;  %s3384_s18 = sphi %s3433_s18, %s5154_s18  }
   0x4   : > { %s3458_s24 = sadd.s32 1, %s3396_s21   ;;  %s135_s25 = sadd.s32 1, %s3392_s20 }
   0x5   : > { %s132_s26 = ssub.s32 %s3396_s21, %s3458_s24  ;;  %p145_p0 = scmp.ne.s32.totalorder %s3392_s20, %s3388_s19 }
   0x6   : > { %p133_p1 = scmp.eq.s32.totalorder %s132_s26, 0  ;;  %p146_p2 = scmp.eq.s32.totalorder %s3454_s22, 1 }
   0x7   : > { %p151_p3 = scmp.ne.s32.totalorder %s3388_s19, %s3384_s18  ;;  %p152_p4 = scmp.eq.s32.totalorder %s2789_s23, 1 }
   0x8   : > { %s3469_s27 = scalar_select %p133_p1, %s3392_s20, %s135_s25  }
   0x9   : > { %p3471_p5 = por %p146_p2, %p145_p0  ;;  %p3475_p6 = por %p152_p4, %p151_p3 }
   0xa   : > { %p2792_p7 = scmp.ge.s32.totalorder %s3396_s21, 1  ;;  %p190_p8 = scmp.lt.s32.totalorder %s3396_s21, 3 }
   0xc   : > { %p191_p9 = pnand %p2792_p7, %p190_p8 }
   0xe   : > { %194 = sbr.rel (%p191_p9) target bundleno = 2401 (0x961), region = 40 }
  0x13   : > { %p218_p10 = scmp.lt.s32.totalorder %s3454_s22, 1  ;;  %v4949_v0 = vmov 0.0   ;;  %v3399_v1 = vmov 0   ;;  %v243_v2 = vld [vmem:[%s4945_s2] sm:$0xff]  ;;  %v246_v3 = vld [vmem:[%s4945_s2 + $0x18] sm:$0xff]  ;;  %v244_v4 = vld [vmem:[%s4945_s2 + $0x8] sm:$0xff] }
  0x14   : > { %416 = vmatprep.mubr.f32.mxu0 %v4949_v0  ;;  %2942 = vset.pattern.permute.xlu0 %v3399_v1  ;;  %v245_v5 = vld [vmem:[%s4945_s2 + $0x10] sm:$0xff]  ;;  %v231_v14 = vld [vmem:[%s4944_s1] sm:$0xff]  ;;  %vm315_vm0 = vcmask 261120   ;;  %v232_v15 = vld [vmem:[%s4944_s1 + $0x8] sm:$0xff]  ;;  %vm589_vm1 = vcmask 130048   ;;  %s215_s6 = sand.u32 1, %s3388_s19  }
  0x15   : > { %s219_s7 = scalar_select %p218_p10, %s3454_s22, 1  ;;  %257 = vperm.xlu0 %2942, %v243_v2   ;;  %2943 = vset.pattern.permute.xlu1 %v3399_v1  ;;  %v233_v16 = vld [vmem:[%s4944_s1 + $0x10] sm:$0xff]  ;;  %v234_v17 = vld [vmem:[%s4944_s1 + $0x18] sm:$0xff]  ;;  %v239_v20 = vld [vmem:[%s4944_s1 + $0x40] sm:$0xff] }
  0x16   : > { %272 = vperm.xlu1 %2943, %v246_v3   ;;  %452 = vmatprep.mubr.f32.mxu1 %v4949_v0  ;;  %v237_v18 = vld [vmem:[%s4944_s1 + $0x30] sm:$0xff]  ;;  %v238_v19 = vld [vmem:[%s4944_s1 + $0x38] sm:$0xff]  ;;  %v240_v21 = vld [vmem:[%s4944_s1 + $0x48] sm:$0xff]  ;;  %s2890_s9 = sshll.u32 %s3454_s22, 10  ;;  %s4903_s22 = scalar_lea.sflag [#allocation3], %s215_s6 }
  0x17   : > { %s2889_s12 = sshll.u32 %s219_s7, 6  ;;  %v241_v22 = vld [vmem:[%s4944_s1 + $0x50] sm:$0xff]  ;;  %v242_v23 = vld [vmem:[%s4944_s1 + $0x58] sm:$0xff]  ;;  %s2793_s7 = sshll.u32 %s215_s6, 6 }
  0x18   : > { %s3500_s17 = scalar_lea.vmem %s4943_s0, %s2889_s12  ;;  %s4873_s8 = scalar_lea.vmem [#allocation2], %s2793_s7 }
  0x19   : > { %v230_v6 = vld [vmem:[%s3500_s17 + $0x38] sm:$0xff]  ;;  %v229_v7 = vld [vmem:[%s3500_s17 + $0x30] sm:$0xff]  ;;  %v228_v8 = vld [vmem:[%s3500_s17 + $0x28] sm:$0xff]  ;;  %262 = vperm.xlu0 %2942, %v244_v4   ;;  %s2727_s10 = sshll.u32 %s4873_s8, 4  ;;  %s4895_s12 = scalar_lea.hbm %s4948_s5, %s2890_s9  ;;  %s4897_s10 = int_to_ptr.vmem [resolvable:$true] %s2727_s10 }
  0x1a   : > { %376 = vmatprep.subr.mxu0 %v230_v6  ;;  %v227_v9 = vld [vmem:[%s3500_s17 + $0x20] sm:$0xff]  ;;  %267 = vperm.xlu1 %2943, %v245_v5   ;;  %v226_v10 = vld [vmem:[%s3500_s17 + $0x18] sm:$0xff]  ;;  %v225_v11 = vld [vmem:[%s3500_s17 + $0x10] sm:$0xff]  ;;  %s3336_s13 = scalar_lea.vmem %s4897_s10, 1024  ;;  %s3400_s14 = smov [#allocation2]  }
  0x1b   : > { %377 = vmatpush1.msra.mxu0 %v229_v7  ;;  %2891 = vmatprep.subr.mxu1 %v230_v6  ;;  %v224_v12 = vld [vmem:[%s3500_s17 + $0x8] sm:$0xff]  ;;  %v223_v13 = vld [vmem:[%s3500_s17] sm:$0xff]  ;;  %p3337_p11 = scmp.ne.s32.totalorder %s4897_s10, %s3336_s13  ;;  %s3340_s15 = sshll.u32 %s3400_s14, 4  ;;  %s3341_s15 = int_to_ptr.vmem [resolvable:$false] %s3340_s15 }
  0x1c   : > { %378 = vmatprep.subr.mxu0 %v228_v8  ;;  %2895 = vmatpush1.msra.mxu1 %v229_v7  ;;  %s3342_s16 = scalar_lea.vmem %s3341_s15, 2048  ;;  %p3343_p0 = scmp.lt.s32.totalorder %s4897_s10, %s3341_s15 }
  0x1d   : > { %379 = vmatpush1.msra.mxu0 %v227_v9  ;;  %2892 = vmatprep.subr.mxu1 %v228_v8  ;;  %p3338_p12 = pnand %p3337_p11, %p3471_p5  ;;  %p3344_p1 = scmp.lt.s32.totalorder %s3342_s16, %s3336_s13 }
  0x1e   : > { %380 = vmatprep.subr.mxu0 %v226_v10  ;;  %2896 = vmatpush1.msra.mxu1 %v227_v9 }
  0x1f   : > { %381 = vmatpush1.msra.mxu0 %v225_v11  ;;  %2893 = vmatprep.subr.mxu1 %v226_v10  ;;  %p3339_p13 = pneg %p3338_p12  ;;  %p3345_p2 = por %p3344_p1, %p3343_p0 }
  0x20   : > { %382 = vmatprep.subr.mxu0 %v224_v12  ;;  %2897 = vmatpush1.msra.mxu1 %v225_v11 }
  0x21   : > { %383 = vmatpush1.msra.mxu0 %v223_v13  ;;  %2894 = vmatprep.subr.mxu1 %v224_v12  ;;  %p3346_p3 = pnand %p3345_p2, %p3339_p13 }
  0x22   : > { %2796 = vmatmul.mubr.msk.f32.vlgmr.msra.gmra.mxu0 %vm315_vm0, %v231_v14  ;;  %2898 = vmatpush1.msra.mxu1 %v223_v13 }
  0x23   : > { %422 = vmatprep.mubr.f32.mxu0 %v4949_v0  ;;  %2802 = vmatmul.mubr.msk.f32.vlgmr.msra.gmra.mxu1 %vm315_vm0, %v237_v18 }
  0x24   : > { %458 = vmatprep.mubr.f32.mxu1 %v4949_v0 }
  0x26   : > { %2797 = vmatmul.mubr.msk.f32.gmra.mxu0 %vm315_vm0, %v232_v15 }
  0x27   : > { %428 = vmatprep.mubr.f32.mxu0 %v4949_v0  ;;  %2803 = vmatmul.mubr.msk.f32.gmra.mxu1 %vm315_vm0, %v238_v19 }
  0x28   : > { %464 = vmatprep.mubr.f32.mxu1 %v4949_v0 }
  0x2a   : > { %2798 = vmatmul.mubr.msk.f32.gmra.mxu0 %vm315_vm0, %v233_v16 }
  0x2b   : > { %434 = vmatprep.mubr.f32.mxu0 %v4949_v0  ;;  %2804 = vmatmul.mubr.msk.f32.gmra.mxu1 %vm315_vm0, %v239_v20 }
  0x2c   : > { %470 = vmatprep.mubr.f32.mxu1 %v4949_v0 }
  0x2e   : > { %2799 = vmatmul.mubr.msk.f32.gmra.mxu0 %vm315_vm0, %v234_v17 }
  0x2f   : > { %440 = vmatprep.mubr.f32.mxu0 %v4949_v0  ;;  %2805 = vmatmul.mubr.msk.f32.gmra.mxu1 %vm315_vm0, %v240_v21 }
  0x30   : > { %476 = vmatprep.mubr.f32.mxu1 %v4949_v0 }
  0x33   : > { %2806 = vmatmul.mubr.msk.f32.gmra.mxu1 %vm315_vm0, %v241_v22 }
  0x34   : > { %482 = vmatprep.mubr.f32.mxu1 %v4949_v0 }
  0x37   : > { %2807 = vmatmul.mubr.msk.f32.gmra.mxu1 %vm315_vm0, %v242_v23 }
  0x38   : > { %750 = vmatprep.mubr.f32.mxu1 %v4949_v0 }
  0x90   : > { %v258_v24 = vpop.permute.xlu0 %257 }
  0x91   : > { %v273_v35 = vpop.permute.xlu1 %272 }
  0x94   : > { %v263_v30 = vpop.permute.xlu0 %262 }
  0x95   : > { %v268_v42 = vpop.permute.xlu1 %267 }
  0xe2   : > { %v418_v25 = vpop.f32.mrf.mxu0 }
  0xe3   : > { %v419_v26 = vadd.f32 %v418_v25, %v258_v24  ;;  %v3623_v17 = vpop.f32.mrf.mxu1 }
  0xe4   : > { %v420_v27 = vpop.f32.mrf.mxu0  ;;  %5007 = vst [vmem:[#allocation5_spill] sm:$0xff] %v3623_v17 }
  0xe5   : > { %v521_v28 = vmul.f32 0.25, %v419_v26  ;;  %v421_v29 = vadd.f32 %v420_v27, %v258_v24  ;;  %v3625_v18 = vpop.f32.mrf.mxu1 }
  0xe6   : > { %v424_v31 = vpop.f32.mrf.mxu0  ;;  %5008 = vst [vmem:[#allocation6_spill] sm:$0xff] %v3625_v18 }
  0xe7   : > { %v522_v32 = vmul.f32 0.25, %v421_v29  ;;  %v425_v33 = vadd.f32 %v424_v31, %v263_v30  ;;  %525 = vxpose.xlu0.b32.start [1/2] (short) %v521_v28, 128  ;;  %v3627_v19 = vpop.f32.mrf.mxu1 }
  0xe8   : > { %v426_v34 = vpop.f32.mrf.mxu0  ;;  %5009 = vst [vmem:[#allocation7_spill] sm:$0xff] %v3627_v19 }
  0xe9   : > { %v523_v36 = vmul.f32 0.25, %v425_v33  ;;  %v427_v37 = vadd.f32 %v426_v34, %v263_v30  ;;  %557 = vxpose.xlu1.b32.start [1/2] (short) %v522_v32, 128  ;;  %v3629_v20 = vpop.f32.mrf.mxu1 }
  0xea   : > { %v430_v38 = vpop.f32.mrf.mxu0  ;;  %5010 = vst [vmem:[#allocation8_spill] sm:$0xff] %v3629_v20 }
  0xeb   : > { %v524_v39 = vmul.f32 0.25, %v427_v37  ;;  %526 = vxpose.xlu0.b32.end [2/2] (short) %v523_v36, 128  ;;  %v431_v47 = vadd.f32 %v430_v38, %v268_v42  ;;  %v3631_v21 = vpop.f32.mrf.mxu1 }
  0xec   : > { %v432_v40 = vpop.f32.mrf.mxu0  ;;  %5011 = vst [vmem:[#allocation9_spill] sm:$0xff] %v3631_v21 }
  0xed   : > { %558 = vxpose.xlu1.b32.end [2/2] (short) %v524_v39, 128  ;;  %v433_v46 = vadd.f32 %v432_v40, %v268_v42  ;;  %v3633_v22 = vpop.f32.mrf.mxu1 }
  0xee   : > { %v436_v41 = vpop.f32.mrf.mxu0  ;;  %5012 = vst [vmem:[#allocation10_spill] sm:$0xff] %v3633_v22 }
  0xef   : > { %v437_v43 = vadd.f32 %v436_v41, %v273_v35  ;;  %v3635_v23 = vpop.f32.mrf.mxu1 }
  0xf0   : > { %v438_v44 = vpop.f32.mrf.mxu0  ;;  %5013 = vst [vmem:[#allocation11_spill] sm:$0xff] %v3635_v23 }
  0xf1   : > { %v439_v45 = vadd.f32 %v438_v44, %v273_v35  ;;  %v3637_v24 = vpop.f32.mrf.mxu1 }
  0xf2   : > { %5014 = vst [vmem:[#allocation12_spill] sm:$0xff] %v3637_v24 }
  0xf3   : > { %714 = vmatprep.subr.mxu1 %v439_v45  ;;  %v3639_v25 = vpop.f32.mrf.mxu1 }
  0xf4   : > { %715 = vmatpush1.msra.mxu1 %v437_v43  ;;  %5015 = vst [vmem:[#allocation13_spill] sm:$0xff] %v3639_v25 }
  0xf5   : > { %716 = vmatprep.subr.mxu1 %v433_v46  ;;  %v3641_v26 = vpop.f32.mrf.mxu1 }
  0xf6   : > { %717 = vmatpush1.msra.mxu1 %v431_v47  ;;  %5016 = vst [vmem:[#allocation14_spill] sm:$0xff] %v3641_v26 }
  0xf7   : > { %v3643_v27 = vpop.f32.mrf.mxu1 }
  0xf8   : > { %5017 = vst [vmem:[#allocation15_spill] sm:$0xff] %v3643_v27 }
  0xf9   : > { %v3645_v28 = vpop.f32.mrf.mxu1 }
  0xfa   : > { %5018 = vst [vmem:[#allocation16_spill] sm:$0xff] %v3645_v28 }
 0x163   : > { %v541_v48 = vpop.trf.xlu0 }
 0x164   : > { %2808 = vmatmul.mubr.msk.f32.vlgmr.msra.gmra.mxu1 %vm589_vm1, %v541_v48 }
 0x165   : > { %756 = vmatprep.mubr.f32.mxu1 %v4949_v0  ;;  %v573_v57 = vpop.trf.xlu1 }
 0x167   : > { %v542_v49 = vpop.trf.xlu0 }
 0x168   : > { %2809 = vmatmul.mubr.msk.f32.gmra.mxu1 %vm589_vm1, %v542_v49 }
 0x169   : > { %762 = vmatprep.mubr.f32.mxu1 %v4949_v0  ;;  %v574_v59 = vpop.trf.xlu1 }
 0x16b   : > { %v543_v50 = vpop.trf.xlu0 }
 0x16c   : > { %2810 = vmatmul.mubr.msk.f32.gmra.mxu1 %vm589_vm1, %v543_v50 }
 0x16d   : > { %768 = vmatprep.mubr.f32.mxu1 %v4949_v0  ;;  %v575_v62 = vpop.trf.xlu1 }
 0x16f   : > { %v544_v51 = vpop.trf.xlu0 }
 0x170   : > { %2811 = vmatmul.mubr.msk.f32.gmra.mxu1 %vm589_vm1, %v544_v51 }
 0x171   : > { %774 = vmatprep.mubr.f32.mxu1 %v4949_v0  ;;  %v576_v1 = vpop.trf.xlu1 }
 0x173   : > { %v545_v52 = vpop.trf.xlu0 }
 0x174   : > { %2812 = vmatmul.mubr.msk.f32.gmra.mxu1 %vm589_vm1, %v545_v52 }
 0x175   : > { %780 = vmatprep.mubr.f32.mxu1 %v4949_v0  ;;  %v577_v4 = vpop.trf.xlu1 }
 0x177   : > { %v546_v53 = vpop.trf.xlu0 }
 0x178   : > { %2813 = vmatmul.mubr.msk.f32.gmra.mxu1 %vm589_vm1, %v546_v53 }
 0x179   : > { %786 = vmatprep.mubr.f32.mxu1 %v4949_v0  ;;  %v578_v6 = vpop.trf.xlu1 }
 0x17b   : > { %v547_v54 = vpop.trf.xlu0 }
 0x17c   : > { %2814 = vmatmul.mubr.msk.f32.gmra.mxu1 %vm589_vm1, %v547_v54 }
 0x17d   : > { %792 = vmatprep.mubr.f32.mxu1 %v4949_v0  ;;  %v579_v7 = vpop.trf.xlu1 }
 0x17f   : > { %v548_v55 = vpop.trf.xlu0 }
 0x180   : > { %2815 = vmatmul.mubr.msk.f32.gmra.mxu1 %vm589_vm1, %v548_v55 }
 0x181   : > { %798 = vmatprep.mubr.f32.mxu1 %v4949_v0  ;;  %v580_v8 = vpop.trf.xlu1 }
 0x183   : > { %v549_v56 = vpop.trf.xlu0 }
 0x184   : > { %2816 = vmatmul.mubr.msk.f32.gmra.mxu1 %vm589_vm1, %v549_v56 }
 0x185   : > { %804 = vmatprep.mubr.f32.mxu1 %v4949_v0  ;;  %v581_v9 = vpop.trf.xlu1 }
 0x187   : > { %v550_v58 = vpop.trf.xlu0 }
 0x188   : > { %2817 = vmatmul.mubr.msk.f32.gmra.mxu1 %vm589_vm1, %v550_v58 }
 0x189   : > { %810 = vmatprep.mubr.f32.mxu1 %v4949_v0  ;;  %v582_v10 = vpop.trf.xlu1 }
 0x18b   : > { %v551_v60 = vpop.trf.xlu0 }
 0x18c   : > { %2818 = vmatmul.mubr.msk.f32.gmra.mxu1 %vm589_vm1, %v551_v60 }
 0x18d   : > { %816 = vmatprep.mubr.f32.mxu1 %v4949_v0  ;;  %v583_v11 = vpop.trf.xlu1 }
 0x18f   : > { %v552_v61 = vpop.trf.xlu0 }
 0x190   : > { %2819 = vmatmul.mubr.msk.f32.gmra.mxu1 %vm589_vm1, %v552_v61 }
 0x191   : > { %822 = vmatprep.mubr.f32.mxu1 %v4949_v0  ;;  %v584_v12 = vpop.trf.xlu1 }
 0x193   : > { %v553_v63 = vpop.trf.xlu0 }
 0x194   : > { %2820 = vmatmul.mubr.msk.f32.gmra.mxu1 %vm589_vm1, %v553_v63 }
 0x195   : > { %828 = vmatprep.mubr.f32.mxu1 %v4949_v0  ;;  %v585_v13 = vpop.trf.xlu1 }
 0x197   : > { %v554_v2 = vpop.trf.xlu0 }
 0x198   : > { %2821 = vmatmul.mubr.msk.f32.gmra.mxu1 %vm589_vm1, %v554_v2 }
 0x199   : > { %834 = vmatprep.mubr.f32.mxu1 %v4949_v0  ;;  %v586_v14 = vpop.trf.xlu1 }
 0x19b   : > { %v555_v3 = vpop.trf.xlu0 }
 0x19c   : > { %2822 = vmatmul.mubr.msk.f32.gmra.mxu1 %vm589_vm1, %v555_v3 }
 0x19d   : > { %840 = vmatprep.mubr.f32.mxu1 %v4949_v0  ;;  %v587_v15 = vpop.trf.xlu1 }
 0x19f   : > { %v556_v5 = vpop.trf.xlu0 }
 0x1a0   : > { %2823 = vmatmul.mubr.msk.f32.gmra.mxu1 %vm589_vm1, %v556_v5 }
 0x1a1   : > { %846 = vmatprep.mubr.f32.mxu1 %v4949_v0  ;;  %v588_v16 = vpop.trf.xlu1 }
 0x1a4   : > { %2824 = vmatmul.mubr.msk.f32.gmra.mxu1 %vm589_vm1, %v573_v57 }
 0x1a5   : > { %852 = vmatprep.mubr.f32.mxu1 %v4949_v0 }
 0x1a8   : > { %2825 = vmatmul.mubr.msk.f32.gmra.mxu1 %vm589_vm1, %v574_v59 }
 0x1a9   : > { %858 = vmatprep.mubr.f32.mxu1 %v4949_v0 }
 0x1ac   : > { %2826 = vmatmul.mubr.msk.f32.gmra.mxu1 %vm589_vm1, %v575_v62 }
 0x1ad   : > { %864 = vmatprep.mubr.f32.mxu1 %v4949_v0 }
 0x1b0   : > { %2827 = vmatmul.mubr.msk.f32.gmra.mxu1 %vm589_vm1, %v576_v1 }
 0x1b1   : > { %870 = vmatprep.mubr.f32.mxu1 %v4949_v0 }
 0x1b4   : > { %2828 = vmatmul.mubr.msk.f32.gmra.mxu1 %vm589_vm1, %v577_v4 }
 0x1b5   : > { %876 = vmatprep.mubr.f32.mxu1 %v4949_v0 }
 0x1b8   : > { %2829 = vmatmul.mubr.msk.f32.gmra.mxu1 %vm589_vm1, %v578_v6 }
 0x1b9   : > { %882 = vmatprep.mubr.f32.mxu1 %v4949_v0 }
 0x1bc   : > { %2830 = vmatmul.mubr.msk.f32.gmra.mxu1 %vm589_vm1, %v579_v7 }
 0x1bd   : > { %888 = vmatprep.mubr.f32.mxu1 %v4949_v0 }
 0x1c0   : > { %2831 = vmatmul.mubr.msk.f32.gmra.mxu1 %vm589_vm1, %v580_v8 }
 0x1c1   : > { %894 = vmatprep.mubr.f32.mxu1 %v4949_v0 }
 0x1c4   : > { %2832 = vmatmul.mubr.msk.f32.gmra.mxu1 %vm589_vm1, %v581_v9 }
 0x1c5   : > { %900 = vmatprep.mubr.f32.mxu1 %v4949_v0 }
 0x1c8   : > { %2833 = vmatmul.mubr.msk.f32.gmra.mxu1 %vm589_vm1, %v582_v10 }
 0x1c9   : > { %906 = vmatprep.mubr.f32.mxu1 %v4949_v0 }
 0x1cc   : > { %2834 = vmatmul.mubr.msk.f32.gmra.mxu1 %vm589_vm1, %v583_v11 }
 0x1cd   : > { %912 = vmatprep.mubr.f32.mxu1 %v4949_v0 }
 0x1d0   : > { %2835 = vmatmul.mubr.msk.f32.gmra.mxu1 %vm589_vm1, %v584_v12 }
 0x1d1   : > { %918 = vmatprep.mubr.f32.mxu1 %v4949_v0 }
 0x1d4   : > { %2836 = vmatmul.mubr.msk.f32.gmra.mxu1 %vm589_vm1, %v585_v13 }
 0x1d5   : > { %924 = vmatprep.mubr.f32.mxu1 %v4949_v0 }
 0x1d8   : > { %2837 = vmatmul.mubr.msk.f32.gmra.mxu1 %vm589_vm1, %v586_v14 }
 0x1d9   : > { %930 = vmatprep.mubr.f32.mxu1 %v4949_v0 }
 0x1dc   : > { %2838 = vmatmul.mubr.msk.f32.gmra.mxu1 %vm589_vm1, %v587_v15 }
 0x1dd   : > { %936 = vmatprep.mubr.f32.mxu1 %v4949_v0 }
 0x1e0   : > { %2839 = vmatmul.mubr.msk.f32.gmra.mxu1 %vm589_vm1, %v588_v16 }
 0x224   : > { %v3647_v29 = vpop.f32.mrf.mxu1 }
 0x225   : > { %5019 = vst [vmem:[#allocation17_spill] sm:$0xff] %v3647_v29 }
 0x226   : > { %v3649_v30 = vpop.f32.mrf.mxu1 }
 0x227   : > { %5020 = vst [vmem:[#allocation18_spill] sm:$0xff] %v3649_v30 }
 0x228   : > { %v3651_v31 = vpop.f32.mrf.mxu1 }
 0x22a   : > { %v3653_v32 = vpop.f32.mrf.mxu1 }
 0x22c   : > { %v3655_v33 = vpop.f32.mrf.mxu1 }
 0x22d   : > { %5021 = vst [vmem:[#allocation19_spill] sm:$0xff] %v3655_v33 }
 0x22e   : > { %v3657_v34 = vpop.f32.mrf.mxu1 }
 0x22f   : > { %5022 = vst [vmem:[#allocation20_spill] sm:$0xff] %v3657_v34 }
 0x230   : > { %v3659_v35 = vpop.f32.mrf.mxu1 }
 0x232   : > { %v3661_v36 = vpop.f32.mrf.mxu1 }
 0x233   : > { %v952_v15 = vmax.f32 %v3659_v35, %v3661_v36 }
 0x234   : > { %v3663_v37 = vpop.f32.mrf.mxu1 }
 0x236   : > { %v3665_v38 = vpop.f32.mrf.mxu1 }
 0x237   : > { %5023 = vst [vmem:[#allocation21_spill] sm:$0xff] %v3665_v38 }
 0x238   : > { %v3667_v39 = vpop.f32.mrf.mxu1 }
 0x23a   : > { %v3669_v40 = vpop.f32.mrf.mxu1 }
 0x23b   : > { %v958_v11 = vmax.f32 %v3667_v39, %v3669_v40 }
 0x23c   : > { %v3671_v41 = vpop.f32.mrf.mxu1 }
 0x23e   : > { %v3673_v42 = vpop.f32.mrf.mxu1 }
 0x240   : > { %v3675_v43 = vpop.f32.mrf.mxu1 }
 0x242   : > { %v3677_v44 = vpop.f32.mrf.mxu1 }
 0x243   : > { %v964_v7 = vmax.f32 %v3675_v43, %v3677_v44 }
 0x244   : > { %v3679_v45 = vpop.f32.mrf.mxu1 }
 0x246   : > { %v3681_v46 = vpop.f32.mrf.mxu1 }
 0x247   : > { %v967_v16 = vmax.f32 %v3679_v45, %v3681_v46 }
 0x248   : > { %v3683_v47 = vpop.f32.mrf.mxu1 }
 0x24a   : > { %v3685_v48 = vpop.f32.mrf.mxu1 }
 0x24b   : > { %v970_v3 = vmax.f32 %v3683_v47, %v3685_v48 }
 0x24c   : > { %v3687_v49 = vpop.f32.mrf.mxu1 }
 0x24e   : > { %v3689_v50 = vpop.f32.mrf.mxu1 }
 0x24f   : > { %v973_v12 = vmax.f32 %v3687_v49, %v3689_v50 }
 0x250   : > { %v3691_v51 = vpop.f32.mrf.mxu1 }
 0x252   : > { %v3693_v52 = vpop.f32.mrf.mxu1 }
 0x253   : > { %v976_v62 = vmax.f32 %v3691_v51, %v3693_v52 }
 0x254   : > { %v3695_v53 = vpop.f32.mrf.mxu1 }
 0x256   : > { %v3697_v54 = vpop.f32.mrf.mxu1 }
 0x257   : > { %v979_v8 = vmax.f32 %v3695_v53, %v3697_v54 }
 0x258   : > { %v3699_v55 = vpop.f32.mrf.mxu1 }
 0x25a   : > { %v3701_v56 = vpop.f32.mrf.mxu1 }
 0x25b   : > { %v982_v4 = vmax.f32 %v3699_v55, %v3701_v56 }
 0x25c   : > { %v3703_v57 = vpop.f32.mrf.mxu1 }
 0x25e   : > { %v3705_v58 = vpop.f32.mrf.mxu1 }
 0x25f   : > { %v985_v59 = vmax.f32 %v3703_v57, %v3705_v58 }
 0x260   : > { %v3709_v60 = vpop.f32.mrf.mxu1 }
 0x261   : > { %986 = vmax.xlane.f32.xlu1 %v985_v59 }
 0x262   : > { %v3711_v61 = vpop.f32.mrf.mxu1 }
 0x263   : > { %v988_v63 = vmax.f32 %v3709_v60, %v3711_v61 }
 0x264   : > { %v3717_v1 = vpop.f32.mrf.mxu1 }
 0x265   : > { %5024 = vst [vmem:[#allocation22_spill] sm:$0xff] %v3717_v1  ;;  %977 = vmax.xlane.f32.xlu1 %v976_v62  ;;  %989 = vmax.xlane.f32.xlu0 %v988_v63  ;;  %v946_v63 = vmax.f32 %v3651_v31, %v3653_v32 }
 0x266   : > { %v3719_v2 = vpop.f32.mrf.mxu1 }
 0x267   : > { %5025 = vst [vmem:[#allocation23_spill] sm:$0xff] %v3719_v2 }
 0x268   : > { %v3725_v5 = vpop.f32.mrf.mxu1 }
 0x269   : > { %971 = vmax.xlane.f32.xlu1 %v970_v3  ;;  %983 = vmax.xlane.f32.xlu0 %v982_v4  ;;  %v961_v3 = vmax.f32 %v3671_v41, %v3673_v42 }
 0x26a   : > { %v3727_v6 = vpop.f32.mrf.mxu1 }
 0x26b   : > { %5026 = vst [vmem:[#allocation24_spill] sm:$0xff] %v3727_v6 }
 0x26c   : > { %v3733_v9 = vpop.f32.mrf.mxu1 }
 0x26d   : > { %5027 = vst [vmem:[#allocation25_spill] sm:$0xff] %v3733_v9  ;;  %965 = vmax.xlane.f32.xlu1 %v964_v7  ;;  %980 = vmax.xlane.f32.xlu0 %v979_v8  ;;  %v955_v8 = vmax.f32 %v3663_v37, %v3665_v38 }
 0x26e   : > { %v3735_v10 = vpop.f32.mrf.mxu1 }
 0x26f   : > { %5028 = vst [vmem:[#allocation26_spill] sm:$0xff] %v3735_v10 }
 0x270   : > { %v3741_v13 = vpop.f32.mrf.mxu1 }
 0x271   : > { %5029 = vst [vmem:[#allocation27_spill] sm:$0xff] %v3741_v13  ;;  %959 = vmax.xlane.f32.xlu1 %v958_v11  ;;  %974 = vmax.xlane.f32.xlu0 %v973_v12 }
 0x272   : > { %v3743_v14 = vpop.f32.mrf.mxu1 }
 0x273   : > { %5030 = vst [vmem:[#allocation28_spill] sm:$0xff] %v3743_v14 }
 0x274   : > { %v3749_v59 = vpop.f32.mrf.mxu1 }
 0x275   : > { %5031 = vst [vmem:[#allocation29_spill] sm:$0xff] %v3749_v59  ;;  %953 = vmax.xlane.f32.xlu1 %v952_v15  ;;  %968 = vmax.xlane.f32.xlu0 %v967_v16  ;;  %v949_v15 = vmax.f32 %v3655_v33, %v3657_v34 }
 0x276   : > { %v3751_v62 = vpop.f32.mrf.mxu1 }
 0x277   : > { %5032 = vst [vmem:[#allocation30_spill] sm:$0xff] %v3751_v62 }
 0x278   : > { %v3757_v4 = vpop.f32.mrf.mxu1 }
 0x279   : > { %947 = vmax.xlane.f32.xlu1 %v946_v63  ;;  %962 = vmax.xlane.f32.xlu0 %v961_v3  ;;  %v943_v63 = vmax.f32 %v3647_v29, %v3649_v30 }
 0x27a   : > { %v3759_v7 = vpop.f32.mrf.mxu1 }
 0x27c   : > { %v3763_v11 = vpop.f32.mrf.mxu1 }
 0x27d   : > { %956 = vmax.xlane.f32.xlu0 %v955_v8 }
 0x27e   : > { %v3765_v12 = vpop.f32.mrf.mxu1 }
 0x280   : > { %v3769_v16 = vpop.f32.mrf.mxu1 }
 0x281   : > { %950 = vmax.xlane.f32.xlu0 %v949_v15 }
 0x282   : > { %v3771_v0 = vpop.f32.mrf.mxu1 }
 0x284   : > { %v3775_v3 = vpop.f32.mrf.mxu1 }
 0x285   : > { %944 = vmax.xlane.f32.xlu0 %v943_v63 }
 0x286   : > { %v3777_v27 = vpop.f32.mrf.mxu1 }
 0x288   : > { %v3779_v28 = vpop.f32.mrf.mxu1 }
 0x28a   : > { %v3781_v8 = vpop.f32.mrf.mxu1 }
 0x28c   : > { %v3783_v25 = vpop.f32.mrf.mxu1 }
 0x28e   : > { %v3785_v26 = vpop.f32.mrf.mxu1 }
 0x28f   : > { %v1021_v33 = vmax.f32 %v3783_v25, %v3785_v26 }
 0x290   : > { %v3787_v21 = vpop.f32.mrf.mxu1 }
 0x292   : > { %v3789_v15 = vpop.f32.mrf.mxu1 }
 0x294   : > { %v3791_v22 = vpop.f32.mrf.mxu1 }
 0x296   : > { %v3793_v23 = vpop.f32.mrf.mxu1 }
 0x297   : > { %5033 = vst [vmem:[#allocation31_spill] sm:$0xff] %v3793_v23  ;;  %v1027_v29 = vmax.f32 %v3791_v22, %v3793_v23  ;;  %v1018_v23 = vmax.f32 %v3779_v28, %v3781_v8 }
 0x298   : > { %v3795_v24 = vpop.f32.mrf.mxu1 }
 0x29a   : > { %v3797_v63 = vpop.f32.mrf.mxu1 }
 0x29b   : > { %v1030_v38 = vmax.f32 %v3795_v24, %v3797_v63 }
 0x29c   : > { %v3799_v20 = vpop.f32.mrf.mxu1 }
 0x29e   : > { %v3801_v19 = vpop.f32.mrf.mxu1 }
 0x29f   : > { %v1033_v18 = vmax.f32 %v3799_v20, %v3801_v19 }
 0x2a0   : > { %v3805_v17 = vpop.f32.mrf.mxu1 }
 0x2a1   : > { %1034 = vmax.xlane.f32.xlu0 %v1033_v18  ;;  %v1024_v18 = vmax.f32 %v3787_v21, %v3789_v15 }
 0x2a2   : > { %v3807_v30 = vpop.f32.mrf.mxu1 }
 0x2a3   : > { %v1036_v34 = vmax.f32 %v3805_v17, %v3807_v30 }
 0x2a5   : > { %1028 = vmax.xlane.f32.xlu0 %v1027_v29  ;;  %1037 = vmax.xlane.f32.xlu1 %v1036_v34  ;;  %v1015_v29 = vmax.f32 %v3775_v3, %v3777_v27  ;;  %v1012_v34 = vmax.f32 %v3769_v16, %v3771_v0 }
 0x2a9   : > { %1022 = vmax.xlane.f32.xlu0 %v1021_v33  ;;  %1031 = vmax.xlane.f32.xlu1 %v1030_v38  ;;  %v1009_v33 = vmax.f32 %v3763_v11, %v3765_v12  ;;  %v235_v38 = vld [vmem:[%s4944_s1 + $0x20] sm:$0xff] }
 0x2aa   : > { %2800 = vmatmul.mubr.msk.f32.gmra.mxu0 %vm315_vm0, %v235_v38  ;;  %v997_v38 = vmax.f32 %v3733_v9, %v3735_v10 }
 0x2ad   : > { %1025 = vmax.xlane.f32.xlu1 %v1024_v18  ;;  %v5034_v18 = vmov 0.0  }
 0x2ae   : > { %446 = vmatprep.mubr.f32.mxu0 %v5034_v18 }
 0x2b1   : > { %1019 = vmax.xlane.f32.xlu1 %v1018_v23  ;;  %v1006_v23 = vmax.f32 %v3757_v4, %v3759_v7 }
 0x2b5   : > { %1016 = vmax.xlane.f32.xlu1 %v1015_v29  ;;  %v1003_v29 = vmax.f32 %v3749_v59, %v3751_v62  ;;  %v991_v62 = vmax.f32 %v3717_v1, %v3719_v2 }
 0x2b9   : > { %1013 = vmax.xlane.f32.xlu1 %v1012_v34  ;;  %v236_v34 = vld [vmem:[%s4944_s1 + $0x28] sm:$0xff] }
 0x2ba   : > { %2801 = vmatmul.mubr.msk.f32.gmra.mxu0 %vm315_vm0, %v236_v34 }
 0x2bb   : > { %1580 = vmatprep.mubr.f32.mxu0 %v5034_v18 }
 0x2bd   : > { %1010 = vmax.xlane.f32.xlu1 %v1009_v33  ;;  %v1000_v33 = vmax.f32 %v3741_v13, %v3743_v14 }
 0x2c1   : > { %1007 = vmax.xlane.f32.xlu1 %v1006_v23  ;;  %v994_v23 = vmax.f32 %v3725_v5, %v3727_v6 }
 0x2c5   : > { %1004 = vmax.xlane.f32.xlu1 %v1003_v29 }
 0x2c9   : > { %1001 = vmax.xlane.f32.xlu1 %v1000_v33 }
 0x2cd   : > { %998 = vmax.xlane.f32.xlu1 %v997_v38 }
 0x2d1   : > { %995 = vmax.xlane.f32.xlu1 %v994_v23 }
 0x2d5   : > { %992 = vmax.xlane.f32.xlu1 %v991_v62 }
 0x2ea   : > { %v987_v29 = vpop.xlane.xlu1 %986 }
 0x2eb   : > { %v1067_v18 = vsub.f32 %v3703_v57, %v987_v29  ;;  %v1068_v33 = vsub.f32 %v3705_v58, %v987_v29 }
 0x2ed   : > { %v1159_v6 = vmul.f32 1.442695, %v1067_v18  ;;  %v1161_v62 = vmul.f32 1.442695, %v1068_v33 }
 0x2ee   : > { %v978_v34 = vpop.xlane.xlu1 %977  ;;  %v990_v59 = vpop.xlane.xlu0 %989 }
 0x2ef   : > { %v1069_v14 = vsub.f32 %v3709_v60, %v990_v59  ;;  %v1070_v10 = vsub.f32 %v3711_v61, %v990_v59 }
 0x2f1   : > { %v1163_v38 = vmul.f32 1.442695, %v1069_v14  ;;  %v1165_v9 = vmul.f32 1.442695, %v1070_v10  ;;  %v1061_v10 = vsub.f32 %v3691_v51, %v978_v34 }
 0x2f2   : > { %v3853_v13 = vpop.xlane.xlu1 %971  ;;  %v984_v23 = vpop.xlane.xlu0 %983 }
 0x2f3   : > { %v1065_v2 = vsub.f32 %v3699_v55, %v984_v23  ;;  %v1066_v1 = vsub.f32 %v3701_v56, %v984_v23  ;;  %2944 = vpow2.f32 %v1163_v38  ;;  %v1062_v55 = vsub.f32 %v3693_v52, %v978_v34 }
 0x2f4   : > { %2946 = vpow2.f32 %v1165_v9 }
 0x2f5   : > { %2948 = vpow2.f32 %v1159_v6  ;;  %v1155_v58 = vmul.f32 1.442695, %v1065_v2  ;;  %v1157_v14 = vmul.f32 1.442695, %v1066_v1  ;;  %v1147_v2 = vmul.f32 1.442695, %v1061_v10 }
 0x2f6   : > { %v3857_v57 = vpop.xlane.xlu1 %965  ;;  %v981_v60 = vpop.xlane.xlu0 %980  ;;  %2950 = vpow2.f32 %v1161_v62  ;;  %v1149_v1 = vmul.f32 1.442695, %v1062_v55 }
 0x2f7   : > { %v1063_v61 = vsub.f32 %v3695_v53, %v981_v60  ;;  %v1064_v59 = vsub.f32 %v3697_v54, %v981_v60  ;;  %2952 = vpow2.f32 %v1155_v58 }
 0x2f8   : > { %2954 = vpow2.f32 %v1157_v14 }
 0x2f9   : > { %v1151_v18 = vmul.f32 1.442695, %v1063_v61  ;;  %v1153_v29 = vmul.f32 1.442695, %v1064_v59  ;;  %v1058_v59 = vsub.f32 %v3685_v48, %v3853_v13 }
 0x2fa   : > { %v960_v56 = vpop.xlane.xlu1 %959  ;;  %v975_v33 = vpop.xlane.xlu0 %974 }
 0x2fb   : > { %v1049_v9 = vsub.f32 %v3667_v39, %v960_v56  ;;  %v1050_v6 = vsub.f32 %v3669_v40, %v960_v56  ;;  %2956 = vpow2.f32 %v1151_v18  ;;  %v1059_v51 = vsub.f32 %v3687_v49, %v975_v33 }
 0x2fc   : > { %2958 = vpow2.f32 %v1153_v29  ;;  %v1060_v54 = vsub.f32 %v3689_v50, %v975_v33  ;;  %v1057_v50 = vsub.f32 %v3683_v47, %v3853_v13 }
 0x2fd   : > { %v1123_v53 = vmul.f32 1.442695, %v1049_v9  ;;  %v1125_v38 = vmul.f32 1.442695, %v1050_v6  ;;  %v1143_v40 = vmul.f32 1.442695, %v1059_v51 }
 0x2fe   : > { %v954_v52 = vpop.xlane.xlu1 %953  ;;  %v969_v39 = vpop.xlane.xlu0 %968  ;;  %v1145_v49 = vmul.f32 1.442695, %v1060_v54  ;;  %v1141_v9 = vmul.f32 1.442695, %v1058_v59 }
 0x2ff   : > { %2960 = vpow2.f32 %v1123_v53  ;;  %v1045_v34 = vsub.f32 %v3659_v35, %v954_v52  ;;  %v1046_v23 = vsub.f32 %v3661_v36, %v954_v52  ;;  %v1056_v48 = vsub.f32 %v3681_v46, %v969_v39 }
 0x300   : > { %2962 = vpow2.f32 %v1125_v38  ;;  %v3869_v58 = vpop.eup %2944  ;;  %v1054_v46 = vsub.f32 %v3677_v44, %v3857_v57 }
 0x301   : > { %2964 = vpow2.f32 %v1147_v2  ;;  %v1115_v62 = vmul.f32 1.442695, %v1045_v34  ;;  %v1117_v60 = vmul.f32 1.442695, %v1046_v23  ;;  %v3871_v10 = vpop.eup %2946 }
 0x302   : > { %2966 = vpow2.f32 %v1149_v1  ;;  %v948_v61 = vpop.xlane.xlu1 %947  ;;  %v3877_v14 = vpop.eup %2948  ;;  %v1276_v18 = vadd.f32 %v3871_v10, %v3869_v58  ;;  %v1137_v1 = vmul.f32 1.442695, %v1056_v48 }
 0x303   : > { %2968 = vpow2.f32 %v1115_v62  ;;  %v1041_v35 = vsub.f32 %v3651_v31, %v948_v61  ;;  %v1042_v36 = vsub.f32 %v3653_v32, %v948_v61  ;;  %v3883_v55 = vpop.eup %2950  ;;  %v963_v47 = vpop.xlane.xlu0 %962  ;;  %v1139_v31 = vmul.f32 1.442695, %v1057_v50 }
 0x304   : > { %2970 = vpow2.f32 %v1117_v60  ;;  %1277 = vadd.xlane.f32.xlu0 %v1276_v18  ;;  %v1055_v32 = vsub.f32 %v3679_v45, %v969_v39  ;;  %v3886_v33 = vpop.eup %2952  ;;  %v1273_v13 = vadd.f32 %v3883_v55, %v3877_v14  ;;  %v1053_v45 = vsub.f32 %v3675_v43, %v3857_v57 }
 0x305   : > { %2972 = vpow2.f32 %v1143_v40  ;;  %v1107_v29 = vmul.f32 1.442695, %v1041_v35  ;;  %v1109_v56 = vmul.f32 1.442695, %v1042_v36  ;;  %v3891_v6 = vpop.eup %2954  ;;  %v1051_v62 = vsub.f32 %v3671_v41, %v963_v47 }
 0x306   : > { %2974 = vpow2.f32 %v1145_v49  ;;  %v1135_v38 = vmul.f32 1.442695, %v1055_v32  ;;  %v1270_v52 = vadd.f32 %v3891_v6, %v3886_v33  ;;  %v1131_v40 = vmul.f32 1.442695, %v1053_v45 }
 0x307   : > { %2976 = vpow2.f32 %v1107_v29  ;;  %v957_v54 = vpop.xlane.xlu0 %956  ;;  %v1133_v57 = vmul.f32 1.442695, %v1054_v46  ;;  %v1052_v60 = vsub.f32 %v3673_v42, %v963_v47  ;;  %v1127_v59 = vmul.f32 1.442695, %v1051_v62  ;;  %v5039_v46 = vld [vmem:[#allocation20_spill] sm:$0xff]  ;;  %v5040_v62 = vld [vmem:[#allocation17_spill] sm:$0xff] }
 0x308   : > { %2978 = vpow2.f32 %v1109_v56  ;;  %v3893_v2 = vpop.eup %2956  ;;  %1274 = vadd.xlane.f32.xlu0 %v1273_v13  ;;  %v1047_v18 = vsub.f32 %v3663_v37, %v957_v54  ;;  %v5036_v56 = vld [vmem:[#allocation21_spill] sm:$0xff]  ;;  %v5038_v13 = vld [vmem:[#allocation19_spill] sm:$0xff] }
 0x309   : > { %v3895_v53 = vpop.eup %2958  ;;  %2980 = vpow2.f32 %v1139_v31  ;;  %v1129_v29 = vmul.f32 1.442695, %v1052_v60  ;;  %v1048_v47 = vsub.f32 %v5036_v56, %v957_v54 }
 0x30a   : > { %2982 = vpow2.f32 %v1141_v9  ;;  %v1267_v49 = vadd.f32 %v3895_v53, %v3893_v2  ;;  %v1119_v48 = vmul.f32 1.442695, %v1047_v18 }
 0x30b   : > { %2984 = vpow2.f32 %v1135_v38  ;;  %v951_v35 = vpop.xlane.xlu0 %950  ;;  %v1121_v38 = vmul.f32 1.442695, %v1048_v47 }
 0x30c   : > { %v3899_v51 = vpop.eup %2960  ;;  %1271 = vadd.xlane.f32.xlu0 %v1270_v52  ;;  %2986 = vpow2.f32 %v1137_v1  ;;  %v1043_v37 = vsub.f32 %v5038_v13, %v951_v35  ;;  %v1044_v1 = vsub.f32 %v5039_v46, %v951_v35 }
 0x30d   : > { %v3905_v34 = vpop.eup %2962  ;;  %2988 = vpow2.f32 %v1131_v40 }
 0x30e   : > { %v3907_v23 = vpop.eup %2964  ;;  %v1246_v43 = vadd.f32 %v3905_v34, %v3899_v51  ;;  %2990 = vpow2.f32 %v1133_v57  ;;  %v1111_v40 = vmul.f32 1.442695, %v1043_v37 }
 0x30f   : > { %v3911_v39 = vpop.eup %2966  ;;  %2992 = vpow2.f32 %v1127_v59  ;;  %v945_v54 = vpop.xlane.xlu0 %944 }
 0x310   : > { %v3914_v44 = vpop.eup %2968  ;;  %1247 = vadd.xlane.f32.xlu1 %v1246_v43  ;;  %1268 = vadd.xlane.f32.xlu0 %v1267_v49  ;;  %v1264_v31 = vadd.f32 %v3911_v39, %v3907_v23  ;;  %2994 = vpow2.f32 %v1129_v29  ;;  %v1039_v57 = vsub.f32 %v5040_v62, %v945_v54  ;;  %v1113_v49 = vmul.f32 1.442695, %v1044_v1 }
 0x311   : > { %v3919_v61 = vpop.eup %2970  ;;  %2996 = vpow2.f32 %v1119_v48 }
 0x312   : > { %v3921_v50 = vpop.eup %2972  ;;  %v1240_v36 = vadd.f32 %v3919_v61, %v3914_v44  ;;  %2998 = vpow2.f32 %v1121_v38  ;;  %v1103_v29 = vmul.f32 1.442695, %v1039_v57 }
 0x313   : > { %v3925_v41 = vpop.eup %2974  ;;  %3000 = vpow2.f32 %v1111_v40 }
 0x314   : > { %v3928_v42 = vpop.eup %2976  ;;  %1241 = vadd.xlane.f32.xlu1 %v1240_v36  ;;  %1265 = vadd.xlane.f32.xlu0 %v1264_v31  ;;  %v1261_v52 = vadd.f32 %v3925_v41, %v3921_v50  ;;  %v5041_v36 = vld [vmem:[#allocation18_spill] sm:$0xff]  ;;  %3002 = vpow2.f32 %v1113_v49 }
 0x315   : > { %5035 = vst [vmem:[#allocation32_spill] sm:$0xff] %v3928_v42  ;;  %v3933_v32 = vpop.eup %2978  ;;  %v1040_v59 = vsub.f32 %v5041_v36, %v945_v54  ;;  %3004 = vpow2.f32 %v1103_v29 }
 0x316   : > { %5037 = vst [vmem:[#allocation21_spill] sm:$0xff] %v3933_v32  ;;  %v1234_v9 = vadd.f32 %v3933_v32, %v3928_v42  ;;  %v3938_v45 = vpop.eup %2980 }
 0x317   : > { %v3943_v43 = vpop.eup %2982  ;;  %v1105_v47 = vmul.f32 1.442695, %v1040_v59 }
 0x318   : > { %1235 = vadd.xlane.f32.xlu1 %v1234_v9  ;;  %1262 = vadd.xlane.f32.xlu0 %v1261_v52  ;;  %v3946_v60 = vpop.eup %2984  ;;  %v1258_v35 = vadd.f32 %v3943_v43, %v3938_v45 }
 0x319   : > { %v3951_v18 = vpop.eup %2986  ;;  %3006 = vpow2.f32 %v1105_v47 }
 0x31a   : > { %v3953_v56 = vpop.eup %2988  ;;  %v1255_v31 = vadd.f32 %v3951_v18, %v3946_v60 }
 0x31b   : > { %v3957_v9 = vpop.eup %2990 }
 0x31c   : > { %1259 = vadd.xlane.f32.xlu0 %v1258_v35  ;;  %v3959_v48 = vpop.eup %2992  ;;  %v1252_v13 = vadd.f32 %v3957_v9, %v3953_v56 }
 0x31d   : > { %v3963_v37 = vpop.eup %2994 }
 0x31e   : > { %v3965_v38 = vpop.eup %2996  ;;  %v1249_v46 = vadd.f32 %v3963_v37, %v3959_v48 }
 0x31f   : > { %v3969_v1 = vpop.eup %2998 }
 0x320   : > { %1256 = vadd.xlane.f32.xlu0 %v1255_v31  ;;  %v3973_v62 = vpop.eup %3000  ;;  %v1243_v57 = vadd.f32 %v3969_v1, %v3965_v38  ;;  %v5042_v31 = vld [vmem:[#allocation31_spill] sm:$0xff] }
 0x321   : > { %v3977_v49 = vpop.eup %3002 }
 0x324   : > { %1253 = vadd.xlane.f32.xlu0 %v1252_v13 }
 0x328   : > { %1250 = vadd.xlane.f32.xlu0 %v1249_v46 }
 0x32a   : > { %v1035_v54 = vpop.xlane.xlu0 %1034 }
 0x32b   : > { %v1099_v52 = vsub.f32 %v3799_v20, %v1035_v54  ;;  %v1100_v40 = vsub.f32 %v3801_v19, %v1035_v54  ;;  %v3982_v19 = vpop.eup %3004  ;;  %v1237_v54 = vadd.f32 %v3977_v49, %v3973_v62 }
 0x32c   : > { %1244 = vadd.xlane.f32.xlu0 %v1243_v57 }
 0x32d   : > { %v1223_v36 = vmul.f32 1.442695, %v1099_v52  ;;  %v1225_v59 = vmul.f32 1.442695, %v1100_v40  ;;  %v3987_v52 = vpop.eup %3006 }
 0x32e   : > { %v1029_v35 = vpop.xlane.xlu0 %1028  ;;  %v1038_v29 = vpop.xlane.xlu1 %1037 }
 0x32f   : > { %3008 = vpow2.f32 %v1223_v36  ;;  %v1095_v47 = vsub.f32 %v3791_v22, %v1029_v35  ;;  %v1096_v13 = vsub.f32 %v5042_v31, %v1029_v35  ;;  %v1101_v20 = vsub.f32 %v3805_v17, %v1038_v29 }
 0x330   : > { %3010 = vpow2.f32 %v1225_v59  ;;  %v1102_v46 = vsub.f32 %v3807_v30, %v1038_v29  ;;  %1238 = vadd.xlane.f32.xlu0 %v1237_v54  ;;  %v1231_v29 = vadd.f32 %v3987_v52, %v3982_v19 }
 0x331   : > { %v1215_v40 = vmul.f32 1.442695, %v1095_v47  ;;  %v1217_v57 = vmul.f32 1.442695, %v1096_v13  ;;  %v1227_v42 = vmul.f32 1.442695, %v1101_v20 }
 0x332   : > { %v1229_v36 = vmul.f32 1.442695, %v1102_v46  ;;  %v1023_v22 = vpop.xlane.xlu0 %1022  ;;  %v1032_v32 = vpop.xlane.xlu1 %1031 }
 0x333   : > { %3012 = vpow2.f32 %v1215_v40  ;;  %v1091_v17 = vsub.f32 %v3783_v25, %v1023_v22  ;;  %v1092_v35 = vsub.f32 %v3785_v26, %v1023_v22  ;;  %v1097_v59 = vsub.f32 %v3795_v24, %v1032_v32 }
 0x334   : > { %3014 = vpow2.f32 %v1217_v57  ;;  %v1098_v30 = vsub.f32 %v3797_v63, %v1032_v32  ;;  %1232 = vadd.xlane.f32.xlu0 %v1231_v29 }
 0x335   : > { %3016 = vpow2.f32 %v1227_v42  ;;  %v1207_v47 = vmul.f32 1.442695, %v1091_v17  ;;  %v1209_v31 = vmul.f32 1.442695, %v1092_v35  ;;  %v1219_v13 = vmul.f32 1.442695, %v1097_v59 }
 0x336   : > { %3018 = vpow2.f32 %v1229_v36  ;;  %v1221_v20 = vmul.f32 1.442695, %v1098_v30  ;;  %v1026_v46 = vpop.xlane.xlu1 %1025 }
 0x337   : > { %3020 = vpow2.f32 %v1207_v47  ;;  %v1093_v25 = vsub.f32 %v3787_v21, %v1026_v46  ;;  %v1094_v26 = vsub.f32 %v3789_v15, %v1026_v46 }
 0x338   : > { %3022 = vpow2.f32 %v1209_v31 }
 0x339   : > { %3024 = vpow2.f32 %v1219_v13  ;;  %v1211_v24 = vmul.f32 1.442695, %v1093_v25  ;;  %v1213_v63 = vmul.f32 1.442695, %v1094_v26 }
 0x33a   : > { %3026 = vpow2.f32 %v1221_v20  ;;  %v1020_v32 = vpop.xlane.xlu1 %1019 }
 0x33b   : > { %3028 = vpow2.f32 %v1211_v24  ;;  %v1089_v42 = vsub.f32 %v3779_v28, %v1020_v32  ;;  %v1090_v54 = vsub.f32 %v3781_v8, %v1020_v32 }
 0x33c   : > { %v3999_v40 = vpop.eup %3008  ;;  %3030 = vpow2.f32 %v1213_v63 }
 0x33d   : > { %v4001_v57 = vpop.eup %3010  ;;  %v1203_v36 = vmul.f32 1.442695, %v1089_v42  ;;  %v1205_v21 = vmul.f32 1.442695, %v1090_v54 }
 0x33e   : > { %v1017_v22 = vpop.xlane.xlu1 %1016  ;;  %v1321_v15 = vadd.f32 %v4001_v57, %v3999_v40 }
 0x33f   : > { %3032 = vpow2.f32 %v1203_v36  ;;  %v1087_v17 = vsub.f32 %v3775_v3, %v1017_v22  ;;  %v1088_v35 = vsub.f32 %v3777_v27, %v1017_v22 }
 0x340   : > { %v4007_v59 = vpop.eup %3012  ;;  %3034 = vpow2.f32 %v1205_v21  ;;  %1322 = vadd.xlane.f32.xlu0 %v1321_v15 }
 0x341   : > { %v4009_v28 = vpop.eup %3014  ;;  %v1199_v8 = vmul.f32 1.442695, %v1087_v17  ;;  %v1201_v30 = vmul.f32 1.442695, %v1088_v35 }
 0x342   : > { %v4011_v29 = vpop.eup %3016  ;;  %v1014_v47 = vpop.xlane.xlu1 %1013  ;;  %v1315_v31 = vadd.f32 %v4009_v28, %v4007_v59 }
 0x343   : > { %v4015_v13 = vpop.eup %3018  ;;  %3036 = vpow2.f32 %v1199_v8  ;;  %v1085_v3 = vsub.f32 %v3769_v16, %v1014_v47  ;;  %v1086_v27 = vsub.f32 %v3771_v0, %v1014_v47 }
 0x344   : > { %v4019_v20 = vpop.eup %3020  ;;  %3038 = vpow2.f32 %v1201_v30  ;;  %1316 = vadd.xlane.f32.xlu0 %v1315_v31  ;;  %v1324_v46 = vadd.f32 %v4015_v13, %v4011_v29 }
 0x345   : > { %v4023_v25 = vpop.eup %3022  ;;  %v1195_v26 = vmul.f32 1.442695, %v1085_v3  ;;  %v1197_v24 = vmul.f32 1.442695, %v1086_v27 }
 0x346   : > { %v4025_v63 = vpop.eup %3024  ;;  %1325 = vadd.xlane.f32.xlu1 %v1324_v46  ;;  %v1011_v32 = vpop.xlane.xlu1 %1010  ;;  %v1309_v16 = vadd.f32 %v4023_v25, %v4019_v20 }
 0x347   : > { %v4029_v42 = vpop.eup %3026  ;;  %3040 = vpow2.f32 %v1195_v26  ;;  %v1083_v0 = vsub.f32 %v3763_v11, %v1011_v32  ;;  %v1084_v54 = vsub.f32 %v3765_v12, %v1011_v32  ;;  %v5043_v26 = vld [vmem:[#allocation29_spill] sm:$0xff]  ;;  %v5044_v32 = vld [vmem:[#allocation30_spill] sm:$0xff] }
 0x348   : > { %v4033_v36 = vpop.eup %3028  ;;  %3042 = vpow2.f32 %v1197_v24  ;;  %1310 = vadd.xlane.f32.xlu0 %v1309_v16  ;;  %v1318_v21 = vadd.f32 %v4029_v42, %v4025_v63 }
 0x349   : > { %v4037_v22 = vpop.eup %3030  ;;  %v1191_v15 = vmul.f32 1.442695, %v1083_v0  ;;  %v1193_v17 = vmul.f32 1.442695, %v1084_v54 }
 0x34a   : > { %1319 = vadd.xlane.f32.xlu1 %v1318_v21  ;;  %v1008_v35 = vpop.xlane.xlu1 %1007  ;;  %v1312_v8 = vadd.f32 %v4037_v22, %v4033_v36 }
 0x34b   : > { %3044 = vpow2.f32 %v1191_v15  ;;  %v1081_v11 = vsub.f32 %v3757_v4, %v1008_v35  ;;  %v1082_v12 = vsub.f32 %v3759_v7, %v1008_v35 }
 0x34c   : > { %v4043_v30 = vpop.eup %3032  ;;  %3046 = vpow2.f32 %v1193_v17  ;;  %v5045_v17 = vld [vmem:[#allocation27_spill] sm:$0xff] }
 0x34d   : > { %v4045_v47 = vpop.eup %3034  ;;  %v1187_v31 = vmul.f32 1.442695, %v1081_v11  ;;  %v1189_v3 = vmul.f32 1.442695, %v1082_v12 }
 0x34e   : > { %1313 = vadd.xlane.f32.xlu1 %v1312_v8  ;;  %v1005_v27 = vpop.xlane.xlu1 %1004  ;;  %v1306_v46 = vadd.f32 %v4045_v47, %v4043_v30  ;;  %v5046_v8 = vld [vmem:[#allocation28_spill] sm:$0xff] }
 0x34f   : > { %3048 = vpow2.f32 %v1187_v31  ;;  %v1079_v24 = vsub.f32 %v5043_v26, %v1005_v27  ;;  %v1080_v16 = vsub.f32 %v5044_v32, %v1005_v27 }
 0x350   : > { %v4051_v4 = vpop.eup %3036  ;;  %3050 = vpow2.f32 %v1189_v3 }
 0x351   : > { %v4053_v7 = vpop.eup %3038  ;;  %v1183_v0 = vmul.f32 1.442695, %v1079_v24  ;;  %v1185_v54 = vmul.f32 1.442695, %v1080_v16  ;;  %v5048_v24 = vld [vmem:[#allocation25_spill] sm:$0xff]  ;;  %v5049_v16 = vld [vmem:[#allocation26_spill] sm:$0xff] }
 0x352   : > { %1307 = vadd.xlane.f32.xlu1 %v1306_v46  ;;  %v1002_v21 = vpop.xlane.xlu1 %1001  ;;  %v1303_v15 = vadd.f32 %v4053_v7, %v4051_v4 }
 0x353   : > { %3052 = vpow2.f32 %v1183_v0  ;;  %v1077_v35 = vsub.f32 %v5045_v17, %v1002_v21  ;;  %v1078_v11 = vsub.f32 %v5046_v8, %v1002_v21 }
 0x354   : > { %v4059_v12 = vpop.eup %3040  ;;  %3054 = vpow2.f32 %v1185_v54  ;;  %1304 = vadd.xlane.f32.xlu0 %v1303_v15 }
 0x355   : > { %5047 = vst [vmem:[#allocation19_spill] sm:$0xff] %v4059_v12  ;;  %v4061_v31 = vpop.eup %3042  ;;  %v1179_v3 = vmul.f32 1.442695, %v1077_v35  ;;  %v1181_v27 = vmul.f32 1.442695, %v1078_v11 }
 0x356   : > { %v999_v26 = vpop.xlane.xlu1 %998  ;;  %v1300_v46 = vadd.f32 %v4061_v31, %v4059_v12 }
 0x357   : > { %3056 = vpow2.f32 %v1179_v3  ;;  %v1075_v32 = vsub.f32 %v5048_v24, %v999_v26  ;;  %v1076_v0 = vsub.f32 %v5049_v16, %v999_v26  ;;  %v5052_v3 = vld [vmem:[#allocation24_spill] sm:$0xff] }
 0x358   : > { %v4067_v17 = vpop.eup %3044  ;;  %3058 = vpow2.f32 %v1181_v27  ;;  %1301 = vadd.xlane.f32.xlu1 %v1300_v46 }
 0x359   : > { %5050 = vst [vmem:[#allocation20_spill] sm:$0xff] %v4067_v17  ;;  %v4069_v21 = vpop.eup %3046  ;;  %v1175_v54 = vmul.f32 1.442695, %v1075_v32  ;;  %v1177_v15 = vmul.f32 1.442695, %v1076_v0  ;;  %v5053_v0 = vld [vmem:[#allocation22_spill] sm:$0xff] }
 0x35a   : > { %5051 = vst [vmem:[#allocation17_spill] sm:$0xff] %v4069_v21  ;;  %v996_v8 = vpop.xlane.xlu1 %995  ;;  %v1297_v35 = vadd.f32 %v4069_v21, %v4067_v17 }
 0x35b   : > { %3060 = vpow2.f32 %v1175_v54  ;;  %v1073_v11 = vsub.f32 %v3725_v5, %v996_v8  ;;  %v1074_v12 = vsub.f32 %v5052_v3, %v996_v8  ;;  %v5054_v54 = vld [vmem:[#allocation23_spill] sm:$0xff] }
 0x35c   : > { %v4075_v24 = vpop.eup %3048  ;;  %3062 = vpow2.f32 %v1177_v15  ;;  %1298 = vadd.xlane.f32.xlu0 %v1297_v35 }
 0x35d   : > { %v4077_v26 = vpop.eup %3050  ;;  %v1171_v27 = vmul.f32 1.442695, %v1073_v11  ;;  %v1173_v46 = vmul.f32 1.442695, %v1074_v12 }
 0x35e   : > { %v993_v16 = vpop.xlane.xlu1 %992  ;;  %v1294_v32 = vadd.f32 %v4077_v26, %v4075_v24 }
 0x35f   : > { %3064 = vpow2.f32 %v1171_v27  ;;  %v1071_v17 = vsub.f32 %v5053_v0, %v993_v16  ;;  %v1072_v21 = vsub.f32 %v5054_v54, %v993_v16 }
 0x360   : > { %v4083_v5 = vpop.eup %3052  ;;  %3066 = vpow2.f32 %v1173_v46  ;;  %1295 = vadd.xlane.f32.xlu1 %v1294_v32 }
 0x361   : > { %v4085_v8 = vpop.eup %3054  ;;  %v1167_v15 = vmul.f32 1.442695, %v1071_v17  ;;  %v1169_v35 = vmul.f32 1.442695, %v1072_v21 }
 0x362   : > { %v1291_v12 = vadd.f32 %v4085_v8, %v4083_v5 }
 0x363   : > { %3068 = vpow2.f32 %v1167_v15 }
 0x364   : > { %v4089_v11 = vpop.eup %3056  ;;  %3070 = vpow2.f32 %v1169_v35  ;;  %1292 = vadd.xlane.f32.xlu0 %v1291_v12  ;;  %v247_v12 = vld [vmem:[%s4945_s2 + $0x20] sm:$0xff] }
 0x365   : > { %v4091_v3 = vpop.eup %3058 }
 0x366   : > { %v1288_v27 = vadd.f32 %v4091_v3, %v4089_v11 }
 0x368   : > { %v4095_v16 = vpop.eup %3060  ;;  %1289 = vadd.xlane.f32.xlu1 %v1288_v27  ;;  %v249_v27 = vld [vmem:[%s4945_s2 + $0x30] sm:$0xff] }
 0x369   : > { %5055 = vst [vmem:[#allocation18_spill] sm:$0xff] %v4095_v16  ;;  %v4097_v46 = vpop.eup %3062 }
 0x36a   : > { %5056 = vst [vmem:[#allocation31_spill] sm:$0xff] %v4097_v46  ;;  %v1285_v17 = vadd.f32 %v4097_v46, %v4095_v16 }
 0x36c   : > { %v4101_v21 = vpop.eup %3064  ;;  %1286 = vadd.xlane.f32.xlu0 %v1285_v17  ;;  %v250_v17 = vld [vmem:[%s4945_s2 + $0x38] sm:$0xff] }
 0x36d   : > { %5057 = vst [vmem:[#allocation29_spill] sm:$0xff] %v4101_v21  ;;  %v4103_v32 = vpop.eup %3066 }
 0x36e   : > { %5058 = vst [vmem:[#allocation30_spill] sm:$0xff] %v4103_v32  ;;  %v1282_v0 = vadd.f32 %v4103_v32, %v4101_v21 }
 0x370   : > { %v4107_v54 = vpop.eup %3068  ;;  %1283 = vadd.xlane.f32.xlu1 %v1282_v0  ;;  %v248_v0 = vld [vmem:[%s4945_s2 + $0x28] sm:$0xff] }
 0x371   : > { %5059 = vst [vmem:[#allocation27_spill] sm:$0xff] %v4107_v54  ;;  %v4109_v15 = vpop.eup %3070 }
 0x372   : > { %5060 = vst [vmem:[#allocation28_spill] sm:$0xff] %v4109_v15  ;;  %v1279_v35 = vadd.f32 %v4109_v15, %v4107_v54 }
 0x374   : > { %1280 = vadd.xlane.f32.xlu0 %v1279_v35  ;;  %v251_v35 = vld [vmem:[%s4945_s2 + $0x40] sm:$0xff] }
 0x381   : > { %277 = vperm.xlu1 %2943, %v247_v12   ;;  %v252_v12 = vld [vmem:[%s4945_s2 + $0x48] sm:$0xff] }
 0x385   : > { %287 = vperm.xlu1 %2943, %v249_v27  }
 0x389   : > { %292 = vperm.xlu1 %2943, %v250_v17  }
 0x38a   : > { %282 = vperm.xlu0 %2942, %v248_v0  }
 0x38d   : > { %297 = vperm.xlu1 %2943, %v251_v35   ;;  %v1278_v27 = vpop.xlane.xlu0 %1277 }
 0x38e   : > { %302 = vperm.xlu0 %2942, %v252_v12   ;;  %3072 = vrcp.f32 %v1278_v27 }
 0x391   : > { %v1275_v54 = vpop.xlane.xlu0 %1274 }
 0x392   : > { %3074 = vrcp.f32 %v1275_v54 }
 0x395   : > { %v1272_v15 = vpop.xlane.xlu0 %1271 }
 0x396   : > { %3076 = vrcp.f32 %v1272_v15 }
 0x399   : > { %v1269_v21 = vpop.xlane.xlu0 %1268 }
 0x39a   : > { %3078 = vrcp.f32 %v1269_v21 }
 0x39b   : > { %v3073_v17 = vpop.eup %3072 }
 0x39c   : > { %v1390_v0 = vmul.f32 %v3073_v17, %v3871_v10  ;;  %v1389_v32 = vmul.f32 %v3073_v17, %v3869_v58 }
 0x39d   : > { %v1266_v16 = vpop.xlane.xlu0 %1265 }
 0x39e   : > { %3080 = vrcp.f32 %v1266_v16  ;;  %1423 = vmatprep.subr.mxu1 %v1390_v0 }
 0x39f   : > { %v3075_v46 = vpop.eup %3074  ;;  %1424 = vmatpush1.xpose.msra.mxu1 %v1389_v32 }
 0x3a0   : > { %v1388_v35 = vmul.f32 %v3075_v46, %v3883_v55  ;;  %v1387_v12 = vmul.f32 %v3075_v46, %v3877_v14 }
 0x3a1   : > { %v1263_v27 = vpop.xlane.xlu0 %1262 }
 0x3a2   : > { %3082 = vrcp.f32 %v1263_v27  ;;  %1425 = vmatprep.subr.mxu1 %v1388_v35 }
 0x3a3   : > { %v3077_v54 = vpop.eup %3076  ;;  %1426 = vmatpush1.xpose.msra.mxu1 %v1387_v12 }
 0x3a4   : > { %v1386_v21 = vmul.f32 %v3077_v54, %v3891_v6  ;;  %v1385_v10 = vmul.f32 %v3077_v54, %v3886_v33  ;;  %v1248_v33 = vpop.xlane.xlu1 %1247 }
 0x3a5   : > { %v1260_v15 = vpop.xlane.xlu0 %1259 }
 0x3a6   : > { %3084 = vrcp.f32 %v1260_v15  ;;  %1427 = vmatprep.subr.mxu1 %v1386_v21 }
 0x3a7   : > { %v3079_v58 = vpop.eup %3078  ;;  %1428 = vmatpush1.xpose.msra.mxu1 %v1385_v10 }
 0x3a8   : > { %v1384_v16 = vmul.f32 %v3079_v58, %v3895_v53  ;;  %v1383_v55 = vmul.f32 %v3079_v58, %v3893_v2  ;;  %v1242_v21 = vpop.xlane.xlu1 %1241 }
 0x3a9   : > { %v1257_v32 = vpop.xlane.xlu0 %1256 }
 0x3aa   : > { %3086 = vrcp.f32 %v1257_v32  ;;  %1429 = vmatprep.subr.mxu1 %v1384_v16 }
 0x3ab   : > { %v3081_v14 = vpop.eup %3080  ;;  %1430 = vmatpush1.xpose.msra.mxu1 %v1383_v55 }
 0x3ac   : > { %v1382_v46 = vmul.f32 %v3081_v14, %v3911_v39  ;;  %v1381_v6 = vmul.f32 %v3081_v14, %v3907_v23  ;;  %v1236_v55 = vpop.xlane.xlu1 %1235 }
 0x3ad   : > { %v1254_v17 = vpop.xlane.xlu0 %1253 }
 0x3ae   : > { %3088 = vrcp.f32 %v1254_v17  ;;  %1431 = vmatprep.subr.mxu1 %v1382_v46 }
 0x3af   : > { %v3083_v0 = vpop.eup %3082  ;;  %1432 = vmatpush1.xpose.msra.mxu1 %v1381_v6  ;;  %3090 = vrcp.f32 %v1248_v33 }
 0x3b0   : > { %v1380_v35 = vmul.f32 %v3083_v0, %v3925_v41  ;;  %v1379_v53 = vmul.f32 %v3083_v0, %v3921_v50 }
 0x3b1   : > { %v1251_v2 = vpop.xlane.xlu0 %1250 }
 0x3b2   : > { %3092 = vrcp.f32 %v1251_v2  ;;  %1433 = vmatprep.subr.mxu1 %v1380_v35 }
 0x3b3   : > { %v3085_v12 = vpop.eup %3084  ;;  %1434 = vmatpush1.xpose.msra.mxu1 %v1379_v53 }
 0x3b4   : > { %v1378_v39 = vmul.f32 %v3085_v12, %v3943_v43  ;;  %v1377_v23 = vmul.f32 %v3085_v12, %v3938_v45 }
 0x3b5   : > { %v1245_v27 = vpop.xlane.xlu0 %1244 }
 0x3b6   : > { %3094 = vrcp.f32 %v1245_v27  ;;  %1435 = vmatprep.subr.mxu1 %v1378_v39  ;;  %v5062_v39 = vld [vmem:[#allocation32_spill] sm:$0xff] }
 0x3b7   : > { %v3087_v54 = vpop.eup %3086  ;;  %1436 = vmatpush1.xpose.msra.mxu1 %v1377_v23  ;;  %3096 = vrcp.f32 %v1242_v21 }
 0x3b8   : > { %v1376_v41 = vmul.f32 %v3087_v54, %v3951_v18  ;;  %v1375_v50 = vmul.f32 %v3087_v54, %v3946_v60 }
 0x3b9   : > { %v1239_v15 = vpop.xlane.xlu0 %1238 }
 0x3ba   : > { %1437 = vmatprep.subr.mxu1 %v1376_v41  ;;  %3098 = vrcp.f32 %v1239_v15 }
 0x3bb   : > { %v3089_v10 = vpop.eup %3088  ;;  %1438 = vmatpush1.xpose.msra.mxu1 %v1375_v50  ;;  %3100 = vrcp.f32 %v1236_v55 }
 0x3bc   : > { %v1374_v58 = vmul.f32 %v3089_v10, %v3957_v9  ;;  %v1373_v43 = vmul.f32 %v3089_v10, %v3953_v56  ;;  %v3091_v45 = vpop.eup %3090 }
 0x3bd   : > { %v1370_v60 = vmul.f32 %v3091_v45, %v3905_v34  ;;  %v1233_v46 = vpop.xlane.xlu0 %1232  ;;  %v1369_v56 = vmul.f32 %v3091_v45, %v3899_v51 }
 0x3be   : > { %1439 = vmatprep.subr.mxu1 %v1374_v58  ;;  %3102 = vrcp.f32 %v1233_v46 }
 0x3bf   : > { %v3093_v16 = vpop.eup %3092  ;;  %1440 = vmatpush1.xpose.msra.mxu1 %v1373_v43 }
 0x3c0   : > { %v1372_v32 = vmul.f32 %v3093_v16, %v3963_v37  ;;  %v1371_v18 = vmul.f32 %v3093_v16, %v3959_v48 }
 0x3c2   : > { %1441 = vmatprep.subr.mxu1 %v1372_v32 }
 0x3c3   : > { %v3095_v14 = vpop.eup %3094  ;;  %1442 = vmatpush1.xpose.msra.mxu1 %v1371_v18 }
 0x3c4   : > { %1443 = vmatprep.subr.mxu1 %v1370_v60  ;;  %v1368_v9 = vmul.f32 %v3095_v14, %v3969_v1  ;;  %v3097_v6 = vpop.eup %3096  ;;  %v1367_v37 = vmul.f32 %v3095_v14, %v3965_v38  ;;  %v5061_v38 = vld [vmem:[#allocation21_spill] sm:$0xff] }
 0x3c5   : > { %v1366_v48 = vmul.f32 %v3097_v6, %v3919_v61  ;;  %v1365_v0 = vmul.f32 %v3097_v6, %v3914_v44 }
 0x3c7   : > { %1444 = vmatpush1.xpose.msra.mxu1 %v1369_v56  ;;  %v3099_v33 = vpop.eup %3098 }
 0x3c8   : > { %1445 = vmatprep.subr.mxu1 %v1368_v9  ;;  %v1364_v51 = vmul.f32 %v3099_v33, %v3977_v49  ;;  %v3101_v35 = vpop.eup %3100  ;;  %v1363_v53 = vmul.f32 %v3099_v33, %v3973_v62 }
 0x3c9   : > { %v1323_v17 = vpop.xlane.xlu0 %1322  ;;  %v1362_v2 = vmul.f32 %v3101_v35, %v5061_v38  ;;  %v1361_v23 = vmul.f32 %v3101_v35, %v5062_v39 }
 0x3ca   : > { %3104 = vrcp.f32 %v1323_v17 }
 0x3cb   : > { %1446 = vmatpush1.xpose.msra.mxu1 %v1367_v37  ;;  %v3103_v61 = vpop.eup %3102 }
 0x3cc   : > { %1447 = vmatprep.subr.mxu1 %v1366_v48  ;;  %v1360_v44 = vmul.f32 %v3103_v61, %v3987_v52  ;;  %v1359_v49 = vmul.f32 %v3103_v61, %v3982_v19  ;;  %v5067_v61 = vld [vmem:[#allocation20_spill] sm:$0xff] }
 0x3cd   : > { %v1317_v12 = vpop.xlane.xlu0 %1316 }
 0x3cf   : > { %v1326_v34 = vpop.xlane.xlu1 %1325  ;;  %1448 = vmatpush1.xpose.msra.mxu1 %v1365_v0  ;;  %v5063_v0 = vld [vmem:[#allocation19_spill] sm:$0xff] }
 0x3d0   : > { %3106 = vrcp.f32 %v1326_v34  ;;  %1449 = vmatprep.subr.mxu1 %v1364_v51 }
 0x3d1   : > { %v1311_v21 = vpop.xlane.xlu0 %1310 }
 0x3d3   : > { %v1320_v1 = vpop.xlane.xlu1 %1319  ;;  %1450 = vmatpush1.xpose.msra.mxu1 %v1363_v53 }
 0x3d4   : > { %3108 = vrcp.f32 %v1320_v1  ;;  %1451 = vmatprep.subr.mxu1 %v1362_v2  ;;  %v5066_v2 = vld [vmem:[#allocation6_spill] sm:$0xff] }
 0x3d5   : > { %3110 = vrcp.f32 %v1317_v12 }
 0x3d7   : > { %v1314_v27 = vpop.xlane.xlu1 %1313  ;;  %1452 = vmatpush1.xpose.msra.mxu1 %v1361_v23  ;;  %v3105_v54 = vpop.eup %3104 }
 0x3d8   : > { %1453 = vmatprep.subr.mxu1 %v1360_v44  ;;  %3112 = vrcp.f32 %v1314_v27  ;;  %v1420_v10 = vmul.f32 %v3105_v54, %v4001_v57  ;;  %v1419_v58 = vmul.f32 %v3105_v54, %v3999_v40 }
 0x3d9   : > { %3114 = vrcp.f32 %v1311_v21 }
 0x3db   : > { %1454 = vmatpush1.xpose.msra.mxu1 %v1359_v49  ;;  %v1308_v52 = vpop.xlane.xlu1 %1307 }
 0x3dc   : > { %3116 = vrcp.f32 %v1308_v52 }
 0x3dd   : > { %v3107_v62 = vpop.eup %3106  ;;  %v1305_v45 = vpop.xlane.xlu0 %1304 }
 0x3de   : > { %v1422_v41 = vmul.f32 %v3107_v62, %v4015_v13  ;;  %v1421_v50 = vmul.f32 %v3107_v62, %v4011_v29  ;;  %3118 = vrcp.f32 %v1305_v45  ;;  %v5068_v62 = vld [vmem:[#allocation7_spill] sm:$0xff] }
 0x3e0   : > { %1455 = vmatprep.subr.mxu1 %v1422_v41  ;;  %v5069_v41 = vld [vmem:[#allocation8_spill] sm:$0xff] }
 0x3e1   : > { %v3109_v15 = vpop.eup %3108  ;;  %1456 = vmatpush2.xpose.msra.mxu1 %v1421_v50  ;;  %v1302_v57 = vpop.xlane.xlu1 %1301 }
 0x3e2   : > { %1457 = vmatprep.subr.mxu1 %v1420_v10  ;;  %v1418_v19 = vmul.f32 %v3109_v15, %v4029_v42  ;;  %v3111_v43 = vpop.eup %3110  ;;  %v1417_v13 = vmul.f32 %v3109_v15, %v4025_v63  ;;  %3120 = vrcp.f32 %v1302_v57 }
 0x3e3   : > { %v1416_v29 = vmul.f32 %v3111_v43, %v4009_v28  ;;  %v1415_v55 = vmul.f32 %v3111_v43, %v4007_v59 }
 0x3e5   : > { %1458 = vmatpush2.xpose.msra.mxu1 %v1419_v58  ;;  %v3113_v16 = vpop.eup %3112  ;;  %v1299_v42 = vpop.xlane.xlu0 %1298 }
 0x3e6   : > { %1459 = vmatprep.subr.mxu1 %v1418_v19  ;;  %v1414_v40 = vmul.f32 %v3113_v16, %v4037_v22  ;;  %v3115_v32 = vpop.eup %3114  ;;  %v1413_v18 = vmul.f32 %v3113_v16, %v4033_v36  ;;  %3122 = vrcp.f32 %v1299_v42  ;;  %v4177_v36 = vpop.f32.mrf.mxu0 }
 0x3e7   : > { %v1412_v63 = vmul.f32 %v3115_v32, %v4023_v25  ;;  %v1411_v14 = vmul.f32 %v3115_v32, %v4019_v20 }
 0x3e8   : > { %v444_v17 = vpop.f32.mrf.mxu0 }
 0x3e9   : > { %1460 = vmatpush2.xpose.msra.mxu1 %v1417_v13  ;;  %v3117_v60 = vpop.eup %3116  ;;  %v1296_v28 = vpop.xlane.xlu1 %1295 }
 0x3ea   : > { %1461 = vmatprep.subr.mxu1 %v1416_v29  ;;  %3124 = vrcp.f32 %v1296_v28  ;;  %v1410_v59 = vmul.f32 %v3117_v60, %v4045_v47  ;;  %v1409_v9 = vmul.f32 %v3117_v60, %v4043_v30 }
 0x3eb   : > { %v3119_v46 = vpop.eup %3118 }
 0x3ec   : > { %v1408_v25 = vmul.f32 %v3119_v46, %v4053_v7  ;;  %v1407_v20 = vmul.f32 %v3119_v46, %v4051_v4  ;;  %v5064_v7 = vld [vmem:[#allocation17_spill] sm:$0xff] }
 0x3ed   : > { %1462 = vmatpush2.xpose.msra.mxu1 %v1415_v55  ;;  %v1293_v22 = vpop.xlane.xlu0 %1292  ;;  %v5065_v4 = vld [vmem:[#allocation5_spill] sm:$0xff]  ;;  %v5072_v55 = vld [vmem:[#allocation30_spill] sm:$0xff] }
 0x3ee   : > { %1463 = vmatprep.subr.mxu1 %v1414_v40  ;;  %3126 = vrcp.f32 %v1293_v22 }
 0x3ef   : > { %v3121_v6 = vpop.eup %3120 }
 0x3f0   : > { %v1406_v47 = vmul.f32 %v3121_v6, %v4061_v31  ;;  %v1405_v51 = vmul.f32 %v3121_v6, %v5063_v0  ;;  %v5078_v0 = vld [vmem:[#allocation11_spill] sm:$0xff] }
 0x3f1   : > { %1464 = vmatpush2.xpose.msra.mxu1 %v1413_v18  ;;  %v1290_v56 = vpop.xlane.xlu1 %1289  ;;  %v5074_v18 = vld [vmem:[#allocation28_spill] sm:$0xff] }
 0x3f2   : > { %1465 = vmatprep.subr.mxu1 %v1412_v63  ;;  %3128 = vrcp.f32 %v1290_v56  ;;  %v5076_v56 = vmov 0.0  }
 0x3f3   : > { %v3123_v48 = vpop.eup %3122 }
 0x3f4   : > { %v1404_v35 = vmul.f32 %v3123_v48, %v5064_v7  ;;  %v1403_v12 = vmul.f32 %v3123_v48, %v5067_v61  ;;  %v5079_v7 = vld [vmem:[#allocation10_spill] sm:$0xff]  ;;  %v1503_v61 = vld [vmem:[%s4946_s3 + $0x18] sm:$0xff] }
 0x3f5   : > { %1466 = vmatpush2.xpose.msra.mxu1 %v1411_v14  ;;  %v1287_v33 = vpop.xlane.xlu0 %1286 }
 0x3f6   : > { %1467 = vmatprep.subr.mxu1 %v1410_v59  ;;  %3130 = vrcp.f32 %v1287_v33 }
 0x3f7   : > { %v3125_v1 = vpop.eup %3124 }
 0x3f8   : > { %v1402_v44 = vmul.f32 %v3125_v1, %v4077_v26  ;;  %v1401_v10 = vmul.f32 %v3125_v1, %v4075_v24  ;;  %v5070_v24 = vld [vmem:[#allocation31_spill] sm:$0xff]  ;;  %v5080_v1 = vld [vmem:[#allocation9_spill] sm:$0xff] }
 0x3f9   : > { %1468 = vmatpush2.xpose.msra.mxu1 %v1409_v9  ;;  %v1284_v37 = vpop.xlane.xlu1 %1283 }
 0x3fa   : > { %1469 = vmatprep.subr.mxu1 %v1408_v25  ;;  %3132 = vrcp.f32 %v1284_v37 }
 0x3fb   : > { %v3127_v27 = vpop.eup %3126 }
 0x3fc   : > { %v1400_v58 = vmul.f32 %v3127_v27, %v4085_v8  ;;  %v1399_v26 = vmul.f32 %v3127_v27, %v4083_v5  ;;  %v5071_v8 = vld [vmem:[#allocation18_spill] sm:$0xff]  ;;  %v5073_v5 = vld [vmem:[#allocation29_spill] sm:$0xff] }
 0x3fd   : > { %1470 = vmatpush2.xpose.msra.mxu1 %v1407_v20  ;;  %v278_v34 = vpop.permute.xlu1 %277  ;;  %v1281_v49 = vpop.xlane.xlu0 %1280 }
 0x3fe   : > { %1471 = vmatprep.subr.mxu1 %v1406_v47  ;;  %v445_v30 = vadd.f32 %v444_v17, %v278_v34  ;;  %3134 = vrcp.f32 %v1281_v49  ;;  %v443_v59 = vadd.f32 %v4177_v36, %v278_v34  ;;  %v1500_v36 = vld [vmem:[%s4946_s3] sm:$0xff]  ;;  %v5077_v34 = vld [vmem:[#allocation12_spill] sm:$0xff] }
 0x3ff   : > { %v3129_v19 = vpop.eup %3128 }
 0x400   : > { %1487 = vmatprep.mubr.f32.mxu1 %v445_v30  ;;  %v1398_v43 = vmul.f32 %v3129_v19, %v4091_v3  ;;  %v1397_v13 = vmul.f32 %v3129_v19, %v4089_v11  ;;  %v448_v3 = vpop.f32.mrf.mxu0  ;;  %v5075_v11 = vld [vmem:[#allocation27_spill] sm:$0xff] }
 0x401   : > { %1472 = vmatpush2.xpose.msra.mxu1 %v1405_v51  ;;  %v288_v53 = vpop.permute.xlu1 %287 }
 0x402   : > { %1473 = vmatprep.subr.mxu1 %v1404_v35  ;;  %v455_v38 = vadd.f32 %v5065_v4, %v288_v53  ;;  %v457_v31 = vadd.f32 %v5066_v2, %v288_v53  ;;  %v450_v28 = vpop.f32.mrf.mxu0  ;;  %v1501_v4 = vld [vmem:[%s4946_s3 + $0x8] sm:$0xff]  ;;  %v1502_v2 = vld [vmem:[%s4946_s3 + $0x10] sm:$0xff] }
 0x403   : > { %v3131_v45 = vpop.eup %3130 }
 0x404   : > { %v1613_v39 = vmul.f32 0.25, %v455_v38  ;;  %v1614_v23 = vmul.f32 0.25, %v457_v31  ;;  %v1396_v29 = vmul.f32 %v3131_v45, %v5070_v24  ;;  %v1395_v57 = vmul.f32 %v3131_v45, %v5071_v8 }
 0x405   : > { %1474 = vmatpush2.xpose.msra.mxu1 %v1403_v12  ;;  %v293_v54 = vpop.permute.xlu1 %292  ;;  %v283_v14 = vpop.permute.xlu0 %282 }
 0x406   : > { %1475 = vmatprep.subr.mxu1 %v1402_v44  ;;  %v461_v21 = vadd.f32 %v5068_v62, %v293_v54  ;;  %v463_v50 = vadd.f32 %v5069_v41, %v293_v54  ;;  %1649 = vxpose.xlu1.b32.start [1/2] (short) %v1614_v23, 128  ;;  %v451_v46 = vadd.f32 %v450_v28, %v283_v14 }
 0x407   : > { %1617 = vxpose.xlu0.b32.start [1/2] (short) %v1613_v39, 128  ;;  %v3133_v16 = vpop.eup %3132  ;;  %v449_v22 = vadd.f32 %v448_v3, %v283_v14 }
 0x408   : > { %v1615_v15 = vmul.f32 0.25, %v461_v21  ;;  %v1616_v52 = vmul.f32 0.25, %v463_v50  ;;  %v1394_v40 = vmul.f32 %v3133_v16, %v5072_v55  ;;  %v1393_v42 = vmul.f32 %v3133_v16, %v5073_v5 }
 0x409   : > { %1476 = vmatpush2.xpose.msra.mxu1 %v1401_v10  ;;  %v303_v9 = vpop.permute.xlu0 %302  ;;  %v298_v33 = vpop.permute.xlu1 %297 }
 0x40a   : > { %1477 = vmatprep.subr.mxu1 %v1400_v58  ;;  %1650 = vxpose.xlu1.b32.end [2/2] (short) %v1616_v52, 128  ;;  %v475_v30 = vadd.f32 %v5077_v34, %v303_v9  ;;  %v473_v51 = vadd.f32 %v5078_v0, %v303_v9  ;;  %v469_v35 = vadd.f32 %v5079_v7, %v298_v33 }
 0x40b   : > { %1618 = vxpose.xlu0.b32.end [2/2] (short) %v1615_v15, 128  ;;  %v3135_v32 = vpop.eup %3134  ;;  %v467_v53 = vadd.f32 %v5080_v1, %v298_v33 }
 0x40c   : > { %v1392_v63 = vmul.f32 %v3135_v32, %v5074_v18  ;;  %v1391_v60 = vmul.f32 %v3135_v32, %v5075_v11 }
 0x40d   : > { %1478 = vmatpush2.xpose.msra.mxu1 %v1399_v26 }
 0x40e   : > { %1479 = vmatprep.subr.mxu1 %v1398_v43 }
 0x411   : > { %1480 = vmatpush2.xpose.msra.mxu1 %v1397_v13 }
 0x412   : > { %1481 = vmatprep.subr.mxu1 %v1396_v29 }
 0x415   : > { %1482 = vmatpush2.xpose.msra.mxu1 %v1395_v57 }
 0x416   : > { %1483 = vmatprep.subr.mxu1 %v1394_v40 }
 0x419   : > { %1484 = vmatpush2.xpose.msra.mxu1 %v1393_v42 }
 0x41a   : > { %1485 = vmatprep.subr.mxu1 %v1392_v63 }
 0x41d   : > { %1486 = vmatpush2.xpose.msra.mxu1 %v1391_v60 }
 0x420   : > { %1488 = vmatmul.mubr.f32.vlgmr.msra.gmra.mxu1 %v443_v59 }
 0x421   : > { %1493 = vmatprep.mubr.f32.mxu1 %v451_v46 }
 0x424   : > { %1494 = vmatmul.mubr.f32.gmra.mxu1 %v449_v22 }
 0x425   : > { %2672 = vmatprep.mubr.f32.mxu1 %v5076_v56 }
 0x482   : > { %v1665_v54 = vpop.trf.xlu1 }
 0x483   : > { %v1633_v25 = vpop.trf.xlu0 }
 0x486   : > { %v1666_v21 = vpop.trf.xlu1 }
 0x487   : > { %v1634_v37 = vpop.trf.xlu0 }
 0x48a   : > { %v1667_v50 = vpop.trf.xlu1 }
 0x48b   : > { %v1635_v48 = vpop.trf.xlu0 }
 0x48e   : > { %v1668_v15 = vpop.trf.xlu1 }
 0x48f   : > { %v1636_v38 = vpop.trf.xlu0 }
 0x492   : > { %v1669_v58 = vpop.trf.xlu1 }
 0x493   : > { %v1637_v31 = vpop.trf.xlu0 }
 0x496   : > { %v1670_v26 = vpop.trf.xlu1 }
 0x497   : > { %v1638_v12 = vpop.trf.xlu0 }
 0x49a   : > { %v1671_v43 = vpop.trf.xlu1 }
 0x49b   : > { %v1639_v39 = vpop.trf.xlu0 }
 0x49e   : > { %v1672_v45 = vpop.trf.xlu1 }
 0x49f   : > { %v1640_v23 = vpop.trf.xlu0 }
 0x4a2   : > { %v1673_v13 = vpop.trf.xlu1 }
 0x4a3   : > { %v1641_v44 = vpop.trf.xlu0 }
 0x4a6   : > { %v1674_v24 = vpop.trf.xlu1 }
 0x4a7   : > { %v1642_v27 = vpop.trf.xlu0 }
 0x4aa   : > { %v1675_v29 = vpop.trf.xlu1 }
 0x4ab   : > { %v1643_v49 = vpop.trf.xlu0 }
 0x4ae   : > { %v1676_v16 = vpop.trf.xlu1 }
 0x4af   : > { %v1644_v62 = vpop.trf.xlu0 }
 0x4b2   : > { %v1677_v8 = vpop.trf.xlu1 }
 0x4b3   : > { %v1645_v41 = vpop.trf.xlu0 }
 0x4b6   : > { %v1678_v57 = vpop.trf.xlu1 }
 0x4b7   : > { %v1646_v10 = vpop.trf.xlu0 }
 0x4ba   : > { %v1679_v55 = vpop.trf.xlu1 }
 0x4bb   : > { %v1647_v52 = vpop.trf.xlu0 }
 0x4be   : > { %v1680_v40 = vpop.trf.xlu1 }
 0x4bf   : > { %v1648_v19 = vpop.trf.xlu0 }
 0x4e0   : > { %v1489_v6 = vpop.f32.mrf.mxu1 }
 0x4e2   : > { %v1491_v20 = vpop.f32.mrf.mxu1 }
 0x4e4   : > { %v1495_v17 = vpop.f32.mrf.mxu1 }
 0x4e6   : > { %v1497_v47 = vpop.f32.mrf.mxu1 }
 0x4e7   : > { %1544 = vmatprep.subr.mxu0 %v1497_v47 }
 0x4e8   : > { %1545 = vmatpush1.msra.mxu0 %v1495_v17 }
 0x4e9   : > { %1546 = vmatprep.subr.mxu0 %v1491_v20 }
 0x4ea   : > { %1547 = vmatpush1.msra.mxu0 %v1489_v6 }
 0x4eb   : > { %2840 = vmatmul.mubr.msk.f32.vlgmr.msra.gmra.mxu0 %vm589_vm1, %v1500_v36  ;;  %1805 = vmatprep.subr.mxu0 %v475_v30 }
 0x4ec   : > { %1806 = vmatpush1.msra.mxu0 %v473_v51  ;;  %1586 = vmatprep.mubr.f32.mxu0 %v5076_v56 }
 0x4ed   : > { %1807 = vmatprep.subr.mxu0 %v469_v35 }
 0x4ee   : > { %1808 = vmatpush1.msra.mxu0 %v467_v53 }
 0x4ef   : > { %2841 = vmatmul.mubr.msk.f32.gmra.mxu0 %vm589_vm1, %v1501_v4 }
 0x4f0   : > { %1592 = vmatprep.mubr.f32.mxu0 %v5076_v56 }
 0x4f3   : > { %2842 = vmatmul.mubr.msk.f32.gmra.mxu0 %vm589_vm1, %v1502_v2 }
 0x4f4   : > { %1598 = vmatprep.mubr.f32.mxu0 %v5076_v56 }
 0x4f7   : > { %2843 = vmatmul.mubr.msk.f32.gmra.mxu0 %vm589_vm1, %v1503_v61 }
 0x4f8   : > { %1841 = vmatprep.mubr.f32.mxu0 %v5076_v56 }
 0x4fb   : > { %2844 = vmatmul.mubr.msk.f32.vlgmr.msra.gmra.mxu0 %vm589_vm1, %v1633_v25 }
 0x4fc   : > { %1847 = vmatprep.mubr.f32.mxu0 %v5076_v56 }
 0x4ff   : > { %2845 = vmatmul.mubr.msk.f32.gmra.mxu0 %vm589_vm1, %v1634_v37 }
 0x500   : > { %1853 = vmatprep.mubr.f32.mxu0 %v5076_v56 }
 0x503   : > { %2846 = vmatmul.mubr.msk.f32.gmra.mxu0 %vm589_vm1, %v1635_v48 }
 0x504   : > { %1859 = vmatprep.mubr.f32.mxu0 %v5076_v56 }
 0x507   : > { %2847 = vmatmul.mubr.msk.f32.gmra.mxu0 %vm589_vm1, %v1636_v38 }
 0x508   : > { %1865 = vmatprep.mubr.f32.mxu0 %v5076_v56 }
 0x50b   : > { %2848 = vmatmul.mubr.msk.f32.gmra.mxu0 %vm589_vm1, %v1637_v31 }
 0x50c   : > { %1871 = vmatprep.mubr.f32.mxu0 %v5076_v56 }
 0x50f   : > { %2849 = vmatmul.mubr.msk.f32.gmra.mxu0 %vm589_vm1, %v1638_v12 }
 0x510   : > { %1877 = vmatprep.mubr.f32.mxu0 %v5076_v56 }
 0x513   : > { %2850 = vmatmul.mubr.msk.f32.gmra.mxu0 %vm589_vm1, %v1639_v39 }
 0x514   : > { %1883 = vmatprep.mubr.f32.mxu0 %v5076_v56 }
 0x517   : > { %2851 = vmatmul.mubr.msk.f32.gmra.mxu0 %vm589_vm1, %v1640_v23 }
 0x518   : > { %1889 = vmatprep.mubr.f32.mxu0 %v5076_v56 }
 0x51b   : > { %2852 = vmatmul.mubr.msk.f32.gmra.mxu0 %vm589_vm1, %v1641_v44 }
 0x51c   : > { %1895 = vmatprep.mubr.f32.mxu0 %v5076_v56 }
 0x51f   : > { %2853 = vmatmul.mubr.msk.f32.gmra.mxu0 %vm589_vm1, %v1642_v27 }
 0x520   : > { %1901 = vmatprep.mubr.f32.mxu0 %v5076_v56 }
 0x523   : > { %2854 = vmatmul.mubr.msk.f32.gmra.mxu0 %vm589_vm1, %v1643_v49 }
 0x524   : > { %1907 = vmatprep.mubr.f32.mxu0 %v5076_v56 }
 0x527   : > { %2855 = vmatmul.mubr.msk.f32.gmra.mxu0 %vm589_vm1, %v1644_v62 }
 0x528   : > { %1913 = vmatprep.mubr.f32.mxu0 %v5076_v56 }
 0x52b   : > { %2856 = vmatmul.mubr.msk.f32.gmra.mxu0 %vm589_vm1, %v1645_v41 }
 0x52c   : > { %1919 = vmatprep.mubr.f32.mxu0 %v5076_v56 }
 0x52f   : > { %2857 = vmatmul.mubr.msk.f32.gmra.mxu0 %vm589_vm1, %v1646_v10 }
 0x530   : > { %1925 = vmatprep.mubr.f32.mxu0 %v5076_v56 }
 0x533   : > { %2858 = vmatmul.mubr.msk.f32.gmra.mxu0 %vm589_vm1, %v1647_v52 }
 0x534   : > { %1931 = vmatprep.mubr.f32.mxu0 %v5076_v56 }
 0x537   : > { %2859 = vmatmul.mubr.msk.f32.gmra.mxu0 %vm589_vm1, %v1648_v19 }
 0x538   : > { %1937 = vmatprep.mubr.f32.mxu0 %v5076_v56 }
 0x53b   : > { %2860 = vmatmul.mubr.msk.f32.gmra.mxu0 %vm589_vm1, %v1665_v54 }
 0x53c   : > { %1943 = vmatprep.mubr.f32.mxu0 %v5076_v56 }
 0x53f   : > { %2861 = vmatmul.mubr.msk.f32.gmra.mxu0 %vm589_vm1, %v1666_v21 }
 0x540   : > { %1949 = vmatprep.mubr.f32.mxu0 %v5076_v56 }
 0x543   : > { %2862 = vmatmul.mubr.msk.f32.gmra.mxu0 %vm589_vm1, %v1667_v50 }
 0x544   : > { %1955 = vmatprep.mubr.f32.mxu0 %v5076_v56 }
 0x547   : > { %2863 = vmatmul.mubr.msk.f32.gmra.mxu0 %vm589_vm1, %v1668_v15 }
 0x548   : > { %1961 = vmatprep.mubr.f32.mxu0 %v5076_v56 }
 0x54b   : > { %2864 = vmatmul.mubr.msk.f32.gmra.mxu0 %vm589_vm1, %v1669_v58 }
 0x54c   : > { %1967 = vmatprep.mubr.f32.mxu0 %v5076_v56 }
 0x54f   : > { %2865 = vmatmul.mubr.msk.f32.gmra.mxu0 %vm589_vm1, %v1670_v26 }
 0x550   : > { %1973 = vmatprep.mubr.f32.mxu0 %v5076_v56 }
 0x553   : > { %2866 = vmatmul.mubr.msk.f32.gmra.mxu0 %vm589_vm1, %v1671_v43 }
 0x554   : > { %1979 = vmatprep.mubr.f32.mxu0 %v5076_v56 }
 0x557   : > { %2867 = vmatmul.mubr.msk.f32.gmra.mxu0 %vm589_vm1, %v1672_v45 }
 0x558   : > { %1985 = vmatprep.mubr.f32.mxu0 %v5076_v56 }
 0x55b   : > { %2868 = vmatmul.mubr.msk.f32.gmra.mxu0 %vm589_vm1, %v1673_v13 }
 0x55c   : > { %1991 = vmatprep.mubr.f32.mxu0 %v5076_v56 }
 0x55f   : > { %2869 = vmatmul.mubr.msk.f32.gmra.mxu0 %vm589_vm1, %v1674_v24 }
 0x560   : > { %1997 = vmatprep.mubr.f32.mxu0 %v5076_v56 }
 0x563   : > { %2870 = vmatmul.mubr.msk.f32.gmra.mxu0 %vm589_vm1, %v1675_v29 }
 0x564   : > { %2003 = vmatprep.mubr.f32.mxu0 %v5076_v56 }
 0x567   : > { %2871 = vmatmul.mubr.msk.f32.gmra.mxu0 %vm589_vm1, %v1676_v16 }
 0x568   : > { %2009 = vmatprep.mubr.f32.mxu0 %v5076_v56 }
 0x56b   : > { %2872 = vmatmul.mubr.msk.f32.gmra.mxu0 %vm589_vm1, %v1677_v8 }
 0x56c   : > { %2015 = vmatprep.mubr.f32.mxu0 %v5076_v56 }
 0x56f   : > { %2873 = vmatmul.mubr.msk.f32.gmra.mxu0 %vm589_vm1, %v1678_v57 }
 0x570   : > { %2021 = vmatprep.mubr.f32.mxu0 %v5076_v56 }
 0x573   : > { %2874 = vmatmul.mubr.msk.f32.gmra.mxu0 %vm589_vm1, %v1679_v55 }
 0x574   : > { %2027 = vmatprep.mubr.f32.mxu0 %v5076_v56 }
 0x577   : > { %2875 = vmatmul.mubr.msk.f32.gmra.mxu0 %vm589_vm1, %v1680_v40 }
 0x5ab   : > { %v4290_v32 = vpop.f32.mrf.mxu0 }
 0x5ac   : > { %5081 = vst [vmem:[#allocation25_spill] sm:$0xff] %v4290_v32 }
 0x5ad   : > { %v4292_v5 = vpop.f32.mrf.mxu0 }
 0x5ae   : > { %5082 = vst [vmem:[#allocation26_spill] sm:$0xff] %v4292_v5 }
 0x5af   : > { %v4294_v42 = vpop.f32.mrf.mxu0 }
 0x5b0   : > { %5083 = vst [vmem:[#allocation24_spill] sm:$0xff] %v4294_v42 }
 0x5b1   : > { %v4296_v3 = vpop.f32.mrf.mxu0 }
 0x5b2   : > { %5084 = vst [vmem:[#allocation22_spill] sm:$0xff] %v4296_v3 }
 0x5b3   : > { %v4298_v18 = vpop.f32.mrf.mxu0 }
 0x5b4   : > { %5085 = vst [vmem:[#allocation23_spill] sm:$0xff] %v4298_v18 }
 0x5b5   : > { %v4300_v63 = vpop.f32.mrf.mxu0 }
 0x5b6   : > { %5086 = vst [vmem:[#allocation21_spill] sm:$0xff] %v4300_v63 }
 0x5b7   : > { %v4302_v11 = vpop.f32.mrf.mxu0 }
 0x5b8   : > { %5087 = vst [vmem:[#allocation32_spill] sm:$0xff] %v4302_v11 }
 0x5b9   : > { %v4304_v60 = vpop.f32.mrf.mxu0 }
 0x5ba   : > { %5088 = vst [vmem:[#allocation19_spill] sm:$0xff] %v4304_v60 }
 0x5bb   : > { %v4306_v28 = vpop.f32.mrf.mxu0 }
 0x5bc   : > { %5089 = vst [vmem:[#allocation17_spill] sm:$0xff] %v4306_v28 }
 0x5bd   : > { %v4308_v14 = vpop.f32.mrf.mxu0 }
 0x5be   : > { %5090 = vst [vmem:[#allocation5_spill] sm:$0xff] %v4308_v14 }
 0x5bf   : > { %v4310_v59 = vpop.f32.mrf.mxu0 }
 0x5c1   : > { %v4312_v46 = vpop.f32.mrf.mxu0 }
 0x5c2   : > { %v2037_v55 = vmax.f32 %v4310_v59, %v4312_v46 }
 0x5c3   : > { %v4314_v22 = vpop.f32.mrf.mxu0 }
 0x5c4   : > { %5091 = vst [vmem:[#allocation6_spill] sm:$0xff] %v4314_v22 }
 0x5c5   : > { %v4316_v9 = vpop.f32.mrf.mxu0 }
 0x5c6   : > { %5092 = vst [vmem:[#allocation20_spill] sm:$0xff] %v4316_v9 }
 0x5c7   : > { %v4318_v25 = vpop.f32.mrf.mxu0 }
 0x5c9   : > { %v4320_v6 = vpop.f32.mrf.mxu0 }
 0x5ca   : > { %v2043_v29 = vmax.f32 %v4318_v25, %v4320_v6 }
 0x5cb   : > { %v4322_v37 = vpop.f32.mrf.mxu0 }
 0x5cd   : > { %v4324_v20 = vpop.f32.mrf.mxu0 }
 0x5ce   : > { %5093 = vst [vmem:[#allocation7_spill] sm:$0xff] %v4324_v20 }
 0x5cf   : > { %v4326_v17 = vpop.f32.mrf.mxu0 }
 0x5d1   : > { %v4328_v47 = vpop.f32.mrf.mxu0 }
 0x5d2   : > { %v2049_v43 = vmax.f32 %v4326_v17, %v4328_v47 }
 0x5d3   : > { %v4330_v48 = vpop.f32.mrf.mxu0 }
 0x5d5   : > { %v4332_v33 = vpop.f32.mrf.mxu0 }
 0x5d6   : > { %v2052_v40 = vmax.f32 %v4330_v48, %v4332_v33 }
 0x5d7   : > { %v4334_v36 = vpop.f32.mrf.mxu0 }
 0x5d9   : > { %v4336_v34 = vpop.f32.mrf.mxu0 }
 0x5da   : > { %v2055_v52 = vmax.f32 %v4334_v36, %v4336_v34 }
 0x5db   : > { %v4338_v30 = vpop.f32.mrf.mxu0 }
 0x5dd   : > { %v4340_v0 = vpop.f32.mrf.mxu0 }
 0x5de   : > { %v2058_v16 = vmax.f32 %v4338_v30, %v4340_v0 }
 0x5df   : > { %v4342_v51 = vpop.f32.mrf.mxu0 }
 0x5e1   : > { %v4344_v7 = vpop.f32.mrf.mxu0 }
 0x5e2   : > { %v2061_v41 = vmax.f32 %v4342_v51, %v4344_v7 }
 0x5e3   : > { %v4346_v35 = vpop.f32.mrf.mxu0 }
 0x5e5   : > { %v4348_v1 = vpop.f32.mrf.mxu0 }
 0x5e6   : > { %v2064_v45 = vmax.f32 %v4346_v35, %v4348_v1 }
 0x5e7   : > { %v4350_v53 = vpop.f32.mrf.mxu0 }
 0x5e9   : > { %v4352_v4 = vpop.f32.mrf.mxu0 }
 0x5ea   : > { %v2067_v49 = vmax.f32 %v4350_v53, %v4352_v4 }
 0x5eb   : > { %v4354_v38 = vpop.f32.mrf.mxu0 }
 0x5ed   : > { %v4356_v2 = vpop.f32.mrf.mxu0 }
 0x5ee   : > { %v2070_v58 = vmax.f32 %v4354_v38, %v4356_v2 }
 0x5ef   : > { %v4358_v31 = vpop.f32.mrf.mxu0 }
 0x5f1   : > { %v4360_v61 = vpop.f32.mrf.mxu0 }
 0x5f2   : > { %v2073_v50 = vmax.f32 %v4358_v31, %v4360_v61 }
 0x5f3   : > { %v4362_v12 = vpop.f32.mrf.mxu0 }
 0x5f5   : > { %v4364_v39 = vpop.f32.mrf.mxu0 }
 0x5f6   : > { %v2076_v23 = vmax.f32 %v4362_v12, %v4364_v39 }
 0x5f7   : > { %v4368_v44 = vpop.f32.mrf.mxu0 }
 0x5f8   : > { %2077 = vmax.xlane.f32.xlu1 %v2076_v23 }
 0x5f9   : > { %v4370_v27 = vpop.f32.mrf.mxu0 }
 0x5fa   : > { %v2079_v54 = vmax.f32 %v4368_v44, %v4370_v27 }
 0x5fb   : > { %v4376_v62 = vpop.f32.mrf.mxu0 }
 0x5fc   : > { %2068 = vmax.xlane.f32.xlu1 %v2067_v49  ;;  %2080 = vmax.xlane.f32.xlu0 %v2079_v54  ;;  %v2046_v54 = vmax.f32 %v4322_v37, %v4324_v20 }
 0x5fd   : > { %v4378_v21 = vpop.f32.mrf.mxu0 }
 0x5fe   : > { %5094 = vst [vmem:[#allocation8_spill] sm:$0xff] %v4378_v21 }
 0x5ff   : > { %v4384_v10 = vpop.f32.mrf.mxu0 }
 0x600   : > { %5095 = vst [vmem:[#allocation31_spill] sm:$0xff] %v4384_v10  ;;  %2062 = vmax.xlane.f32.xlu1 %v2061_v41  ;;  %2074 = vmax.xlane.f32.xlu0 %v2073_v50 }
 0x601   : > { %v4386_v15 = vpop.f32.mrf.mxu0 }
 0x602   : > { %5096 = vst [vmem:[#allocation18_spill] sm:$0xff] %v4386_v15 }
 0x603   : > { %v4392_v19 = vpop.f32.mrf.mxu0 }
 0x604   : > { %5097 = vst [vmem:[#allocation30_spill] sm:$0xff] %v4392_v19  ;;  %2056 = vmax.xlane.f32.xlu1 %v2055_v52  ;;  %2071 = vmax.xlane.f32.xlu0 %v2070_v58  ;;  %v2040_v52 = vmax.f32 %v4314_v22, %v4316_v9 }
 0x605   : > { %v4394_v26 = vpop.f32.mrf.mxu0 }
 0x606   : > { %5098 = vst [vmem:[#allocation29_spill] sm:$0xff] %v4394_v26 }
 0x607   : > { %v4400_v13 = vpop.f32.mrf.mxu0 }
 0x608   : > { %5099 = vst [vmem:[#allocation28_spill] sm:$0xff] %v4400_v13  ;;  %2050 = vmax.xlane.f32.xlu1 %v2049_v43  ;;  %2065 = vmax.xlane.f32.xlu0 %v2064_v45  ;;  %v2034_v45 = vmax.f32 %v4306_v28, %v4308_v14 }
 0x609   : > { %v4402_v24 = vpop.f32.mrf.mxu0 }
 0x60a   : > { %5100 = vst [vmem:[#allocation27_spill] sm:$0xff] %v4402_v24 }
 0x60b   : > { %v4408_v8 = vpop.f32.mrf.mxu0 }
 0x60c   : > { %5101 = vst [vmem:[#allocation12_spill] sm:$0xff] %v4408_v8  ;;  %2044 = vmax.xlane.f32.xlu1 %v2043_v29  ;;  %2059 = vmax.xlane.f32.xlu0 %v2058_v16 }
 0x60d   : > { %v4410_v57 = vpop.f32.mrf.mxu0 }
 0x60e   : > { %5102 = vst [vmem:[#allocation11_spill] sm:$0xff] %v4410_v57 }
 0x60f   : > { %v4416_v23 = vpop.f32.mrf.mxu0 }
 0x610   : > { %2038 = vmax.xlane.f32.xlu1 %v2037_v55  ;;  %2053 = vmax.xlane.f32.xlu0 %v2052_v40 }
 0x611   : > { %v4418_v49 = vpop.f32.mrf.mxu0 }
 0x613   : > { %v4422_v41 = vpop.f32.mrf.mxu0 }
 0x614   : > { %2047 = vmax.xlane.f32.xlu0 %v2046_v54 }
 0x615   : > { %v4424_v50 = vpop.f32.mrf.mxu0 }
 0x617   : > { %v4428_v58 = vpop.f32.mrf.mxu0 }
 0x618   : > { %2041 = vmax.xlane.f32.xlu0 %v2040_v52 }
 0x619   : > { %v4430_v43 = vpop.f32.mrf.mxu0 }
 0x61b   : > { %v4434_v29 = vpop.f32.mrf.mxu0 }
 0x61c   : > { %2035 = vmax.xlane.f32.xlu0 %v2034_v45 }
 0x61d   : > { %v4436_v16 = vpop.f32.mrf.mxu0 }
 0x61f   : > { %v4438_v55 = vpop.f32.mrf.mxu0 }
 0x621   : > { %v4440_v40 = vpop.f32.mrf.mxu0 }
 0x623   : > { %v4442_v54 = vpop.f32.mrf.mxu0 }
 0x625   : > { %v4444_v60 = vpop.f32.mrf.mxu0 }
 0x626   : > { %v2112_v22 = vmax.f32 %v4442_v54, %v4444_v60 }
 0x627   : > { %v4446_v11 = vpop.f32.mrf.mxu0 }
 0x629   : > { %v4448_v52 = vpop.f32.mrf.mxu0 }
 0x62b   : > { %v4450_v63 = vpop.f32.mrf.mxu0 }
 0x62d   : > { %v4452_v18 = vpop.f32.mrf.mxu0 }
 0x62e   : > { %5103 = vst [vmem:[#allocation10_spill] sm:$0xff] %v4452_v18  ;;  %v2118_v28 = vmax.f32 %v4450_v63, %v4452_v18  ;;  %v2109_v18 = vmax.f32 %v4438_v55, %v4440_v40 }
 0x62f   : > { %v4454_v3 = vpop.f32.mrf.mxu0 }
 0x631   : > { %v4456_v45 = vpop.f32.mrf.mxu0 }
 0x632   : > { %v2121_v20 = vmax.f32 %v4454_v3, %v4456_v45 }
 0x633   : > { %v4458_v42 = vpop.f32.mrf.mxu0 }
 0x635   : > { %v4460_v5 = vpop.f32.mrf.mxu0 }
 0x636   : > { %v2124_v32 = vmax.f32 %v4458_v42, %v4460_v5 }
 0x637   : > { %v4464_v56 = vpop.f32.mrf.mxu0 }
 0x638   : > { %2125 = vmax.xlane.f32.xlu0 %v2124_v32  ;;  %v2115_v32 = vmax.f32 %v4446_v11, %v4448_v52 }
 0x639   : > { %v4466_v14 = vpop.f32.mrf.mxu0 }
 0x63a   : > { %v2127_v9 = vmax.f32 %v4464_v56, %v4466_v14 }
 0x63c   : > { %2119 = vmax.xlane.f32.xlu0 %v2118_v28  ;;  %2128 = vmax.xlane.f32.xlu1 %v2127_v9  ;;  %v2106_v28 = vmax.f32 %v4434_v29, %v4436_v16  ;;  %v2103_v9 = vmax.f32 %v4428_v58, %v4430_v43 }
 0x640   : > { %2113 = vmax.xlane.f32.xlu0 %v2112_v22  ;;  %2122 = vmax.xlane.f32.xlu1 %v2121_v20  ;;  %v2100_v22 = vmax.f32 %v4422_v41, %v4424_v50  ;;  %v2097_v20 = vmax.f32 %v4416_v23, %v4418_v49 }
 0x644   : > { %2116 = vmax.xlane.f32.xlu1 %v2115_v32  ;;  %v2094_v32 = vmax.f32 %v4408_v8, %v4410_v57 }
 0x648   : > { %2110 = vmax.xlane.f32.xlu1 %v2109_v18  ;;  %v2091_v18 = vmax.f32 %v4400_v13, %v4402_v24 }
 0x64c   : > { %2107 = vmax.xlane.f32.xlu1 %v2106_v28  ;;  %v2088_v28 = vmax.f32 %v4392_v19, %v4394_v26 }
 0x650   : > { %2104 = vmax.xlane.f32.xlu1 %v2103_v9  ;;  %v2085_v9 = vmax.f32 %v4384_v10, %v4386_v15 }
 0x654   : > { %2101 = vmax.xlane.f32.xlu1 %v2100_v22  ;;  %v2082_v22 = vmax.f32 %v4376_v62, %v4378_v21 }
 0x658   : > { %2098 = vmax.xlane.f32.xlu1 %v2097_v20 }
 0x65c   : > { %2095 = vmax.xlane.f32.xlu1 %v2094_v32 }
 0x660   : > { %2092 = vmax.xlane.f32.xlu1 %v2091_v18 }
 0x664   : > { %2089 = vmax.xlane.f32.xlu1 %v2088_v28 }
 0x668   : > { %2086 = vmax.xlane.f32.xlu1 %v2085_v9 }
 0x66c   : > { %2083 = vmax.xlane.f32.xlu1 %v2082_v22 }
 0x681   : > { %v2078_v20 = vpop.xlane.xlu1 %2077 }
 0x682   : > { %v2158_v57 = vsub.f32 %v4362_v12, %v2078_v20  ;;  %v2159_v32 = vsub.f32 %v4364_v39, %v2078_v20 }
 0x684   : > { %v2250_v28 = vmul.f32 1.442695, %v2158_v57  ;;  %v2252_v15 = vmul.f32 1.442695, %v2159_v32 }
 0x685   : > { %v2081_v8 = vpop.xlane.xlu0 %2080  ;;  %v2069_v24 = vpop.xlane.xlu1 %2068 }
 0x686   : > { %v2160_v18 = vsub.f32 %v4368_v44, %v2081_v8  ;;  %v2161_v26 = vsub.f32 %v4370_v27, %v2081_v8  ;;  %v2152_v27 = vsub.f32 %v4350_v53, %v2069_v24 }
 0x688   : > { %v2254_v19 = vmul.f32 1.442695, %v2160_v18  ;;  %v2256_v13 = vmul.f32 1.442695, %v2161_v26  ;;  %v2238_v32 = vmul.f32 1.442695, %v2152_v27 }
 0x689   : > { %v2075_v9 = vpop.xlane.xlu0 %2074  ;;  %v2063_v10 = vpop.xlane.xlu1 %2062 }
 0x68a   : > { %3136 = vpow2.f32 %v2254_v19  ;;  %v2156_v22 = vsub.f32 %v4358_v31, %v2075_v9  ;;  %v2157_v21 = vsub.f32 %v4360_v61, %v2075_v9  ;;  %v2153_v19 = vsub.f32 %v4352_v4, %v2069_v24 }
 0x68b   : > { %3138 = vpow2.f32 %v2256_v13  ;;  %v2148_v9 = vsub.f32 %v4342_v51, %v2063_v10 }
 0x68c   : > { %3140 = vpow2.f32 %v2250_v28  ;;  %v2246_v12 = vmul.f32 1.442695, %v2156_v22  ;;  %v2248_v39 = vmul.f32 1.442695, %v2157_v21  ;;  %v2240_v18 = vmul.f32 1.442695, %v2153_v19 }
 0x68d   : > { %3142 = vpow2.f32 %v2252_v15  ;;  %v2072_v20 = vpop.xlane.xlu0 %2071  ;;  %v4504_v44 = vpop.xlane.xlu1 %2056  ;;  %v2230_v19 = vmul.f32 1.442695, %v2148_v9 }
 0x68e   : > { %v2154_v26 = vsub.f32 %v4354_v38, %v2072_v20  ;;  %v2155_v8 = vsub.f32 %v4356_v2, %v2072_v20  ;;  %3144 = vpow2.f32 %v2246_v12 }
 0x68f   : > { %3146 = vpow2.f32 %v2248_v39 }
 0x690   : > { %v2242_v31 = vmul.f32 1.442695, %v2154_v26  ;;  %v2244_v61 = vmul.f32 1.442695, %v2155_v8 }
 0x691   : > { %v2066_v13 = vpop.xlane.xlu0 %2065  ;;  %v2051_v57 = vpop.xlane.xlu1 %2050 }
 0x692   : > { %v2150_v21 = vsub.f32 %v4346_v35, %v2066_v13  ;;  %v2140_v15 = vsub.f32 %v4326_v17, %v2051_v57  ;;  %v2151_v53 = vsub.f32 %v4348_v1, %v2066_v13  ;;  %v2141_v38 = vsub.f32 %v4328_v47, %v2051_v57 }
 0x693   : > { %3148 = vpow2.f32 %v2242_v31  ;;  %v2149_v17 = vsub.f32 %v4344_v7, %v2063_v10 }
 0x694   : > { %v2214_v2 = vmul.f32 1.442695, %v2140_v15  ;;  %3150 = vpow2.f32 %v2244_v61  ;;  %v2216_v4 = vmul.f32 1.442695, %v2141_v38  ;;  %v2234_v22 = vmul.f32 1.442695, %v2150_v21 }
 0x695   : > { %v2060_v24 = vpop.xlane.xlu0 %2059  ;;  %v2045_v28 = vpop.xlane.xlu1 %2044  ;;  %3152 = vpow2.f32 %v2238_v32  ;;  %v2236_v1 = vmul.f32 1.442695, %v2151_v53  ;;  %v2232_v10 = vmul.f32 1.442695, %v2149_v17 }
 0x696   : > { %v2136_v12 = vsub.f32 %v4318_v25, %v2045_v28  ;;  %3154 = vpow2.f32 %v2240_v18  ;;  %v2137_v47 = vsub.f32 %v4320_v6, %v2045_v28  ;;  %v2146_v61 = vsub.f32 %v4338_v30, %v2060_v24 }
 0x697   : > { %v4516_v35 = vpop.eup %3136  ;;  %3156 = vpow2.f32 %v2214_v2  ;;  %v2147_v32 = vsub.f32 %v4340_v0, %v2060_v24  ;;  %v2145_v0 = vsub.f32 %v4336_v34, %v4504_v44 }
 0x698   : > { %v4520_v39 = vpop.eup %3138  ;;  %v2206_v20 = vmul.f32 1.442695, %v2136_v12  ;;  %3158 = vpow2.f32 %v2216_v4  ;;  %v2208_v26 = vmul.f32 1.442695, %v2137_v47  ;;  %v2226_v30 = vmul.f32 1.442695, %v2146_v61 }
 0x699   : > { %v4522_v27 = vpop.eup %3140  ;;  %v2039_v51 = vpop.xlane.xlu1 %2038  ;;  %v2367_v25 = vadd.f32 %v4520_v39, %v4516_v35  ;;  %3160 = vpow2.f32 %v2234_v22  ;;  %v2228_v53 = vmul.f32 1.442695, %v2147_v32  ;;  %v2224_v34 = vmul.f32 1.442695, %v2145_v0  ;;  %v5107_v32 = vld [vmem:[#allocation6_spill] sm:$0xff] }
 0x69a   : > { %v4526_v8 = vpop.eup %3142  ;;  %v2132_v7 = vsub.f32 %v4310_v59, %v2039_v51  ;;  %3162 = vpow2.f32 %v2236_v1  ;;  %v2054_v6 = vpop.xlane.xlu0 %2053  ;;  %v2133_v31 = vsub.f32 %v4312_v46, %v2039_v51  ;;  %v2144_v46 = vsub.f32 %v4334_v36, %v4504_v44 }
 0x69b   : > { %2368 = vadd.xlane.f32.xlu0 %v2367_v25  ;;  %3164 = vpow2.f32 %v2206_v20  ;;  %v4531_v57 = vpop.eup %3144  ;;  %v2364_v15 = vadd.f32 %v4526_v8, %v4522_v27  ;;  %v2142_v9 = vsub.f32 %v4330_v48, %v2054_v6  ;;  %v2143_v44 = vsub.f32 %v4332_v33, %v2054_v6 }
 0x69c   : > { %v2198_v13 = vmul.f32 1.442695, %v2132_v7  ;;  %3166 = vpow2.f32 %v2208_v26  ;;  %v2200_v21 = vmul.f32 1.442695, %v2133_v31  ;;  %v4536_v59 = vpop.eup %3146  ;;  %v2222_v36 = vmul.f32 1.442695, %v2144_v46 }
 0x69d   : > { %3168 = vpow2.f32 %v2230_v19  ;;  %v2361_v2 = vadd.f32 %v4536_v59, %v4531_v57  ;;  %v2218_v48 = vmul.f32 1.442695, %v2142_v9  ;;  %v2220_v33 = vmul.f32 1.442695, %v2143_v44  ;;  %v5105_v19 = vld [vmem:[#allocation7_spill] sm:$0xff] }
 0x69e   : > { %3170 = vpow2.f32 %v2232_v10  ;;  %v2048_v38 = vpop.xlane.xlu0 %2047 }
 0x69f   : > { %2365 = vadd.xlane.f32.xlu0 %v2364_v15  ;;  %3172 = vpow2.f32 %v2198_v13  ;;  %v2138_v51 = vsub.f32 %v4322_v37, %v2048_v38  ;;  %v2139_v7 = vsub.f32 %v5105_v19, %v2048_v38 }
 0x6a0   : > { %v4540_v18 = vpop.eup %3148  ;;  %3174 = vpow2.f32 %v2200_v21 }
 0x6a1   : > { %v4546_v4 = vpop.eup %3150  ;;  %3176 = vpow2.f32 %v2226_v30  ;;  %v2210_v37 = vmul.f32 1.442695, %v2138_v51  ;;  %v2212_v46 = vmul.f32 1.442695, %v2139_v7  ;;  %v5109_v30 = vld [vmem:[#allocation20_spill] sm:$0xff] }
 0x6a2   : > { %v4548_v24 = vpop.eup %3152  ;;  %3178 = vpow2.f32 %v2228_v53  ;;  %v2358_v12 = vadd.f32 %v4546_v4, %v4540_v18  ;;  %v2042_v47 = vpop.xlane.xlu0 %2041 }
 0x6a3   : > { %2362 = vadd.xlane.f32.xlu0 %v2361_v2  ;;  %v4550_v28 = vpop.eup %3154  ;;  %3180 = vpow2.f32 %v2222_v36  ;;  %v2134_v21 = vsub.f32 %v5107_v32, %v2042_v47  ;;  %v2135_v0 = vsub.f32 %v5109_v30, %v2042_v47  ;;  %v5112_v47 = vld [vmem:[#allocation5_spill] sm:$0xff] }
 0x6a4   : > { %v4553_v22 = vpop.eup %3156  ;;  %3182 = vpow2.f32 %v2224_v34  ;;  %v2355_v10 = vadd.f32 %v4550_v28, %v4548_v24  ;;  %v5111_v34 = vld [vmem:[#allocation17_spill] sm:$0xff] }
 0x6a5   : > { %v4558_v17 = vpop.eup %3158  ;;  %3184 = vpow2.f32 %v2218_v48  ;;  %v2202_v9 = vmul.f32 1.442695, %v2134_v21 }
 0x6a6   : > { %v4560_v1 = vpop.eup %3160  ;;  %v2337_v20 = vadd.f32 %v4558_v17, %v4553_v22  ;;  %3186 = vpow2.f32 %v2220_v33  ;;  %v2036_v53 = vpop.xlane.xlu0 %2035 }
 0x6a7   : > { %2359 = vadd.xlane.f32.xlu0 %v2358_v12  ;;  %v4564_v26 = vpop.eup %3162  ;;  %3188 = vpow2.f32 %v2210_v37  ;;  %v2130_v44 = vsub.f32 %v5111_v34, %v2036_v53  ;;  %v2131_v48 = vsub.f32 %v5112_v47, %v2036_v53 }
 0x6a8   : > { %v4567_v25 = vpop.eup %3164  ;;  %2338 = vadd.xlane.f32.xlu1 %v2337_v20  ;;  %v2352_v38 = vadd.f32 %v4564_v26, %v4560_v1  ;;  %3190 = vpow2.f32 %v2212_v46  ;;  %v2204_v20 = vmul.f32 1.442695, %v2135_v0 }
 0x6a9   : > { %5104 = vst [vmem:[#allocation9_spill] sm:$0xff] %v4567_v25  ;;  %v4572_v6 = vpop.eup %3166  ;;  %3192 = vpow2.f32 %v2202_v9  ;;  %v2194_v19 = vmul.f32 1.442695, %v2130_v44 }
 0x6aa   : > { %5106 = vst [vmem:[#allocation7_spill] sm:$0xff] %v4572_v6  ;;  %v4574_v31 = vpop.eup %3168  ;;  %v2331_v61 = vadd.f32 %v4572_v6, %v4567_v25  ;;  %3194 = vpow2.f32 %v2204_v20 }
 0x6ab   : > { %2356 = vadd.xlane.f32.xlu0 %v2355_v10  ;;  %v4578_v13 = vpop.eup %3170  ;;  %v2196_v10 = vmul.f32 1.442695, %v2131_v48  ;;  %3196 = vpow2.f32 %v2194_v19 }
 0x6ac   : > { %v4581_v15 = vpop.eup %3172  ;;  %2332 = vadd.xlane.f32.xlu1 %v2331_v61  ;;  %v2349_v51 = vadd.f32 %v4578_v13, %v4574_v31 }
 0x6ad   : > { %5108 = vst [vmem:[#allocation6_spill] sm:$0xff] %v4581_v15  ;;  %v4586_v2 = vpop.eup %3174  ;;  %3198 = vpow2.f32 %v2196_v10 }
 0x6ae   : > { %5110 = vst [vmem:[#allocation20_spill] sm:$0xff] %v4586_v2  ;;  %v2325_v36 = vadd.f32 %v4586_v2, %v4581_v15  ;;  %v4591_v12 = vpop.eup %3176  ;;  %v5114_v15 = vld [vmem:[#allocation10_spill] sm:$0xff] }
 0x6af   : > { %2353 = vadd.xlane.f32.xlu0 %v2352_v38  ;;  %v4596_v33 = vpop.eup %3178 }
 0x6b0   : > { %2326 = vadd.xlane.f32.xlu1 %v2325_v36  ;;  %v4598_v7 = vpop.eup %3180  ;;  %v2346_v61 = vadd.f32 %v4596_v33, %v4591_v12 }
 0x6b1   : > { %v4602_v37 = vpop.eup %3182 }
 0x6b2   : > { %v4604_v32 = vpop.eup %3184  ;;  %v2343_v21 = vadd.f32 %v4602_v37, %v4598_v7 }
 0x6b3   : > { %2350 = vadd.xlane.f32.xlu0 %v2349_v51  ;;  %v4608_v46 = vpop.eup %3186 }
 0x6b4   : > { %v4610_v30 = vpop.eup %3188  ;;  %v2340_v0 = vadd.f32 %v4608_v46, %v4604_v32 }
 0x6b5   : > { %v4614_v53 = vpop.eup %3190 }
 0x6b6   : > { %v4616_v38 = vpop.eup %3192  ;;  %v2334_v9 = vadd.f32 %v4614_v53, %v4610_v30 }
 0x6b7   : > { %2347 = vadd.xlane.f32.xlu0 %v2346_v61  ;;  %5113 = vst [vmem:[#allocation17_spill] sm:$0xff] %v4616_v38  ;;  %v4620_v34 = vpop.eup %3194 }
 0x6b8   : > { %v4624_v51 = vpop.eup %3196  ;;  %v2328_v61 = vadd.f32 %v4620_v34, %v4616_v38 }
 0x6bb   : > { %2344 = vadd.xlane.f32.xlu0 %v2343_v21  ;;  %v4628_v21 = vpop.eup %3198 }
 0x6bc   : > { %v2322_v38 = vadd.f32 %v4628_v21, %v4624_v51 }
 0x6bf   : > { %2341 = vadd.xlane.f32.xlu0 %v2340_v0 }
 0x6c1   : > { %v2126_v36 = vpop.xlane.xlu0 %2125 }
 0x6c2   : > { %v2190_v44 = vsub.f32 %v4458_v42, %v2126_v36  ;;  %v2191_v20 = vsub.f32 %v4460_v5, %v2126_v36 }
 0x6c3   : > { %2335 = vadd.xlane.f32.xlu0 %v2334_v9 }
 0x6c4   : > { %v2314_v47 = vmul.f32 1.442695, %v2190_v44  ;;  %v2316_v48 = vmul.f32 1.442695, %v2191_v20 }
 0x6c5   : > { %v2120_v19 = vpop.xlane.xlu0 %2119  ;;  %v2129_v10 = vpop.xlane.xlu1 %2128 }
 0x6c6   : > { %3200 = vpow2.f32 %v2314_v47  ;;  %v2186_v0 = vsub.f32 %v4450_v63, %v2120_v19  ;;  %v2187_v2 = vsub.f32 %v5114_v15, %v2120_v19  ;;  %v2192_v42 = vsub.f32 %v4464_v56, %v2129_v10 }
 0x6c7   : > { %3202 = vpow2.f32 %v2316_v48  ;;  %v2193_v5 = vsub.f32 %v4466_v14, %v2129_v10  ;;  %2329 = vadd.xlane.f32.xlu0 %v2328_v61 }
 0x6c8   : > { %v2306_v36 = vmul.f32 1.442695, %v2186_v0  ;;  %v2308_v9 = vmul.f32 1.442695, %v2187_v2  ;;  %v2318_v44 = vmul.f32 1.442695, %v2192_v42 }
 0x6c9   : > { %v2320_v20 = vmul.f32 1.442695, %v2193_v5  ;;  %v2114_v25 = vpop.xlane.xlu0 %2113  ;;  %v2123_v6 = vpop.xlane.xlu1 %2122 }
 0x6ca   : > { %3204 = vpow2.f32 %v2306_v36  ;;  %v2182_v63 = vsub.f32 %v4442_v54, %v2114_v25  ;;  %v2183_v15 = vsub.f32 %v4444_v60, %v2114_v25  ;;  %v2188_v56 = vsub.f32 %v4454_v3, %v2123_v6 }
 0x6cb   : > { %3206 = vpow2.f32 %v2308_v9  ;;  %v2189_v14 = vsub.f32 %v4456_v45, %v2123_v6  ;;  %2323 = vadd.xlane.f32.xlu0 %v2322_v38 }
 0x6cc   : > { %3208 = vpow2.f32 %v2318_v44  ;;  %v2298_v2 = vmul.f32 1.442695, %v2182_v63  ;;  %v2300_v47 = vmul.f32 1.442695, %v2183_v15  ;;  %v2310_v48 = vmul.f32 1.442695, %v2188_v56 }
 0x6cd   : > { %3210 = vpow2.f32 %v2320_v20  ;;  %v2312_v19 = vmul.f32 1.442695, %v2189_v14  ;;  %v2117_v10 = vpop.xlane.xlu1 %2116 }
 0x6ce   : > { %3212 = vpow2.f32 %v2298_v2  ;;  %v2184_v61 = vsub.f32 %v4446_v11, %v2117_v10  ;;  %v2185_v54 = vsub.f32 %v4448_v52, %v2117_v10 }
 0x6cf   : > { %3214 = vpow2.f32 %v2300_v47 }
 0x6d0   : > { %3216 = vpow2.f32 %v2310_v48  ;;  %v2302_v60 = vmul.f32 1.442695, %v2184_v61  ;;  %v2304_v3 = vmul.f32 1.442695, %v2185_v54 }
 0x6d1   : > { %3218 = vpow2.f32 %v2312_v19  ;;  %v2111_v25 = vpop.xlane.xlu1 %2110 }
 0x6d2   : > { %3220 = vpow2.f32 %v2302_v60  ;;  %v2180_v45 = vsub.f32 %v4438_v55, %v2111_v25  ;;  %v2181_v6 = vsub.f32 %v4440_v40, %v2111_v25 }
 0x6d3   : > { %v4644_v38 = vpop.eup %3200  ;;  %3222 = vpow2.f32 %v2304_v3 }
 0x6d4   : > { %v4646_v0 = vpop.eup %3202  ;;  %v2294_v42 = vmul.f32 1.442695, %v2180_v45  ;;  %v2296_v11 = vmul.f32 1.442695, %v2181_v6 }
 0x6d5   : > { %v2108_v5 = vpop.xlane.xlu1 %2107  ;;  %v2412_v52 = vadd.f32 %v4646_v0, %v4644_v38 }
 0x6d6   : > { %3224 = vpow2.f32 %v2294_v42  ;;  %v2178_v36 = vsub.f32 %v4434_v29, %v2108_v5  ;;  %v2179_v9 = vsub.f32 %v4436_v16, %v2108_v5 }
 0x6d7   : > { %v4652_v44 = vpop.eup %3204  ;;  %3226 = vpow2.f32 %v2296_v11  ;;  %2413 = vadd.xlane.f32.xlu0 %v2412_v52 }
 0x6d8   : > { %v4654_v55 = vpop.eup %3206  ;;  %v2290_v40 = vmul.f32 1.442695, %v2178_v36  ;;  %v2292_v20 = vmul.f32 1.442695, %v2179_v9 }
 0x6d9   : > { %v4656_v63 = vpop.eup %3208  ;;  %v2105_v15 = vpop.xlane.xlu1 %2104  ;;  %v2406_v56 = vadd.f32 %v4654_v55, %v4652_v44 }
 0x6da   : > { %v4660_v14 = vpop.eup %3210  ;;  %3228 = vpow2.f32 %v2290_v40  ;;  %v2176_v29 = vsub.f32 %v4428_v58, %v2105_v15  ;;  %v2177_v16 = vsub.f32 %v4430_v43, %v2105_v15 }
 0x6db   : > { %v4664_v2 = vpop.eup %3212  ;;  %3230 = vpow2.f32 %v2292_v20  ;;  %2407 = vadd.xlane.f32.xlu0 %v2406_v56  ;;  %v2415_v47 = vadd.f32 %v4660_v14, %v4656_v63 }
 0x6dc   : > { %v4668_v48 = vpop.eup %3214  ;;  %v2286_v19 = vmul.f32 1.442695, %v2176_v29  ;;  %v2288_v10 = vmul.f32 1.442695, %v2177_v16  ;;  %v5115_v29 = vld [vmem:[#allocation12_spill] sm:$0xff] }
 0x6dd   : > { %v4670_v61 = vpop.eup %3216  ;;  %2416 = vadd.xlane.f32.xlu1 %v2415_v47  ;;  %v2102_v54 = vpop.xlane.xlu1 %2101  ;;  %v2400_v58 = vadd.f32 %v4668_v48, %v4664_v2  ;;  %v5116_v47 = vld [vmem:[#allocation11_spill] sm:$0xff] }
 0x6de   : > { %v4674_v60 = vpop.eup %3218  ;;  %3232 = vpow2.f32 %v2286_v19  ;;  %v2174_v43 = vsub.f32 %v4422_v41, %v2102_v54  ;;  %v2175_v3 = vsub.f32 %v4424_v50, %v2102_v54 }
 0x6df   : > { %v4678_v25 = vpop.eup %3220  ;;  %3234 = vpow2.f32 %v2288_v10  ;;  %2401 = vadd.xlane.f32.xlu0 %v2400_v58  ;;  %v2409_v45 = vadd.f32 %v4674_v60, %v4670_v61 }
 0x6e0   : > { %v4682_v6 = vpop.eup %3222  ;;  %v2282_v42 = vmul.f32 1.442695, %v2174_v43  ;;  %v2284_v11 = vmul.f32 1.442695, %v2175_v3  ;;  %v5117_v3 = vld [vmem:[#allocation28_spill] sm:$0xff] }
 0x6e1   : > { %2410 = vadd.xlane.f32.xlu1 %v2409_v45  ;;  %v2099_v5 = vpop.xlane.xlu1 %2098  ;;  %v2403_v52 = vadd.f32 %v4682_v6, %v4678_v25 }
 0x6e2   : > { %3236 = vpow2.f32 %v2282_v42  ;;  %v2172_v41 = vsub.f32 %v4416_v23, %v2099_v5  ;;  %v2173_v50 = vsub.f32 %v4418_v49, %v2099_v5  ;;  %v5118_v42 = vld [vmem:[#allocation27_spill] sm:$0xff] }
 0x6e3   : > { %v4688_v36 = vpop.eup %3224  ;;  %3238 = vpow2.f32 %v2284_v11 }
 0x6e4   : > { %v4690_v9 = vpop.eup %3226  ;;  %v2278_v40 = vmul.f32 1.442695, %v2172_v41  ;;  %v2280_v20 = vmul.f32 1.442695, %v2173_v50 }
 0x6e5   : > { %2404 = vadd.xlane.f32.xlu1 %v2403_v52  ;;  %v2096_v15 = vpop.xlane.xlu1 %2095  ;;  %v2397_v56 = vadd.f32 %v4690_v9, %v4688_v36 }
 0x6e6   : > { %3240 = vpow2.f32 %v2278_v40  ;;  %v2170_v16 = vsub.f32 %v5115_v29, %v2096_v15  ;;  %v2171_v19 = vsub.f32 %v5116_v47, %v2096_v15  ;;  %v5119_v15 = vld [vmem:[#allocation30_spill] sm:$0xff]  ;;  %v5120_v29 = vld [vmem:[#allocation29_spill] sm:$0xff] }
 0x6e7   : > { %v4696_v23 = vpop.eup %3228  ;;  %3242 = vpow2.f32 %v2280_v20 }
 0x6e8   : > { %v4698_v49 = vpop.eup %3230  ;;  %v2274_v10 = vmul.f32 1.442695, %v2170_v16  ;;  %v2276_v54 = vmul.f32 1.442695, %v2171_v19 }
 0x6e9   : > { %2398 = vadd.xlane.f32.xlu1 %v2397_v56  ;;  %v2093_v58 = vpop.xlane.xlu1 %2092  ;;  %v2394_v43 = vadd.f32 %v4698_v49, %v4696_v23 }
 0x6ea   : > { %3244 = vpow2.f32 %v2274_v10  ;;  %v2168_v45 = vsub.f32 %v5117_v3, %v2093_v58  ;;  %v2169_v11 = vsub.f32 %v5118_v42, %v2093_v58  ;;  %v5121_v3 = vld [vmem:[#allocation31_spill] sm:$0xff]  ;;  %v5122_v42 = vld [vmem:[#allocation18_spill] sm:$0xff] }
 0x6eb   : > { %v4704_v5 = vpop.eup %3232  ;;  %3246 = vpow2.f32 %v2276_v54  ;;  %2395 = vadd.xlane.f32.xlu0 %v2394_v43 }
 0x6ec   : > { %v4706_v52 = vpop.eup %3234  ;;  %v2270_v41 = vmul.f32 1.442695, %v2168_v45  ;;  %v2272_v50 = vmul.f32 1.442695, %v2169_v11 }
 0x6ed   : > { %v2090_v40 = vpop.xlane.xlu1 %2089  ;;  %v2391_v20 = vadd.f32 %v4706_v52, %v4704_v5 }
 0x6ee   : > { %3248 = vpow2.f32 %v2270_v41  ;;  %v2166_v56 = vsub.f32 %v5119_v15, %v2090_v40  ;;  %v2167_v16 = vsub.f32 %v5120_v29, %v2090_v40 }
 0x6ef   : > { %v4712_v47 = vpop.eup %3236  ;;  %3250 = vpow2.f32 %v2272_v50  ;;  %2392 = vadd.xlane.f32.xlu1 %v2391_v20 }
 0x6f0   : > { %v4714_v19 = vpop.eup %3238  ;;  %v2266_v10 = vmul.f32 1.442695, %v2166_v56  ;;  %v2268_v54 = vmul.f32 1.442695, %v2167_v16  ;;  %v5123_v16 = vld [vmem:[#allocation8_spill] sm:$0xff] }
 0x6f1   : > { %v2087_v58 = vpop.xlane.xlu1 %2086  ;;  %v2388_v43 = vadd.f32 %v4714_v19, %v4712_v47 }
 0x6f2   : > { %3252 = vpow2.f32 %v2266_v10  ;;  %v2164_v45 = vsub.f32 %v5121_v3, %v2087_v58  ;;  %v2165_v11 = vsub.f32 %v5122_v42, %v2087_v58 }
 0x6f3   : > { %v4720_v41 = vpop.eup %3240  ;;  %3254 = vpow2.f32 %v2268_v54  ;;  %2389 = vadd.xlane.f32.xlu0 %v2388_v43 }
 0x6f4   : > { %v4722_v40 = vpop.eup %3242  ;;  %v2262_v50 = vmul.f32 1.442695, %v2164_v45  ;;  %v2264_v20 = vmul.f32 1.442695, %v2165_v11 }
 0x6f5   : > { %v2084_v15 = vpop.xlane.xlu1 %2083  ;;  %v2385_v56 = vadd.f32 %v4722_v40, %v4720_v41 }
 0x6f6   : > { %3256 = vpow2.f32 %v2262_v50  ;;  %v2162_v29 = vsub.f32 %v4376_v62, %v2084_v15  ;;  %v2163_v10 = vsub.f32 %v5123_v16, %v2084_v15 }
 0x6f7   : > { %v4728_v3 = vpop.eup %3244  ;;  %3258 = vpow2.f32 %v2264_v20  ;;  %2386 = vadd.xlane.f32.xlu1 %v2385_v56 }
 0x6f8   : > { %v4730_v58 = vpop.eup %3246  ;;  %v2258_v54 = vmul.f32 1.442695, %v2162_v29  ;;  %v2260_v43 = vmul.f32 1.442695, %v2163_v10 }
 0x6f9   : > { %v2382_v45 = vadd.f32 %v4730_v58, %v4728_v3 }
 0x6fa   : > { %3260 = vpow2.f32 %v2258_v54 }
 0x6fb   : > { %v4734_v42 = vpop.eup %3248  ;;  %3262 = vpow2.f32 %v2260_v43  ;;  %2383 = vadd.xlane.f32.xlu0 %v2382_v45  ;;  %v253_v45 = vld [vmem:[%s4945_s2 + $0x50] sm:$0xff] }
 0x6fc   : > { %v4736_v11 = vpop.eup %3250 }
 0x6fd   : > { %v2379_v62 = vadd.f32 %v4736_v11, %v4734_v42 }
 0x6ff   : > { %v4740_v50 = vpop.eup %3252  ;;  %2380 = vadd.xlane.f32.xlu1 %v2379_v62  ;;  %v489_v62 = vld [vmem:[%s4947_s4] sm:$0xff] }
 0x700   : > { %5124 = vst [vmem:[#allocation5_spill] sm:$0xff] %v4740_v50  ;;  %v4742_v20 = vpop.eup %3254 }
 0x701   : > { %5125 = vst [vmem:[#allocation10_spill] sm:$0xff] %v4742_v20  ;;  %v2376_v15 = vadd.f32 %v4742_v20, %v4740_v50 }
 0x703   : > { %v4746_v56 = vpop.eup %3256  ;;  %2377 = vadd.xlane.f32.xlu0 %v2376_v15  ;;  %v490_v15 = vld [vmem:[%s4947_s4 + $0x8] sm:$0xff] }
 0x704   : > { %5126 = vst [vmem:[#allocation12_spill] sm:$0xff] %v4746_v56  ;;  %v4748_v29 = vpop.eup %3258 }
 0x705   : > { %5127 = vst [vmem:[#allocation11_spill] sm:$0xff] %v4748_v29  ;;  %v2373_v16 = vadd.f32 %v4748_v29, %v4746_v56 }
 0x707   : > { %v4752_v10 = vpop.eup %3260  ;;  %2374 = vadd.xlane.f32.xlu1 %v2373_v16  ;;  %v254_v16 = vld [vmem:[%s4945_s2 + $0x58] sm:$0xff] }
 0x708   : > { %5128 = vst [vmem:[#allocation28_spill] sm:$0xff] %v4752_v10  ;;  %v4754_v54 = vpop.eup %3262 }
 0x709   : > { %5129 = vst [vmem:[#allocation27_spill] sm:$0xff] %v4754_v54  ;;  %v2370_v43 = vadd.f32 %v4754_v54, %v4752_v10 }
 0x70b   : > { %2371 = vadd.xlane.f32.xlu0 %v2370_v43  ;;  %v492_v43 = vld [vmem:[%s4947_s4 + $0x18] sm:$0xff] }
 0x718   : > { %307 = vperm.xlu1 %2943, %v253_v45   ;;  %v491_v45 = vld [vmem:[%s4947_s4 + $0x10] sm:$0xff] }
 0x71c   : > { %495 = vperm.xlu1 %2943, %v489_v62  }
 0x720   : > { %500 = vperm.xlu1 %2943, %v490_v15  }
 0x721   : > { %312 = vperm.xlu0 %2942, %v254_v16  }
 0x724   : > { %v2369_v10 = vpop.xlane.xlu0 %2368  ;;  %510 = vperm.xlu1 %2943, %v492_v43  }
 0x725   : > { %3264 = vrcp.f32 %v2369_v10  ;;  %505 = vperm.xlu0 %2942, %v491_v45  }
 0x728   : > { %v2366_v62 = vpop.xlane.xlu0 %2365 }
 0x729   : > { %3266 = vrcp.f32 %v2366_v62 }
 0x72c   : > { %v2363_v54 = vpop.xlane.xlu0 %2362 }
 0x72d   : > { %3268 = vrcp.f32 %v2363_v54 }
 0x730   : > { %v2360_v56 = vpop.xlane.xlu0 %2359 }
 0x731   : > { %3270 = vrcp.f32 %v2360_v56 }
 0x732   : > { %v3265_v15 = vpop.eup %3264 }
 0x733   : > { %v2481_v16 = vmul.f32 %v3265_v15, %v4520_v39  ;;  %v2480_v29 = vmul.f32 %v3265_v15, %v4516_v35 }
 0x734   : > { %v2357_v50 = vpop.xlane.xlu0 %2356 }
 0x735   : > { %3272 = vrcp.f32 %v2357_v50  ;;  %2514 = vmatprep.subr.mxu0 %v2481_v16 }
 0x736   : > { %v3267_v20 = vpop.eup %3266  ;;  %2515 = vmatpush1.xpose.msra.mxu0 %v2480_v29 }
 0x737   : > { %v2479_v43 = vmul.f32 %v3267_v20, %v4526_v8  ;;  %v2478_v10 = vmul.f32 %v3267_v20, %v4522_v27 }
 0x738   : > { %v2354_v45 = vpop.xlane.xlu0 %2353 }
 0x739   : > { %3274 = vrcp.f32 %v2354_v45  ;;  %2516 = vmatprep.subr.mxu0 %v2479_v43 }
 0x73a   : > { %v3269_v54 = vpop.eup %3268  ;;  %2517 = vmatpush1.xpose.msra.mxu0 %v2478_v10 }
 0x73b   : > { %v2477_v56 = vmul.f32 %v3269_v54, %v4536_v59  ;;  %v2476_v39 = vmul.f32 %v3269_v54, %v4531_v57  ;;  %v2339_v57 = vpop.xlane.xlu1 %2338 }
 0x73c   : > { %v2351_v62 = vpop.xlane.xlu0 %2350 }
 0x73d   : > { %3276 = vrcp.f32 %v2351_v62  ;;  %2518 = vmatprep.subr.mxu0 %v2477_v56 }
 0x73e   : > { %v3271_v35 = vpop.eup %3270  ;;  %2519 = vmatpush1.xpose.msra.mxu0 %v2476_v39 }
 0x73f   : > { %v2475_v50 = vmul.f32 %v3271_v35, %v4546_v4  ;;  %v2474_v8 = vmul.f32 %v3271_v35, %v4540_v18  ;;  %v2333_v56 = vpop.xlane.xlu1 %2332 }
 0x740   : > { %v2348_v29 = vpop.xlane.xlu0 %2347 }
 0x741   : > { %3278 = vrcp.f32 %v2348_v29  ;;  %2520 = vmatprep.subr.mxu0 %v2475_v50 }
 0x742   : > { %v3273_v27 = vpop.eup %3272  ;;  %2521 = vmatpush1.xpose.msra.mxu0 %v2474_v8 }
 0x743   : > { %v2473_v20 = vmul.f32 %v3273_v27, %v4550_v28  ;;  %v2472_v59 = vmul.f32 %v3273_v27, %v4548_v24  ;;  %v2327_v8 = vpop.xlane.xlu1 %2326 }
 0x744   : > { %v2345_v15 = vpop.xlane.xlu0 %2344 }
 0x745   : > { %3280 = vrcp.f32 %v2345_v15  ;;  %2522 = vmatprep.subr.mxu0 %v2473_v20  ;;  %v5130_v15 = vld [vmem:[#allocation7_spill] sm:$0xff] }
 0x746   : > { %v3275_v16 = vpop.eup %3274  ;;  %2523 = vmatpush1.xpose.msra.mxu0 %v2472_v59  ;;  %3282 = vrcp.f32 %v2339_v57 }
 0x747   : > { %v2471_v43 = vmul.f32 %v3275_v16, %v4564_v26  ;;  %v2470_v4 = vmul.f32 %v3275_v16, %v4560_v1 }
 0x748   : > { %v2342_v18 = vpop.xlane.xlu0 %2341 }
 0x749   : > { %3284 = vrcp.f32 %v2342_v18  ;;  %2524 = vmatprep.subr.mxu0 %v2471_v43 }
 0x74a   : > { %v3277_v10 = vpop.eup %3276  ;;  %2525 = vmatpush1.xpose.msra.mxu0 %v2470_v4 }
 0x74b   : > { %v2469_v28 = vmul.f32 %v3277_v10, %v4578_v13  ;;  %v2468_v24 = vmul.f32 %v3277_v10, %v4574_v31 }
 0x74c   : > { %v2336_v45 = vpop.xlane.xlu0 %2335 }
 0x74d   : > { %3286 = vrcp.f32 %v2336_v45  ;;  %2526 = vmatprep.subr.mxu0 %v2469_v28  ;;  %v5133_v28 = vld [vmem:[#allocation20_spill] sm:$0xff] }
 0x74e   : > { %v3279_v54 = vpop.eup %3278  ;;  %2527 = vmatpush1.xpose.msra.mxu0 %v2468_v24  ;;  %3288 = vrcp.f32 %v2333_v56  ;;  %v5134_v56 = vld [vmem:[#allocation6_spill] sm:$0xff] }
 0x74f   : > { %v2467_v26 = vmul.f32 %v3279_v54, %v4596_v33  ;;  %v2466_v1 = vmul.f32 %v3279_v54, %v4591_v12 }
 0x750   : > { %v2330_v62 = vpop.xlane.xlu0 %2329 }
 0x751   : > { %2528 = vmatprep.subr.mxu0 %v2467_v26  ;;  %3290 = vrcp.f32 %v2330_v62 }
 0x752   : > { %v3281_v39 = vpop.eup %3280  ;;  %2529 = vmatpush1.xpose.msra.mxu0 %v2466_v1  ;;  %3292 = vrcp.f32 %v2327_v8 }
 0x753   : > { %v2465_v35 = vmul.f32 %v3281_v39, %v4602_v37  ;;  %v2464_v13 = vmul.f32 %v3281_v39, %v4598_v7  ;;  %v3283_v31 = vpop.eup %3282 }
 0x754   : > { %v2461_v12 = vmul.f32 %v3283_v31, %v4558_v17  ;;  %v2324_v20 = vpop.xlane.xlu0 %2323  ;;  %v2460_v7 = vmul.f32 %v3283_v31, %v4553_v22  ;;  %v5131_v17 = vld [vmem:[#allocation9_spill] sm:$0xff] }
 0x755   : > { %2530 = vmatprep.subr.mxu0 %v2465_v35  ;;  %3294 = vrcp.f32 %v2324_v20 }
 0x756   : > { %v3285_v50 = vpop.eup %3284  ;;  %2531 = vmatpush1.xpose.msra.mxu0 %v2464_v13 }
 0x757   : > { %v2463_v29 = vmul.f32 %v3285_v50, %v4608_v46  ;;  %v2462_v33 = vmul.f32 %v3285_v50, %v4604_v32 }
 0x759   : > { %2532 = vmatprep.subr.mxu0 %v2463_v29 }
 0x75a   : > { %v3287_v27 = vpop.eup %3286  ;;  %2533 = vmatpush1.xpose.msra.mxu0 %v2462_v33 }
 0x75b   : > { %2534 = vmatprep.subr.mxu0 %v2461_v12  ;;  %v2459_v37 = vmul.f32 %v3287_v27, %v4614_v53  ;;  %v3289_v59 = vpop.eup %3288  ;;  %v2458_v46 = vmul.f32 %v3287_v27, %v4610_v30  ;;  %v5132_v53 = vld [vmem:[#allocation17_spill] sm:$0xff] }
 0x75c   : > { %v2457_v32 = vmul.f32 %v3289_v59, %v5130_v15  ;;  %v2456_v43 = vmul.f32 %v3289_v59, %v5131_v17 }
 0x75e   : > { %2535 = vmatpush1.xpose.msra.mxu0 %v2460_v7  ;;  %v3291_v57 = vpop.eup %3290 }
 0x75f   : > { %2536 = vmatprep.subr.mxu0 %v2459_v37  ;;  %v2455_v4 = vmul.f32 %v3291_v57, %v4620_v34  ;;  %v3293_v18 = vpop.eup %3292  ;;  %v2454_v10 = vmul.f32 %v3291_v57, %v5132_v53 }
 0x760   : > { %v2414_v16 = vpop.xlane.xlu0 %2413  ;;  %v2453_v30 = vmul.f32 %v3293_v18, %v5133_v28  ;;  %v2452_v26 = vmul.f32 %v3293_v18, %v5134_v56  ;;  %v5136_v56 = vld [vmem:[#allocation10_spill] sm:$0xff] }
 0x761   : > { %3296 = vrcp.f32 %v2414_v16 }
 0x762   : > { %2537 = vmatpush1.xpose.msra.mxu0 %v2458_v46  ;;  %v3295_v24 = vpop.eup %3294 }
 0x763   : > { %2538 = vmatprep.subr.mxu0 %v2457_v32  ;;  %v2451_v34 = vmul.f32 %v3295_v24, %v4628_v21  ;;  %v2450_v39 = vmul.f32 %v3295_v24, %v4624_v51 }
 0x764   : > { %v2408_v54 = vpop.xlane.xlu0 %2407 }
 0x766   : > { %v2417_v22 = vpop.xlane.xlu1 %2416  ;;  %2539 = vmatpush1.xpose.msra.mxu0 %v2456_v43 }
 0x767   : > { %3298 = vrcp.f32 %v2417_v22  ;;  %2540 = vmatprep.subr.mxu0 %v2455_v4  ;;  %v5135_v22 = vld [vmem:[#allocation14_spill] sm:$0xff] }
 0x768   : > { %v2402_v13 = vpop.xlane.xlu0 %2401 }
 0x76a   : > { %v2411_v45 = vpop.xlane.xlu1 %2410  ;;  %2541 = vmatpush1.xpose.msra.mxu0 %v2454_v10 }
 0x76b   : > { %3300 = vrcp.f32 %v2411_v45  ;;  %2542 = vmatprep.subr.mxu0 %v2453_v30 }
 0x76c   : > { %3302 = vrcp.f32 %v2408_v54 }
 0x76e   : > { %2543 = vmatpush1.xpose.msra.mxu0 %v2452_v26  ;;  %v2405_v1 = vpop.xlane.xlu1 %2404  ;;  %v3297_v62 = vpop.eup %3296 }
 0x76f   : > { %2544 = vmatprep.subr.mxu0 %v2451_v34  ;;  %3304 = vrcp.f32 %v2405_v1  ;;  %v2511_v8 = vmul.f32 %v3297_v62, %v4646_v0  ;;  %v2510_v33 = vmul.f32 %v3297_v62, %v4644_v38 }
 0x770   : > { %3306 = vrcp.f32 %v2402_v13 }
 0x772   : > { %2545 = vmatpush1.xpose.msra.mxu0 %v2450_v39  ;;  %v2399_v29 = vpop.xlane.xlu1 %2398 }
 0x773   : > { %3308 = vrcp.f32 %v2399_v29  ;;  %v5143_v29 = vld [vmem:[#allocation16_spill] sm:$0xff] }
 0x774   : > { %v3299_v35 = vpop.eup %3298  ;;  %v2396_v27 = vpop.xlane.xlu0 %2395 }
 0x775   : > { %v2513_v31 = vmul.f32 %v3299_v35, %v4660_v14  ;;  %v2512_v50 = vmul.f32 %v3299_v35, %v4656_v63  ;;  %3310 = vrcp.f32 %v2396_v27 }
 0x777   : > { %2546 = vmatprep.subr.mxu0 %v2513_v31  ;;  %v5141_v31 = vld [vmem:[#allocation28_spill] sm:$0xff] }
 0x778   : > { %v3301_v21 = vpop.eup %3300  ;;  %2547 = vmatpush2.xpose.msra.mxu0 %v2512_v50  ;;  %v2393_v0 = vpop.xlane.xlu1 %2392 }
 0x779   : > { %2548 = vmatprep.subr.mxu0 %v2511_v8  ;;  %v2509_v51 = vmul.f32 %v3301_v21, %v4674_v60  ;;  %v3303_v12 = vpop.eup %3302  ;;  %v2508_v14 = vmul.f32 %v3301_v21, %v4670_v61  ;;  %3312 = vrcp.f32 %v2393_v0  ;;  %v5142_v8 = vld [vmem:[#allocation13_spill] sm:$0xff] }
 0x77a   : > { %v2507_v63 = vmul.f32 %v3303_v12, %v4654_v55  ;;  %v2506_v7 = vmul.f32 %v3303_v12, %v4652_v44  ;;  %v2876_v0 = vld [vmem:[%s4946_s3 + $0x20] sm:$0xff] }
 0x77c   : > { %2549 = vmatpush2.xpose.msra.mxu0 %v2510_v33  ;;  %v3305_v20 = vpop.eup %3304  ;;  %v2390_v60 = vpop.xlane.xlu0 %2389 }
 0x77d   : > { %2550 = vmatprep.subr.mxu0 %v2509_v51  ;;  %v2505_v38 = vmul.f32 %v3305_v20, %v4682_v6  ;;  %v3307_v37 = vpop.eup %3306  ;;  %v2504_v59 = vmul.f32 %v3305_v20, %v4678_v25  ;;  %3314 = vrcp.f32 %v2390_v60  ;;  %v5144_v51 = vld [vmem:[#allocation15_spill] sm:$0xff]  ;;  %v2879_v60 = vld [vmem:[%s4946_s3 + $0x38] sm:$0xff] }
 0x77e   : > { %v2503_v61 = vmul.f32 %v3307_v37, %v4668_v48  ;;  %v2502_v15 = vmul.f32 %v3307_v37, %v4664_v2  ;;  %v2878_v37 = vld [vmem:[%s4946_s3 + $0x30] sm:$0xff] }
 0x780   : > { %2551 = vmatpush2.xpose.msra.mxu0 %v2508_v14  ;;  %v3309_v46 = vpop.eup %3308  ;;  %v2387_v55 = vpop.xlane.xlu1 %2386 }
 0x781   : > { %2552 = vmatprep.subr.mxu0 %v2507_v63  ;;  %3316 = vrcp.f32 %v2387_v55  ;;  %v2501_v44 = vmul.f32 %v3309_v46, %v4690_v9  ;;  %v2500_v16 = vmul.f32 %v3309_v46, %v4688_v36 }
 0x782   : > { %v3311_v32 = vpop.eup %3310 }
 0x783   : > { %v2499_v25 = vmul.f32 %v3311_v32, %v4698_v49  ;;  %v2498_v43 = vmul.f32 %v3311_v32, %v4696_v23  ;;  %v3330_v32 = vld [vmem:[%s3500_s17 + $0x10] sm:$0xff] }
 0x784   : > { %2553 = vmatpush2.xpose.msra.mxu0 %v2506_v7  ;;  %v2384_v6 = vpop.xlane.xlu0 %2383  ;;  %v5145_v7 = vmov 0.0  }
 0x785   : > { %2554 = vmatprep.subr.mxu0 %v2505_v38  ;;  %3318 = vrcp.f32 %v2384_v6  ;;  %v2877_v38 = vld [vmem:[%s4946_s3 + $0x28] sm:$0xff] }
 0x786   : > { %v3313_v48 = vpop.eup %3312 }
 0x787   : > { %v2497_v2 = vmul.f32 %v3313_v48, %v4706_v52  ;;  %v2496_v36 = vmul.f32 %v3313_v48, %v4704_v5 }
 0x788   : > { %2555 = vmatpush2.xpose.msra.mxu0 %v2504_v59  ;;  %v2381_v57 = vpop.xlane.xlu1 %2380 }
 0x789   : > { %2556 = vmatprep.subr.mxu0 %v2503_v61  ;;  %3320 = vrcp.f32 %v2381_v57  ;;  %v3328_v61 = vld [vmem:[%s3500_s17] sm:$0xff] }
 0x78a   : > { %v3315_v9 = vpop.eup %3314  ;;  %v5146_v57 = vld [vmem:[#allocation25_spill] sm:$0xff] }
 0x78b   : > { %v2495_v49 = vmul.f32 %v3315_v9, %v4714_v19  ;;  %v2494_v23 = vmul.f32 %v3315_v9, %v4712_v47  ;;  %v5147_v9 = vld [vmem:[#allocation26_spill] sm:$0xff] }
 0x78c   : > { %2557 = vmatpush2.xpose.msra.mxu0 %v2502_v15  ;;  %v2378_v4 = vpop.xlane.xlu0 %2377  ;;  %v3329_v15 = vld [vmem:[%s3500_s17 + $0x8] sm:$0xff] }
 0x78d   : > { %2558 = vmatprep.subr.mxu0 %v2501_v44  ;;  %3322 = vrcp.f32 %v2378_v4 }
 0x78e   : > { %v3317_v10 = vpop.eup %3316 }
 0x78f   : > { %v2493_v52 = vmul.f32 %v3317_v10, %v4722_v40  ;;  %v2492_v24 = vmul.f32 %v3317_v10, %v4720_v41  ;;  %v5137_v41 = vld [vmem:[#allocation5_spill] sm:$0xff] }
 0x790   : > { %2559 = vmatpush2.xpose.msra.mxu0 %v2500_v16  ;;  %v2375_v17 = vpop.xlane.xlu1 %2374 }
 0x791   : > { %2560 = vmatprep.subr.mxu0 %v2499_v25  ;;  %3324 = vrcp.f32 %v2375_v17  ;;  %v3331_v17 = vld [vmem:[%s3500_s17 + $0x18] sm:$0xff] }
 0x792   : > { %v3319_v28 = vpop.eup %3318 }
 0x793   : > { %v2491_v5 = vmul.f32 %v3319_v28, %v4730_v58  ;;  %v2490_v19 = vmul.f32 %v3319_v28, %v4728_v3  ;;  %v5138_v58 = vld [vmem:[#allocation11_spill] sm:$0xff]  ;;  %v5139_v3 = vld [vmem:[#allocation12_spill] sm:$0xff]  ;;  %v3333_v28 = vld [vmem:[%s3500_s17 + $0x28] sm:$0xff] }
 0x794   : > { %2561 = vmatpush2.xpose.msra.mxu0 %v2498_v43  ;;  %v308_v18 = vpop.permute.xlu1 %307  ;;  %v2372_v30 = vpop.xlane.xlu0 %2371 }
 0x795   : > { %2562 = vmatprep.subr.mxu0 %v2497_v2  ;;  %v481_v53 = vadd.f32 %v5135_v22, %v308_v18  ;;  %3326 = vrcp.f32 %v2372_v30  ;;  %v479_v21 = vadd.f32 %v5142_v8, %v308_v18  ;;  %v3332_v22 = vld [vmem:[%s3500_s17 + $0x20] sm:$0xff] }
 0x796   : > { %v3321_v45 = vpop.eup %3320 }
 0x797   : > { %2578 = vmatprep.mubr.f32.mxu0 %v481_v53  ;;  %v2489_v54 = vmul.f32 %v3321_v45, %v4736_v11  ;;  %v2488_v40 = vmul.f32 %v3321_v45, %v4734_v42  ;;  %v5140_v11 = vld [vmem:[#allocation27_spill] sm:$0xff] }
 0x798   : > { %2563 = vmatpush2.xpose.msra.mxu0 %v2496_v36  ;;  %v496_v59 = vpop.permute.xlu1 %495 }
 0x799   : > { %2564 = vmatprep.subr.mxu0 %v2495_v49  ;;  %v513_v46 = vadd.f32 %v3328_v61, %v496_v59  ;;  %v514_v44 = vadd.f32 %v3329_v15, %v496_v59  ;;  %v5148_v49 = vld [vmem:[#allocation24_spill] sm:$0xff] }
 0x79a   : > { %v3323_v47 = vpop.eup %3322 }
 0x79b   : > { %v2487_v26 = vmul.f32 %v3323_v47, %v5136_v56  ;;  %v2486_v1 = vmul.f32 %v3323_v47, %v5137_v41  ;;  %v1605_v16 = vadd.f32 %v5146_v57, %v513_v46  ;;  %v1606_v4 = vadd.f32 %v5147_v9, %v514_v44  ;;  %v5150_v56 = vld [vmem:[#allocation23_spill] sm:$0xff]  ;;  %v3335_v41 = vld [vmem:[%s3500_s17 + $0x38] sm:$0xff] }
 0x79c   : > { %2565 = vmatpush2.xpose.msra.mxu0 %v2494_v23  ;;  %v313_v50 = vpop.permute.xlu0 %312  ;;  %v501_v55 = vpop.permute.xlu1 %500 }
 0x79d   : > { %2566 = vmatprep.subr.mxu0 %v2493_v52  ;;  %v487_v33 = vadd.f32 %v5143_v29, %v313_v50  ;;  %v485_v12 = vadd.f32 %v5144_v51, %v313_v50  ;;  %v515_v6 = vadd.f32 %v3330_v32, %v501_v55  ;;  %v516_v43 = vadd.f32 %v3331_v17, %v501_v55  ;;  %v5153_v50 = vld [vmem:[#allocation19_spill] sm:$0xff] }
 0x79e   : > { %v3325_v34 = vpop.eup %3324 }
 0x79f   : > { %v2485_v39 = vmul.f32 %v3325_v34, %v5138_v58  ;;  %v2484_v35 = vmul.f32 %v3325_v34, %v5139_v3  ;;  %v1607_v10 = vadd.f32 %v5148_v49, %v515_v6 }
 0x7a0   : > { %2567 = vmatpush2.xpose.msra.mxu0 %v2492_v24  ;;  %v506_v25 = vpop.permute.xlu0 %505  ;;  %v511_v23 = vpop.permute.xlu1 %510 }
 0x7a1   : > { %2568 = vmatprep.subr.mxu0 %v2491_v5  ;;  %v517_v53 = vadd.f32 %v3332_v22, %v506_v25  ;;  %v518_v30 = vadd.f32 %v3333_v28, %v506_v25  ;;  %v5149_v5 = vld [vmem:[#allocation22_spill] sm:$0xff] }
 0x7a2   : > { %v3327_v62 = vpop.eup %3326  ;;  %v1608_v45 = vadd.f32 %v5149_v5, %v516_v43 }
 0x7a3   : > { %v2483_v13 = vmul.f32 %v3327_v62, %v5140_v11  ;;  %v2482_v42 = vmul.f32 %v3327_v62, %v5141_v31  ;;  %v5152_v11 = vld [vmem:[#allocation32_spill] sm:$0xff] }
 0x7a4   : > { %2569 = vmatpush2.xpose.msra.mxu0 %v2490_v19 }
 0x7a5   : > { %2570 = vmatprep.subr.mxu0 %v2489_v54  ;;  %v3334_v54 = vld [vmem:[%s3500_s17 + $0x30] sm:$0xff] }
 0x7a6   : > { %v519_v47 = vadd.f32 %v3334_v54, %v511_v23 }
 0x7a8   : > { %2571 = vmatpush2.xpose.msra.mxu0 %v2488_v40 }
 0x7a9   : > { %2572 = vmatprep.subr.mxu0 %v2487_v26  ;;  %v1609_v26 = vadd.f32 %v5150_v56, %v517_v53 }
 0x7ac   : > { %2573 = vmatpush2.xpose.msra.mxu0 %v2486_v1  ;;  %v520_v1 = vadd.f32 %v3335_v41, %v511_v23 }
 0x7ad   : > { %2574 = vmatprep.subr.mxu0 %v2485_v39  ;;  %v5151_v39 = vld [vmem:[#allocation21_spill] sm:$0xff] }
 0x7ae   : > { %v1610_v62 = vadd.f32 %v5151_v39, %v518_v30  ;;  %v1612_v8 = vadd.f32 %v5153_v50, %v520_v1 }
 0x7b0   : > { %2575 = vmatpush2.xpose.msra.mxu0 %v2484_v35 }
 0x7b1   : > { %2576 = vmatprep.subr.mxu0 %v2483_v13  ;;  %v1611_v13 = vadd.f32 %v5152_v11, %v519_v47 }
 0x7b4   : > { %2577 = vmatpush2.xpose.msra.mxu0 %v2482_v42 }
 0x7b7   : > { %2579 = vmatmul.mubr.f32.vlgmr.msra.gmra.mxu0 %v479_v21 }
 0x7b8   : > { %2584 = vmatprep.mubr.f32.mxu0 %v487_v33 }
 0x7bb   : > { %2585 = vmatmul.mubr.f32.gmra.mxu0 %v485_v12 }
 0x877   : > { %v2580_v27 = vpop.f32.mrf.mxu0 }
 0x879   : > { %v2582_v14 = vpop.f32.mrf.mxu0 }
 0x87b   : > { %v2586_v63 = vpop.f32.mrf.mxu0 }
 0x87d   : > { %v2588_v20 = vpop.f32.mrf.mxu0 }
 0x87e   : > { %2636 = vmatprep.subr.mxu1 %v2588_v20 }
 0x87f   : > { %2637 = vmatpush1.msra.mxu1 %v2586_v63 }
 0x880   : > { %2638 = vmatprep.subr.mxu1 %v2582_v14 }
 0x881   : > { %2639 = vmatpush1.msra.mxu1 %v2580_v27 }
 0x882   : > { %2880 = vmatmul.mubr.msk.f32.vlgmr.msra.gmra.mxu1 %vm589_vm1, %v2876_v0 }
 0x883   : > { %2678 = vmatprep.mubr.f32.mxu1 %v5145_v7 }
 0x886   : > { %2881 = vmatmul.mubr.msk.f32.gmra.mxu1 %vm589_vm1, %v2877_v38 }
 0x887   : > { %2684 = vmatprep.mubr.f32.mxu1 %v5145_v7 }
 0x88a   : > { %2882 = vmatmul.mubr.msk.f32.gmra.mxu1 %vm589_vm1, %v2878_v37 }
 0x88b   : > { %2690 = vmatprep.mubr.f32.mxu1 %v5145_v7 }
 0x88e   : > { %2883 = vmatmul.mubr.msk.f32.gmra.mxu1 %vm589_vm1, %v2879_v60 }
 0x942   : > { %v2674_v48 = vpop.f32.mrf.mxu1 }
 0x943   : > { %v2697_v2 = vadd.f32 %v2674_v48, %v1605_v16 }
 0x944   : > { %v2676_v18 = vpop.f32.mrf.mxu1 }
 0x945   : > { %2705 = vst [vmem:[%s4873_s8] sm:$0xff] %v2697_v2  ;;  %v2698_v36 = vadd.f32 %v2676_v18, %v1606_v4 }
 0x946   : > { %v2680_v52 = vpop.f32.mrf.mxu1 }
 0x947   : > { %2706 = vst [vmem:[%s4873_s8 + $0x8] sm:$0xff] %v2698_v36  ;;  %v2699_v24 = vadd.f32 %v2680_v52, %v1607_v10 }
 0x948   : > { %v2682_v19 = vpop.f32.mrf.mxu1 }
 0x949   : > { %2707 = vst [vmem:[%s4873_s8 + $0x10] sm:$0xff] %v2699_v24  ;;  %v2700_v40 = vadd.f32 %v2682_v19, %v1608_v45 }
 0x94a   : > { %v2686_v34 = vpop.f32.mrf.mxu1 }
 0x94b   : > { %2708 = vst [vmem:[%s4873_s8 + $0x18] sm:$0xff] %v2700_v40  ;;  %v2701_v58 = vadd.f32 %v2686_v34, %v1609_v26 }
 0x94c   : > { %v2688_v3 = vpop.f32.mrf.mxu1 }
 0x94d   : > { %2709 = vst [vmem:[%s4873_s8 + $0x20] sm:$0xff] %v2701_v58  ;;  %v2702_v35 = vadd.f32 %v2688_v3, %v1610_v62 }
 0x94e   : > { %v2692_v31 = vpop.f32.mrf.mxu1 }
 0x94f   : > { %2710 = vst [vmem:[%s4873_s8 + $0x28] sm:$0xff] %v2702_v35  ;;  %v2703_v42 = vadd.f32 %v2692_v31, %v1611_v13 }
 0x950   : > { %v2694_v21 = vpop.f32.mrf.mxu1 }
 0x951   : > { %2711 = vst [vmem:[%s4873_s8 + $0x30] sm:$0xff] %v2703_v42  ;;  %v2704_v29 = vadd.f32 %v2694_v21, %v1612_v8 }
 0x953   : > { %2712 = vst [vmem:[%s4873_s8 + $0x38] sm:$0xff] %v2704_v29 }
 0x954   : > { %3349 = shalt.err (!%p3346_p3)
}
 0x955   : > { %s3350_s23 = scalar_lea.hbm %s4895_s12, 1024  ;;  %s3354_s30 = scalar_lea.hbm %s4948_s5, 2048 }
 0x956   : > { %p3351_p4 = scmp.ne.s32.totalorder %s4895_s12, %s3350_s23  ;;  %p3355_p9 = scmp.lt.s32.totalorder %s4895_s12, %s4948_s5 }
 0x957   : > { %p3356_p10 = scmp.lt.s32.totalorder %s3354_s30, %s3350_s23 }
 0x958   : > { %p3352_p7 = pnand %p3351_p4, %p3471_p5 }
 0x959   : > { %p3357_p11 = por %p3356_p10, %p3355_p9 }
 0x95a   : > { %p3353_p8 = pneg %p3352_p7 }
 0x95c   : > { %p3358_p12 = pnand %p3357_p11, %p3353_p8 }
 0x95e   : > { %3361 = shalt.err (!%p3358_p12)
}
 0x95f   : > { %s3401_s8 = smov 256   ;;  %s3402_s9 = smov 16  }
 0x960   : > { %2899 = dma.vmem_to_hbm [thread:$0]  (%p3471_p5), %s4897_s10, 1024, %s4895_s12, %s4903_s22, %s3401_s8, %s3401_s8, %s3402_s9  }
 0x961 PF: > { %p2905_p13 = scmp.ge.s32.totalorder %s3396_s21, 2  ;;  %s2742_s17 = sand.u32 1, %s3384_s18  }
 0x962   : > { %s2743_s11 = scalar_lea.sflag [#allocation3], %s2742_s17 }
 0x963   : > { %p2902_p0 = pnand %p2905_p13, %p3475_p6 }
 0x965   : > { %p2903_p1 = pneg %p2902_p0 }
 0x967   : > { %3379 = dma.done.wait (%p2903_p1), %s2743_s11, 1024  }
 0x968   : > { %3381 = vsyncadd (%p2903_p1), %s2743_s11, 4294966272  ;;  %p15_p2 = scmp.ge.s32.totalorder %s3458_s24, 4   ;;  %s5154_s18 = smov %s3388_s19 }
 0x969   : > { %s5155_s19 = smov %s3392_s20  ;;  %s5156_s20 = smov %s3469_s27 }
 0x96a   : > { %s5157_s21 = smov %s3458_s24  ;;  %17 = sbr.rel (!%p15_p2) target bundleno = 3 (0x3), region = 76 }
 0x96f   :  { %2748 = vsyncpa [#allocation3], 1 }
 0x970   :  { %2750 = vsyncpa [#allocation3 + $0x1], 1 }

</bundles_post_ra>
